<compile_context>
chip_gen: v6e
topology: v6e:2x2x1
jax: 0.10.0
libtpu: 0.0.40
codegen_flags: <defaults>
</compile_context>

<pallas_src>
import math
import functools

import jax
import jax.numpy as jnp
from jax.experimental import pallas as pl
from jax.experimental.pallas import tpu as pltpu

# ----- config: d2l "small" BERT shrunk for the demo; HID=256 forced by nn.Linear(256, 3) -----
VOCAB = 100
HID = 256
FFN = 512
NH = 4
DH = HID // NH
LAYERS = 2
MAX_LEN = 64
LN_EPS = 1e-5              # PyTorch nn.LayerNorm default
NUM_CLASSES = 3
LOGIT_PAD = 128            # lane-dense padded logits width
MXU_DTYPE = jnp.bfloat16   # matmul operand dtype (accumulation stays f32)


# ---------------- Pallas kernels ----------------

def _layernorm(z, g, b):
    mu = jnp.mean(z, axis=-1, keepdims=True)
    var = jnp.mean((z - mu) ** 2, axis=-1, keepdims=True)
    return (z - mu) * jax.lax.rsqrt(var + LN_EPS) * g + b


def _encoder_block_kernel(vl_ref,                       # scalar prefetch (SMEM)
                          x_ref, wqkv_ref, wo_ref,
                          ln1g_ref, ln1b_ref,
                          w1_ref, b1_ref, w2_ref, b2_ref,
                          ln2g_ref, ln2b_ref,
                          o_ref, *, scale):
    """One full transformer encoder block for one batch row."""
    b = pl.program_id(0)
    vl = vl_ref[b]                                      # valid length for this row
    x2 = x_ref[0]                                       # (S, HID) f32
    S = x2.shape[0]

    # --- fused Q/K/V projection (bias-free, matches d2l MHA use_bias=False) ---
    qkv = jnp.dot(x2.astype(MXU_DTYPE), wqkv_ref[...],
                  preferred_element_type=jnp.float32)   # (S, 3*HID) f32

    wo = wo_ref[...]                                    # (HID, HID) bf16
    col = jax.lax.broadcasted_iota(jnp.int32, (S, S), 1)
    key_mask = col < vl                                 # d2l masked_softmax semantics

    # --- per-head masked attention; heads statically unrolled (NH=4).
    #     Output projection folded per head -> accumulator is lane-dense (S, HID).
    y = jnp.zeros((S, HID), jnp.float32)
    for h in range(NH):
        q_h = (qkv[:, h * DH:(h + 1) * DH] * scale).astype(MXU_DTYPE)     # scale folded into q
        k_h = qkv[:, HID + h * DH: HID + (h + 1) * DH].astype(MXU_DTYPE)
        v_h = qkv[:, 2 * HID + h * DH: 2 * HID + (h + 1) * DH].astype(MXU_DTYPE)

        s = jax.lax.dot_general(q_h, k_h, (((1,), (1,)), ((), ())),
                                preferred_element_type=jnp.float32)       # (S, S) = q @ k^T
        s = jnp.where(key_mask, s, -1e6)
        s = s - jnp.max(s, axis=-1, keepdims=True)
        p = jnp.exp(s)
        p = p * pl.reciprocal(jnp.sum(p, axis=-1, keepdims=True), approx=True)

        a_h = jnp.dot(p.astype(MXU_DTYPE), v_h,
                      preferred_element_type=jnp.float32)                 # (S, DH)
        y = y + jnp.dot(a_h.astype(MXU_DTYPE), wo[h * DH:(h + 1) * DH, :],
                        preferred_element_type=jnp.float32)               # (S, HID)

    # --- AddNorm 1 (f32 elementwise) ---
    z1 = _layernorm(x2 + y, ln1g_ref[...], ln1b_ref[...])

    # --- position-wise FFN (relu) + AddNorm 2, all fused ---
    f = jnp.dot(z1.astype(MXU_DTYPE), w1_ref[...],
                preferred_element_type=jnp.float32) + b1_ref[...]
    f = jnp.maximum(f, 0.0)
    g = jnp.dot(f.astype(MXU_DTYPE), w2_ref[...],
                preferred_element_type=jnp.float32) + b2_ref[...]
    o_ref[0] = _layernorm(z1 + g, ln2g_ref[...], ln2b_ref[...])


def encoder_block(x, valid_lens, lp):
    """x: (B, S, HID) f32, valid_lens: (B,) int32 -> (B, S, HID) f32."""
    B, S, _ = x.shape
    scale = 1.0 / math.sqrt(DH)

    def wspec(shape):
        return pl.BlockSpec(shape, lambda b, vl: (0,) * len(shape))

    xspec = pl.BlockSpec((1, S, HID), lambda b, vl: (b, 0, 0))

    return pl.pallas_call(
        functools.partial(_encoder_block_kernel, scale=scale),
        out_shape=jax.ShapeDtypeStruct((B, S, HID), jnp.float32),
        grid_spec=pltpu.PrefetchScalarGridSpec(
            num_scalar_prefetch=1,
            grid=(B,),
            in_specs=[
                xspec,
                wspec((HID, 3 * HID)),               # wqkv (bf16)
                wspec((HID, HID)),                   # wo   (bf16)
                wspec((1, HID)), wspec((1, HID)),    # ln1 gamma/beta
                wspec((HID, FFN)), wspec((1, FFN)),  # w1 (bf16), b1
                wspec((FFN, HID)), wspec((1, HID)),  # w2 (bf16), b2
                wspec((1, HID)), wspec((1, HID)),    # ln2 gamma/beta
            ],
            out_specs=xspec,
        ),
        compiler_params=pltpu.CompilerParams(
            dimension_semantics=("parallel",),       # batch rows independent -> 2 TCs on v7x
        ),
    )(valid_lens, x, lp["wqkv"], lp["wo"], lp["ln1_g"], lp["ln1_b"],
      lp["w1"], lp["b1"], lp["w2"], lp["b2"], lp["ln2_g"], lp["ln2_b"])


def _classifier_kernel(cls_ref, wh_ref, bh_ref, wout_ref, bout_ref, o_ref):
    h = jnp.dot(cls_ref[...].astype(MXU_DTYPE), wh_ref[...],
                preferred_element_type=jnp.float32) + bh_ref[...]
    h = jnp.tanh(h)
    o_ref[...] = jnp.dot(h.astype(MXU_DTYPE), wout_ref[...],
                         preferred_element_type=jnp.float32) + bout_ref[...]


def classifier_head(cls, wh, bh, wout_p, bout_p):
    """cls: (B, HID) -> padded logits (B, LOGIT_PAD); fused tanh-hidden + output."""
    B = cls.shape[0]
    return pl.pallas_call(
        _classifier_kernel,
        out_shape=jax.ShapeDtypeStruct((B, LOGIT_PAD), jnp.float32),
        grid=(1,),
        in_specs=[
            pl.BlockSpec((B, HID), lambda i: (0, 0)),
            pl.BlockSpec((HID, HID), lambda i: (0, 0)),
            pl.BlockSpec((1, HID), lambda i: (0, 0)),
            pl.BlockSpec((HID, LOGIT_PAD), lambda i: (0, 0)),
            pl.BlockSpec((1, LOGIT_PAD), lambda i: (0, 0)),
        ],
        out_specs=pl.BlockSpec((B, LOGIT_PAD), lambda i: (0, 0)),
    )(cls, wh, bh, wout_p, bout_p)


# ---------------- parameters ----------------

def init_params(key):
    ks = iter(jax.random.split(key, 64))

    def w(shape, s=0.02):
        return s * jax.random.normal(next(ks), shape, jnp.float32)

    wout = w((HID, NUM_CLASSES))
    wout_p = jnp.zeros((HID, LOGIT_PAD), jnp.float32).at[:, :NUM_CLASSES].set(wout)

    params = {
        "tok_emb": w((VOCAB, HID)),
        "seg_emb": w((2, HID)),
        "pos_emb": w((MAX_LEN, HID)),
        "wh": w((HID, HID)).astype(MXU_DTYPE),                      # bert.hidden
        "bh": jnp.zeros((1, HID), jnp.float32),
        "wout_p": wout_p.astype(MXU_DTYPE),                         # self.output (lane padded)
        "bout_p": jnp.zeros((1, LOGIT_PAD), jnp.float32),
        "blocks": [],
    }
    for _ in range(LAYERS):
        # d2l MHA projections are bias-free; Q|K|V weights concatenated for one fused matmul.
        wqkv = jnp.concatenate([w((HID, HID)), w((HID, HID)), w((HID, HID))], axis=1)
        params["blocks"].append({
            "wqkv": wqkv.astype(MXU_DTYPE),
            "wo": w((HID, HID)).astype(MXU_DTYPE),
            "ln1_g": jnp.ones((1, HID), jnp.float32),
            "ln1_b": jnp.zeros((1, HID), jnp.float32),
            "w1": w((HID, FFN)).astype(MXU_DTYPE),
            "b1": jnp.zeros((1, FFN), jnp.float32),
            "w2": w((FFN, HID)).astype(MXU_DTYPE),
            "b2": jnp.zeros((1, HID), jnp.float32),
            "ln2_g": jnp.ones((1, HID), jnp.float32),
            "ln2_b": jnp.zeros((1, HID), jnp.float32),
        })
    return params


# ---------------- forward (eval-mode: dropout is identity) ----------------

def bert_classifier_forward(params, tokens, segments, valid_lens):
    B, S = tokens.shape
    # embedding gathers kept in plain JAX glue
    x = (params["tok_emb"][tokens]
         + params["seg_emb"][segments]
         + params["pos_emb"][:S][None, :, :])                 # (B, S, HID) f32

    for lp in params["blocks"]:
        x = encoder_block(x, valid_lens, lp)                  # one fused kernel per layer

    cls = x[:, 0, :]                                          # encoded_X[:, 0, :]
    logits_p = classifier_head(cls, params["wh"], params["bh"],
                               params["wout_p"], params["bout_p"])
    return logits_p[:, :NUM_CLASSES]                          # self.output -> (B, 3)


if __name__ == "__main__":
    key = jax.random.PRNGKey(0)
    pk, tk, _ = jax.random.split(key, 3)
    params = init_params(pk)

    B, S = 2, 8
    tokens = jax.random.randint(tk, (B, S), 0, VOCAB, dtype=jnp.int32)
    segments = jnp.concatenate(
        [jnp.zeros((B, S // 2), jnp.int32), jnp.ones((B, S // 2), jnp.int32)], axis=1)
    valid_lens = jnp.array([S, 5], dtype=jnp.int32)

    logits = jax.jit(bert_classifier_forward)(params, tokens, segments, valid_lens)
    jax.block_until_ready(logits)
    assert logits.shape == (B, NUM_CLASSES) and logits.dtype == jnp.float32
    print("KERNEL_OK")
</pallas_src>

<mosaic_0001>
module attributes {stable_mosaic.version = 11 : i64} {
  func.func @_encoder_block_kernel(%arg0: i32, %arg1: memref<2xi32, #tpu.memory_space<smem>>, %arg2: memref<1x8x256xf32, #tpu.memory_space<vmem>>, %arg3: memref<256x768xbf16, #tpu.memory_space<vmem>>, %arg4: memref<256x256xbf16, #tpu.memory_space<vmem>>, %arg5: memref<1x256xf32, #tpu.memory_space<vmem>>, %arg6: memref<1x256xf32, #tpu.memory_space<vmem>>, %arg7: memref<256x512xbf16, #tpu.memory_space<vmem>>, %arg8: memref<1x512xf32, #tpu.memory_space<vmem>>, %arg9: memref<512x256xbf16, #tpu.memory_space<vmem>>, %arg10: memref<1x256xf32, #tpu.memory_space<vmem>>, %arg11: memref<1x256xf32, #tpu.memory_space<vmem>>, %arg12: memref<1x256xf32, #tpu.memory_space<vmem>>, %arg13: memref<1x8x256xf32, #tpu.memory_space<vmem>>) attributes {dimension_semantics = [#tpu.dimension_semantics<parallel>], iteration_bounds = array<i64: 2>, scalar_prefetch = 1 : i64, scratch_operands = 0 : i64, tpu.core_type = #tpu.core_type<tc>, window_params = [{transform_indices = @transform_0, window_bounds = array<i64: 1, 8, 256>}, {pipeline_mode = #tpu.pipeline_mode<synchronous>, transform_indices = @transform_1, window_bounds = array<i64: 256, 768>}, {pipeline_mode = #tpu.pipeline_mode<synchronous>, transform_indices = @transform_2, window_bounds = array<i64: 256, 256>}, {pipeline_mode = #tpu.pipeline_mode<synchronous>, transform_indices = @transform_3, window_bounds = array<i64: 1, 256>}, {pipeline_mode = #tpu.pipeline_mode<synchronous>, transform_indices = @transform_4, window_bounds = array<i64: 1, 256>}, {pipeline_mode = #tpu.pipeline_mode<synchronous>, transform_indices = @transform_5, window_bounds = array<i64: 256, 512>}, {pipeline_mode = #tpu.pipeline_mode<synchronous>, transform_indices = @transform_6, window_bounds = array<i64: 1, 512>}, {pipeline_mode = #tpu.pipeline_mode<synchronous>, transform_indices = @transform_7, window_bounds = array<i64: 512, 256>}, {pipeline_mode = #tpu.pipeline_mode<synchronous>, transform_indices = @transform_8, window_bounds = array<i64: 1, 256>}, {pipeline_mode = #tpu.pipeline_mode<synchronous>, transform_indices = @transform_9, window_bounds = array<i64: 1, 256>}, {pipeline_mode = #tpu.pipeline_mode<synchronous>, transform_indices = @transform_10, window_bounds = array<i64: 1, 256>}, {transform_indices = @transform_11, window_bounds = array<i64: 1, 8, 256>}]} {
    %0 = arith.index_cast %arg0 : i32 to index
    %1 = memref.load %arg1[%0] : memref<2xi32, #tpu.memory_space<smem>>
    %c0 = arith.constant 0 : index
    %c0_0 = arith.constant 0 : index
    %c0_1 = arith.constant 0 : index
    %2 = vector.load %arg2[%c0, %c0_0, %c0_1] : memref<1x8x256xf32, #tpu.memory_space<vmem>>, vector<1x8x256xf32>
    %3 = vector.shape_cast %2 : vector<1x8x256xf32> to vector<8x256xf32>
    %4 = arith.truncf %3 : vector<8x256xf32> to vector<8x256xbf16>
    %c0_2 = arith.constant 0 : index
    %c0_3 = arith.constant 0 : index
    %5 = vector.load %arg3[%c0_2, %c0_3] : memref<256x768xbf16, #tpu.memory_space<vmem>>, vector<256x768xbf16>
    %cst = arith.constant dense<0.000000e+00> : vector<8x768xf32>
    %6 = tpu.matmul %4, %5, %cst {dimension_numbers = #tpu.dot_dimension_numbers<[1], [0], [0], [1], [0, 0, 1, 1], [], []>} : vector<8x256xbf16>, vector<256x768xbf16>, vector<8x768xf32> -> vector<8x768xf32>
    %c0_4 = arith.constant 0 : index
    %c0_5 = arith.constant 0 : index
    %7 = vector.load %arg4[%c0_4, %c0_5] : memref<256x256xbf16, #tpu.memory_space<vmem>>, vector<256x256xbf16>
    %8 = tpu.iota {dimensions = array<i32: 1>} : vector<8x8xi32>
    %9 = vector.broadcast %1 : i32 to vector<8x8xi32>
    %10 = arith.cmpi slt, %8, %9 : vector<8x8xi32>
    %cst_6 = arith.constant 0.000000e+00 : f32
    %11 = vector.broadcast %cst_6 : f32 to vector<8x256xf32>
    %12 = vector.extract_strided_slice %6 {offsets = [0, 0], sizes = [8, 64], strides = [1, 1]} : vector<8x768xf32> to vector<8x64xf32>
    %cst_7 = arith.constant 1.250000e-01 : f32
    %13 = vector.broadcast %cst_7 : f32 to vector<8x64xf32>
    %14 = arith.mulf %12, %13 : vector<8x64xf32>
    %15 = arith.truncf %14 : vector<8x64xf32> to vector<8x64xbf16>
    %16 = vector.extract_strided_slice %6 {offsets = [0, 256], sizes = [8, 64], strides = [1, 1]} : vector<8x768xf32> to vector<8x64xf32>
    %17 = arith.truncf %16 : vector<8x64xf32> to vector<8x64xbf16>
    %18 = vector.extract_strided_slice %6 {offsets = [0, 512], sizes = [8, 64], strides = [1, 1]} : vector<8x768xf32> to vector<8x64xf32>
    %19 = arith.truncf %18 : vector<8x64xf32> to vector<8x64xbf16>
    %cst_8 = arith.constant dense<0.000000e+00> : vector<8x8xf32>
    %20 = tpu.matmul %15, %17, %cst_8 {dimension_numbers = #tpu.dot_dimension_numbers<[1], [1], [0], [0], [0, 0, 1, 0], [], []>} : vector<8x64xbf16>, vector<8x64xbf16>, vector<8x8xf32> -> vector<8x8xf32>
    %cst_9 = arith.constant -1.000000e+06 : f32
    %21 = vector.broadcast %cst_9 : f32 to vector<8x8xf32>
    %22 = arith.select %10, %20, %21 : vector<8x8xi1>, vector<8x8xf32>
    %cst_10 = arith.constant dense<0xFF800000> : vector<8xf32>
    %23 = vector.multi_reduction <maximumf>, %22, %cst_10 [1] : vector<8x8xf32> to vector<8xf32>
    %24 = vector.shape_cast %23 : vector<8xf32> to vector<8x1xf32>
    %25 = vector.broadcast %24 : vector<8x1xf32> to vector<8x8xf32>
    %26 = arith.subf %22, %25 : vector<8x8xf32>
    %27 = math.exp %26 : vector<8x8xf32>
    %cst_11 = arith.constant dense<0.000000e+00> : vector<8xf32>
    %28 = vector.multi_reduction <add>, %27, %cst_11 [1] : vector<8x8xf32> to vector<8xf32>
    %29 = vector.shape_cast %28 : vector<8xf32> to vector<8x1xf32>
    %30 = tpu.reciprocal %29 {approx = true} : vector<8x1xf32> -> vector<8x1xf32>
    %31 = vector.broadcast %30 : vector<8x1xf32> to vector<8x8xf32>
    %32 = arith.mulf %27, %31 : vector<8x8xf32>
    %33 = arith.truncf %32 : vector<8x8xf32> to vector<8x8xbf16>
    %cst_12 = arith.constant dense<0.000000e+00> : vector<8x64xf32>
    %34 = tpu.matmul %33, %19, %cst_12 {dimension_numbers = #tpu.dot_dimension_numbers<[1], [0], [0], [1], [0, 0, 1, 1], [], []>} : vector<8x8xbf16>, vector<8x64xbf16>, vector<8x64xf32> -> vector<8x64xf32>
    %35 = arith.truncf %34 : vector<8x64xf32> to vector<8x64xbf16>
    %36 = vector.extract_strided_slice %7 {offsets = [0, 0], sizes = [64, 256], strides = [1, 1]} : vector<256x256xbf16> to vector<64x256xbf16>
    %cst_13 = arith.constant dense<0.000000e+00> : vector<8x256xf32>
    %37 = tpu.matmul %35, %36, %cst_13 {dimension_numbers = #tpu.dot_dimension_numbers<[1], [0], [0], [1], [0, 0, 1, 1], [], []>} : vector<8x64xbf16>, vector<64x256xbf16>, vector<8x256xf32> -> vector<8x256xf32>
    %38 = arith.addf %11, %37 : vector<8x256xf32>
    %39 = vector.extract_strided_slice %6 {offsets = [0, 64], sizes = [8, 64], strides = [1, 1]} : vector<8x768xf32> to vector<8x64xf32>
    %cst_14 = arith.constant 1.250000e-01 : f32
    %40 = vector.broadcast %cst_14 : f32 to vector<8x64xf32>
    %41 = arith.mulf %39, %40 : vector<8x64xf32>
    %42 = arith.truncf %41 : vector<8x64xf32> to vector<8x64xbf16>
    %43 = vector.extract_strided_slice %6 {offsets = [0, 320], sizes = [8, 64], strides = [1, 1]} : vector<8x768xf32> to vector<8x64xf32>
    %44 = arith.truncf %43 : vector<8x64xf32> to vector<8x64xbf16>
    %45 = vector.extract_strided_slice %6 {offsets = [0, 576], sizes = [8, 64], strides = [1, 1]} : vector<8x768xf32> to vector<8x64xf32>
    %46 = arith.truncf %45 : vector<8x64xf32> to vector<8x64xbf16>
    %cst_15 = arith.constant dense<0.000000e+00> : vector<8x8xf32>
    %47 = tpu.matmul %42, %44, %cst_15 {dimension_numbers = #tpu.dot_dimension_numbers<[1], [1], [0], [0], [0, 0, 1, 0], [], []>} : vector<8x64xbf16>, vector<8x64xbf16>, vector<8x8xf32> -> vector<8x8xf32>
    %cst_16 = arith.constant -1.000000e+06 : f32
    %48 = vector.broadcast %cst_16 : f32 to vector<8x8xf32>
    %49 = arith.select %10, %47, %48 : vector<8x8xi1>, vector<8x8xf32>
    %cst_17 = arith.constant dense<0xFF800000> : vector<8xf32>
    %50 = vector.multi_reduction <maximumf>, %49, %cst_17 [1] : vector<8x8xf32> to vector<8xf32>
    %51 = vector.shape_cast %50 : vector<8xf32> to vector<8x1xf32>
    %52 = vector.broadcast %51 : vector<8x1xf32> to vector<8x8xf32>
    %53 = arith.subf %49, %52 : vector<8x8xf32>
    %54 = math.exp %53 : vector<8x8xf32>
    %cst_18 = arith.constant dense<0.000000e+00> : vector<8xf32>
    %55 = vector.multi_reduction <add>, %54, %cst_18 [1] : vector<8x8xf32> to vector<8xf32>
    %56 = vector.shape_cast %55 : vector<8xf32> to vector<8x1xf32>
    %57 = tpu.reciprocal %56 {approx = true} : vector<8x1xf32> -> vector<8x1xf32>
    %58 = vector.broadcast %57 : vector<8x1xf32> to vector<8x8xf32>
    %59 = arith.mulf %54, %58 : vector<8x8xf32>
    %60 = arith.truncf %59 : vector<8x8xf32> to vector<8x8xbf16>
    %cst_19 = arith.constant dense<0.000000e+00> : vector<8x64xf32>
    %61 = tpu.matmul %60, %46, %cst_19 {dimension_numbers = #tpu.dot_dimension_numbers<[1], [0], [0], [1], [0, 0, 1, 1], [], []>} : vector<8x8xbf16>, vector<8x64xbf16>, vector<8x64xf32> -> vector<8x64xf32>
    %62 = arith.truncf %61 : vector<8x64xf32> to vector<8x64xbf16>
    %63 = vector.extract_strided_slice %7 {offsets = [64, 0], sizes = [64, 256], strides = [1, 1]} : vector<256x256xbf16> to vector<64x256xbf16>
    %cst_20 = arith.constant dense<0.000000e+00> : vector<8x256xf32>
    %64 = tpu.matmul %62, %63, %cst_20 {dimension_numbers = #tpu.dot_dimension_numbers<[1], [0], [0], [1], [0, 0, 1, 1], [], []>} : vector<8x64xbf16>, vector<64x256xbf16>, vector<8x256xf32> -> vector<8x256xf32>
    %65 = arith.addf %38, %64 : vector<8x256xf32>
    %66 = vector.extract_strided_slice %6 {offsets = [0, 128], sizes = [8, 64], strides = [1, 1]} : vector<8x768xf32> to vector<8x64xf32>
    %cst_21 = arith.constant 1.250000e-01 : f32
    %67 = vector.broadcast %cst_21 : f32 to vector<8x64xf32>
    %68 = arith.mulf %66, %67 : vector<8x64xf32>
    %69 = arith.truncf %68 : vector<8x64xf32> to vector<8x64xbf16>
    %70 = vector.extract_strided_slice %6 {offsets = [0, 384], sizes = [8, 64], strides = [1, 1]} : vector<8x768xf32> to vector<8x64xf32>
    %71 = arith.truncf %70 : vector<8x64xf32> to vector<8x64xbf16>
    %72 = vector.extract_strided_slice %6 {offsets = [0, 640], sizes = [8, 64], strides = [1, 1]} : vector<8x768xf32> to vector<8x64xf32>
    %73 = arith.truncf %72 : vector<8x64xf32> to vector<8x64xbf16>
    %cst_22 = arith.constant dense<0.000000e+00> : vector<8x8xf32>
    %74 = tpu.matmul %69, %71, %cst_22 {dimension_numbers = #tpu.dot_dimension_numbers<[1], [1], [0], [0], [0, 0, 1, 0], [], []>} : vector<8x64xbf16>, vector<8x64xbf16>, vector<8x8xf32> -> vector<8x8xf32>
    %cst_23 = arith.constant -1.000000e+06 : f32
    %75 = vector.broadcast %cst_23 : f32 to vector<8x8xf32>
    %76 = arith.select %10, %74, %75 : vector<8x8xi1>, vector<8x8xf32>
    %cst_24 = arith.constant dense<0xFF800000> : vector<8xf32>
    %77 = vector.multi_reduction <maximumf>, %76, %cst_24 [1] : vector<8x8xf32> to vector<8xf32>
    %78 = vector.shape_cast %77 : vector<8xf32> to vector<8x1xf32>
    %79 = vector.broadcast %78 : vector<8x1xf32> to vector<8x8xf32>
    %80 = arith.subf %76, %79 : vector<8x8xf32>
    %81 = math.exp %80 : vector<8x8xf32>
    %cst_25 = arith.constant dense<0.000000e+00> : vector<8xf32>
    %82 = vector.multi_reduction <add>, %81, %cst_25 [1] : vector<8x8xf32> to vector<8xf32>
    %83 = vector.shape_cast %82 : vector<8xf32> to vector<8x1xf32>
    %84 = tpu.reciprocal %83 {approx = true} : vector<8x1xf32> -> vector<8x1xf32>
    %85 = vector.broadcast %84 : vector<8x1xf32> to vector<8x8xf32>
    %86 = arith.mulf %81, %85 : vector<8x8xf32>
    %87 = arith.truncf %86 : vector<8x8xf32> to vector<8x8xbf16>
    %cst_26 = arith.constant dense<0.000000e+00> : vector<8x64xf32>
    %88 = tpu.matmul %87, %73, %cst_26 {dimension_numbers = #tpu.dot_dimension_numbers<[1], [0], [0], [1], [0, 0, 1, 1], [], []>} : vector<8x8xbf16>, vector<8x64xbf16>, vector<8x64xf32> -> vector<8x64xf32>
    %89 = arith.truncf %88 : vector<8x64xf32> to vector<8x64xbf16>
    %90 = vector.extract_strided_slice %7 {offsets = [128, 0], sizes = [64, 256], strides = [1, 1]} : vector<256x256xbf16> to vector<64x256xbf16>
    %cst_27 = arith.constant dense<0.000000e+00> : vector<8x256xf32>
    %91 = tpu.matmul %89, %90, %cst_27 {dimension_numbers = #tpu.dot_dimension_numbers<[1], [0], [0], [1], [0, 0, 1, 1], [], []>} : vector<8x64xbf16>, vector<64x256xbf16>, vector<8x256xf32> -> vector<8x256xf32>
    %92 = arith.addf %65, %91 : vector<8x256xf32>
    %93 = vector.extract_strided_slice %6 {offsets = [0, 192], sizes = [8, 64], strides = [1, 1]} : vector<8x768xf32> to vector<8x64xf32>
    %cst_28 = arith.constant 1.250000e-01 : f32
    %94 = vector.broadcast %cst_28 : f32 to vector<8x64xf32>
    %95 = arith.mulf %93, %94 : vector<8x64xf32>
    %96 = arith.truncf %95 : vector<8x64xf32> to vector<8x64xbf16>
    %97 = vector.extract_strided_slice %6 {offsets = [0, 448], sizes = [8, 64], strides = [1, 1]} : vector<8x768xf32> to vector<8x64xf32>
    %98 = arith.truncf %97 : vector<8x64xf32> to vector<8x64xbf16>
    %99 = vector.extract_strided_slice %6 {offsets = [0, 704], sizes = [8, 64], strides = [1, 1]} : vector<8x768xf32> to vector<8x64xf32>
    %100 = arith.truncf %99 : vector<8x64xf32> to vector<8x64xbf16>
    %cst_29 = arith.constant dense<0.000000e+00> : vector<8x8xf32>
    %101 = tpu.matmul %96, %98, %cst_29 {dimension_numbers = #tpu.dot_dimension_numbers<[1], [1], [0], [0], [0, 0, 1, 0], [], []>} : vector<8x64xbf16>, vector<8x64xbf16>, vector<8x8xf32> -> vector<8x8xf32>
    %cst_30 = arith.constant -1.000000e+06 : f32
    %102 = vector.broadcast %cst_30 : f32 to vector<8x8xf32>
    %103 = arith.select %10, %101, %102 : vector<8x8xi1>, vector<8x8xf32>
    %cst_31 = arith.constant dense<0xFF800000> : vector<8xf32>
    %104 = vector.multi_reduction <maximumf>, %103, %cst_31 [1] : vector<8x8xf32> to vector<8xf32>
    %105 = vector.shape_cast %104 : vector<8xf32> to vector<8x1xf32>
    %106 = vector.broadcast %105 : vector<8x1xf32> to vector<8x8xf32>
    %107 = arith.subf %103, %106 : vector<8x8xf32>
    %108 = math.exp %107 : vector<8x8xf32>
    %cst_32 = arith.constant dense<0.000000e+00> : vector<8xf32>
    %109 = vector.multi_reduction <add>, %108, %cst_32 [1] : vector<8x8xf32> to vector<8xf32>
    %110 = vector.shape_cast %109 : vector<8xf32> to vector<8x1xf32>
    %111 = tpu.reciprocal %110 {approx = true} : vector<8x1xf32> -> vector<8x1xf32>
    %112 = vector.broadcast %111 : vector<8x1xf32> to vector<8x8xf32>
    %113 = arith.mulf %108, %112 : vector<8x8xf32>
    %114 = arith.truncf %113 : vector<8x8xf32> to vector<8x8xbf16>
    %cst_33 = arith.constant dense<0.000000e+00> : vector<8x64xf32>
    %115 = tpu.matmul %114, %100, %cst_33 {dimension_numbers = #tpu.dot_dimension_numbers<[1], [0], [0], [1], [0, 0, 1, 1], [], []>} : vector<8x8xbf16>, vector<8x64xbf16>, vector<8x64xf32> -> vector<8x64xf32>
    %116 = arith.truncf %115 : vector<8x64xf32> to vector<8x64xbf16>
    %117 = vector.extract_strided_slice %7 {offsets = [192, 0], sizes = [64, 256], strides = [1, 1]} : vector<256x256xbf16> to vector<64x256xbf16>
    %cst_34 = arith.constant dense<0.000000e+00> : vector<8x256xf32>
    %118 = tpu.matmul %116, %117, %cst_34 {dimension_numbers = #tpu.dot_dimension_numbers<[1], [0], [0], [1], [0, 0, 1, 1], [], []>} : vector<8x64xbf16>, vector<64x256xbf16>, vector<8x256xf32> -> vector<8x256xf32>
    %119 = arith.addf %92, %118 : vector<8x256xf32>
    %120 = arith.addf %3, %119 : vector<8x256xf32>
    %c0_35 = arith.constant 0 : index
    %c0_36 = arith.constant 0 : index
    %121 = vector.load %arg5[%c0_35, %c0_36] : memref<1x256xf32, #tpu.memory_space<vmem>>, vector<1x256xf32>
    %c0_37 = arith.constant 0 : index
    %c0_38 = arith.constant 0 : index
    %122 = vector.load %arg6[%c0_37, %c0_38] : memref<1x256xf32, #tpu.memory_space<vmem>>, vector<1x256xf32>
    %cst_39 = arith.constant dense<0.000000e+00> : vector<8xf32>
    %123 = vector.multi_reduction <add>, %120, %cst_39 [1] : vector<8x256xf32> to vector<8xf32>
    %124 = vector.shape_cast %123 : vector<8xf32> to vector<8x1xf32>
    %cst_40 = arith.constant 2.560000e+02 : f32
    %125 = vector.broadcast %cst_40 : f32 to vector<8x1xf32>
    %126 = arith.divf %124, %125 : vector<8x1xf32>
    %127 = vector.broadcast %126 : vector<8x1xf32> to vector<8x256xf32>
    %128 = arith.subf %120, %127 : vector<8x256xf32>
    %129 = arith.mulf %128, %128 : vector<8x256xf32>
    %cst_41 = arith.constant dense<0.000000e+00> : vector<8xf32>
    %130 = vector.multi_reduction <add>, %129, %cst_41 [1] : vector<8x256xf32> to vector<8xf32>
    %131 = vector.shape_cast %130 : vector<8xf32> to vector<8x1xf32>
    %cst_42 = arith.constant 2.560000e+02 : f32
    %132 = vector.broadcast %cst_42 : f32 to vector<8x1xf32>
    %133 = arith.divf %131, %132 : vector<8x1xf32>
    %134 = vector.broadcast %126 : vector<8x1xf32> to vector<8x256xf32>
    %135 = arith.subf %120, %134 : vector<8x256xf32>
    %cst_43 = arith.constant 9.99999974E-6 : f32
    %136 = vector.broadcast %cst_43 : f32 to vector<8x1xf32>
    %137 = arith.addf %133, %136 : vector<8x1xf32>
    %138 = math.rsqrt %137 : vector<8x1xf32>
    %139 = vector.broadcast %138 : vector<8x1xf32> to vector<8x256xf32>
    %140 = arith.mulf %135, %139 : vector<8x256xf32>
    %141 = vector.broadcast %121 : vector<1x256xf32> to vector<8x256xf32>
    %142 = arith.mulf %140, %141 : vector<8x256xf32>
    %143 = vector.broadcast %122 : vector<1x256xf32> to vector<8x256xf32>
    %144 = arith.addf %142, %143 : vector<8x256xf32>
    %145 = arith.truncf %144 : vector<8x256xf32> to vector<8x256xbf16>
    %c0_44 = arith.constant 0 : index
    %c0_45 = arith.constant 0 : index
    %146 = vector.load %arg7[%c0_44, %c0_45] : memref<256x512xbf16, #tpu.memory_space<vmem>>, vector<256x512xbf16>
    %cst_46 = arith.constant dense<0.000000e+00> : vector<8x512xf32>
    %147 = tpu.matmul %145, %146, %cst_46 {dimension_numbers = #tpu.dot_dimension_numbers<[1], [0], [0], [1], [0, 0, 1, 1], [], []>} : vector<8x256xbf16>, vector<256x512xbf16>, vector<8x512xf32> -> vector<8x512xf32>
    %c0_47 = arith.constant 0 : index
    %c0_48 = arith.constant 0 : index
    %148 = vector.load %arg8[%c0_47, %c0_48] : memref<1x512xf32, #tpu.memory_space<vmem>>, vector<1x512xf32>
    %149 = vector.broadcast %148 : vector<1x512xf32> to vector<8x512xf32>
    %150 = arith.addf %147, %149 : vector<8x512xf32>
    %cst_49 = arith.constant 0.000000e+00 : f32
    %151 = vector.broadcast %cst_49 : f32 to vector<8x512xf32>
    %152 = arith.maximumf %150, %151 : vector<8x512xf32>
    %153 = arith.truncf %152 : vector<8x512xf32> to vector<8x512xbf16>
    %c0_50 = arith.constant 0 : index
    %c0_51 = arith.constant 0 : index
    %154 = vector.load %arg9[%c0_50, %c0_51] : memref<512x256xbf16, #tpu.memory_space<vmem>>, vector<512x256xbf16>
    %cst_52 = arith.constant dense<0.000000e+00> : vector<8x256xf32>
    %155 = tpu.matmul %153, %154, %cst_52 {dimension_numbers = #tpu.dot_dimension_numbers<[1], [0], [0], [1], [0, 0, 1, 1], [], []>} : vector<8x512xbf16>, vector<512x256xbf16>, vector<8x256xf32> -> vector<8x256xf32>
    %c0_53 = arith.constant 0 : index
    %c0_54 = arith.constant 0 : index
    %156 = vector.load %arg10[%c0_53, %c0_54] : memref<1x256xf32, #tpu.memory_space<vmem>>, vector<1x256xf32>
    %157 = vector.broadcast %156 : vector<1x256xf32> to vector<8x256xf32>
    %158 = arith.addf %155, %157 : vector<8x256xf32>
    %159 = arith.addf %144, %158 : vector<8x256xf32>
    %c0_55 = arith.constant 0 : index
    %c0_56 = arith.constant 0 : index
    %160 = vector.load %arg11[%c0_55, %c0_56] : memref<1x256xf32, #tpu.memory_space<vmem>>, vector<1x256xf32>
    %c0_57 = arith.constant 0 : index
    %c0_58 = arith.constant 0 : index
    %161 = vector.load %arg12[%c0_57, %c0_58] : memref<1x256xf32, #tpu.memory_space<vmem>>, vector<1x256xf32>
    %cst_59 = arith.constant dense<0.000000e+00> : vector<8xf32>
    %162 = vector.multi_reduction <add>, %159, %cst_59 [1] : vector<8x256xf32> to vector<8xf32>
    %163 = vector.shape_cast %162 : vector<8xf32> to vector<8x1xf32>
    %cst_60 = arith.constant 2.560000e+02 : f32
    %164 = vector.broadcast %cst_60 : f32 to vector<8x1xf32>
    %165 = arith.divf %163, %164 : vector<8x1xf32>
    %166 = vector.broadcast %165 : vector<8x1xf32> to vector<8x256xf32>
    %167 = arith.subf %159, %166 : vector<8x256xf32>
    %168 = arith.mulf %167, %167 : vector<8x256xf32>
    %cst_61 = arith.constant dense<0.000000e+00> : vector<8xf32>
    %169 = vector.multi_reduction <add>, %168, %cst_61 [1] : vector<8x256xf32> to vector<8xf32>
    %170 = vector.shape_cast %169 : vector<8xf32> to vector<8x1xf32>
    %cst_62 = arith.constant 2.560000e+02 : f32
    %171 = vector.broadcast %cst_62 : f32 to vector<8x1xf32>
    %172 = arith.divf %170, %171 : vector<8x1xf32>
    %173 = vector.broadcast %165 : vector<8x1xf32> to vector<8x256xf32>
    %174 = arith.subf %159, %173 : vector<8x256xf32>
    %cst_63 = arith.constant 9.99999974E-6 : f32
    %175 = vector.broadcast %cst_63 : f32 to vector<8x1xf32>
    %176 = arith.addf %172, %175 : vector<8x1xf32>
    %177 = math.rsqrt %176 : vector<8x1xf32>
    %178 = vector.broadcast %177 : vector<8x1xf32> to vector<8x256xf32>
    %179 = arith.mulf %174, %178 : vector<8x256xf32>
    %180 = vector.broadcast %160 : vector<1x256xf32> to vector<8x256xf32>
    %181 = arith.mulf %179, %180 : vector<8x256xf32>
    %182 = vector.broadcast %161 : vector<1x256xf32> to vector<8x256xf32>
    %183 = arith.addf %181, %182 : vector<8x256xf32>
    %c0_64 = arith.constant 0 : index
    %c0_65 = arith.constant 0 : index
    %c0_66 = arith.constant 0 : index
    %184 = vector.load %arg13[%c0_64, %c0_65, %c0_66] : memref<1x8x256xf32, #tpu.memory_space<vmem>>, vector<1x8x256xf32>
    %185 = vector.shape_cast %184 : vector<1x8x256xf32> to vector<8x256xf32>
    %186 = vector.shape_cast %183 : vector<8x256xf32> to vector<1x8x256xf32>
    tpu.vector_store %arg13[%c0_64, %c0_65, %c0_66], %186 {strides = array<i32>} : memref<1x8x256xf32, #tpu.memory_space<vmem>>, vector<1x8x256xf32>,
    return
  }
  func.func @transform_0(%arg0: i32, %arg1: memref<2xi32, #tpu.memory_space<smem>>) -> (i32, i32, i32) {
    %c0_i32 = arith.constant 0 : i32
    %c0_i32_0 = arith.constant 0 : i32
    %c0_i32_1 = arith.constant 0 : i32
    return %arg0, %c0_i32, %c0_i32_0 : i32, i32, i32
  }
  func.func @transform_1(%arg0: i32, %arg1: memref<2xi32, #tpu.memory_space<smem>>) -> (i32, i32) {
    %c0_i32 = arith.constant 0 : i32
    %c0_i32_0 = arith.constant 0 : i32
    %c0_i32_1 = arith.constant 0 : i32
    return %c0_i32, %c0_i32_0 : i32, i32
  }
  func.func @transform_2(%arg0: i32, %arg1: memref<2xi32, #tpu.memory_space<smem>>) -> (i32, i32) {
    %c0_i32 = arith.constant 0 : i32
    %c0_i32_0 = arith.constant 0 : i32
    %c0_i32_1 = arith.constant 0 : i32
    return %c0_i32, %c0_i32_0 : i32, i32
  }
  func.func @transform_3(%arg0: i32, %arg1: memref<2xi32, #tpu.memory_space<smem>>) -> (i32, i32) {
    %c0_i32 = arith.constant 0 : i32
    %c0_i32_0 = arith.constant 0 : i32
    %c0_i32_1 = arith.constant 0 : i32
    return %c0_i32, %c0_i32_0 : i32, i32
  }
  func.func @transform_4(%arg0: i32, %arg1: memref<2xi32, #tpu.memory_space<smem>>) -> (i32, i32) {
    %c0_i32 = arith.constant 0 : i32
    %c0_i32_0 = arith.constant 0 : i32
    %c0_i32_1 = arith.constant 0 : i32
    return %c0_i32, %c0_i32_0 : i32, i32
  }
  func.func @transform_5(%arg0: i32, %arg1: memref<2xi32, #tpu.memory_space<smem>>) -> (i32, i32) {
    %c0_i32 = arith.constant 0 : i32
    %c0_i32_0 = arith.constant 0 : i32
    %c0_i32_1 = arith.constant 0 : i32
    return %c0_i32, %c0_i32_0 : i32, i32
  }
  func.func @transform_6(%arg0: i32, %arg1: memref<2xi32, #tpu.memory_space<smem>>) -> (i32, i32) {
    %c0_i32 = arith.constant 0 : i32
    %c0_i32_0 = arith.constant 0 : i32
    %c0_i32_1 = arith.constant 0 : i32
    return %c0_i32, %c0_i32_0 : i32, i32
  }
  func.func @transform_7(%arg0: i32, %arg1: memref<2xi32, #tpu.memory_space<smem>>) -> (i32, i32) {
    %c0_i32 = arith.constant 0 : i32
    %c0_i32_0 = arith.constant 0 : i32
    %c0_i32_1 = arith.constant 0 : i32
    return %c0_i32, %c0_i32_0 : i32, i32
  }
  func.func @transform_8(%arg0: i32, %arg1: memref<2xi32, #tpu.memory_space<smem>>) -> (i32, i32) {
    %c0_i32 = arith.constant 0 : i32
    %c0_i32_0 = arith.constant 0 : i32
    %c0_i32_1 = arith.constant 0 : i32
    return %c0_i32, %c0_i32_0 : i32, i32
  }
  func.func @transform_9(%arg0: i32, %arg1: memref<2xi32, #tpu.memory_space<smem>>) -> (i32, i32) {
    %c0_i32 = arith.constant 0 : i32
    %c0_i32_0 = arith.constant 0 : i32
    %c0_i32_1 = arith.constant 0 : i32
    return %c0_i32, %c0_i32_0 : i32, i32
  }
  func.func @transform_10(%arg0: i32, %arg1: memref<2xi32, #tpu.memory_space<smem>>) -> (i32, i32) {
    %c0_i32 = arith.constant 0 : i32
    %c0_i32_0 = arith.constant 0 : i32
    %c0_i32_1 = arith.constant 0 : i32
    return %c0_i32, %c0_i32_0 : i32, i32
  }
  func.func @transform_11(%arg0: i32, %arg1: memref<2xi32, #tpu.memory_space<smem>>) -> (i32, i32, i32) {
    %c0_i32 = arith.constant 0 : i32
    %c0_i32_0 = arith.constant 0 : i32
    %c0_i32_1 = arith.constant 0 : i32
    return %arg0, %c0_i32, %c0_i32_0 : i32, i32, i32
  }
}

module attributes {stable_mosaic.version = 11 : i64} {
  func.func @_encoder_block_kernel(%arg0: i32, %arg1: memref<2xi32, #tpu.memory_space<smem>>, %arg2: memref<1x8x256xf32, #tpu.memory_space<vmem>>, %arg3: memref<256x768xbf16, #tpu.memory_space<vmem>>, %arg4: memref<256x256xbf16, #tpu.memory_space<vmem>>, %arg5: memref<1x256xf32, #tpu.memory_space<vmem>>, %arg6: memref<1x256xf32, #tpu.memory_space<vmem>>, %arg7: memref<256x512xbf16, #tpu.memory_space<vmem>>, %arg8: memref<1x512xf32, #tpu.memory_space<vmem>>, %arg9: memref<512x256xbf16, #tpu.memory_space<vmem>>, %arg10: memref<1x256xf32, #tpu.memory_space<vmem>>, %arg11: memref<1x256xf32, #tpu.memory_space<vmem>>, %arg12: memref<1x256xf32, #tpu.memory_space<vmem>>, %arg13: memref<1x8x256xf32, #tpu.memory_space<vmem>>) attributes {dimension_semantics = [#tpu.dimension_semantics<parallel>], iteration_bounds = array<i64: 2>, scalar_prefetch = 1 : i64, scratch_operands = 0 : i64, tpu.core_type = #tpu.core_type<tc>, window_params = [{transform_indices = @transform_0, window_bounds = array<i64: 1, 8, 256>}, {pipeline_mode = #tpu.pipeline_mode<synchronous>, transform_indices = @transform_1, window_bounds = array<i64: 256, 768>}, {pipeline_mode = #tpu.pipeline_mode<synchronous>, transform_indices = @transform_2, window_bounds = array<i64: 256, 256>}, {pipeline_mode = #tpu.pipeline_mode<synchronous>, transform_indices = @transform_3, window_bounds = array<i64: 1, 256>}, {pipeline_mode = #tpu.pipeline_mode<synchronous>, transform_indices = @transform_4, window_bounds = array<i64: 1, 256>}, {pipeline_mode = #tpu.pipeline_mode<synchronous>, transform_indices = @transform_5, window_bounds = array<i64: 256, 512>}, {pipeline_mode = #tpu.pipeline_mode<synchronous>, transform_indices = @transform_6, window_bounds = array<i64: 1, 512>}, {pipeline_mode = #tpu.pipeline_mode<synchronous>, transform_indices = @transform_7, window_bounds = array<i64: 512, 256>}, {pipeline_mode = #tpu.pipeline_mode<synchronous>, transform_indices = @transform_8, window_bounds = array<i64: 1, 256>}, {pipeline_mode = #tpu.pipeline_mode<synchronous>, transform_indices = @transform_9, window_bounds = array<i64: 1, 256>}, {pipeline_mode = #tpu.pipeline_mode<synchronous>, transform_indices = @transform_10, window_bounds = array<i64: 1, 256>}, {transform_indices = @transform_11, window_bounds = array<i64: 1, 8, 256>}]} {
    %0 = arith.index_cast %arg0 : i32 to index
    %1 = memref.load %arg1[%0] : memref<2xi32, #tpu.memory_space<smem>>
    %c0 = arith.constant 0 : index
    %c0_0 = arith.constant 0 : index
    %c0_1 = arith.constant 0 : index
    %2 = vector.load %arg2[%c0, %c0_0, %c0_1] : memref<1x8x256xf32, #tpu.memory_space<vmem>>, vector<1x8x256xf32>
    %3 = vector.shape_cast %2 : vector<1x8x256xf32> to vector<8x256xf32>
    %4 = arith.truncf %3 : vector<8x256xf32> to vector<8x256xbf16>
    %c0_2 = arith.constant 0 : index
    %c0_3 = arith.constant 0 : index
    %5 = vector.load %arg3[%c0_2, %c0_3] : memref<256x768xbf16, #tpu.memory_space<vmem>>, vector<256x768xbf16>
    %cst = arith.constant dense<0.000000e+00> : vector<8x768xf32>
    %6 = tpu.matmul %4, %5, %cst {dimension_numbers = #tpu.dot_dimension_numbers<[1], [0], [0], [1], [0, 0, 1, 1], [], []>} : vector<8x256xbf16>, vector<256x768xbf16>, vector<8x768xf32> -> vector<8x768xf32>
    %c0_4 = arith.constant 0 : index
    %c0_5 = arith.constant 0 : index
    %7 = vector.load %arg4[%c0_4, %c0_5] : memref<256x256xbf16, #tpu.memory_space<vmem>>, vector<256x256xbf16>
    %8 = tpu.iota {dimensions = array<i32: 1>} : vector<8x8xi32>
    %9 = vector.broadcast %1 : i32 to vector<8x8xi32>
    %10 = arith.cmpi slt, %8, %9 : vector<8x8xi32>
    %cst_6 = arith.constant 0.000000e+00 : f32
    %11 = vector.broadcast %cst_6 : f32 to vector<8x256xf32>
    %12 = vector.extract_strided_slice %6 {offsets = [0, 0], sizes = [8, 64], strides = [1, 1]} : vector<8x768xf32> to vector<8x64xf32>
    %cst_7 = arith.constant 1.250000e-01 : f32
    %13 = vector.broadcast %cst_7 : f32 to vector<8x64xf32>
    %14 = arith.mulf %12, %13 : vector<8x64xf32>
    %15 = arith.truncf %14 : vector<8x64xf32> to vector<8x64xbf16>
    %16 = vector.extract_strided_slice %6 {offsets = [0, 256], sizes = [8, 64], strides = [1, 1]} : vector<8x768xf32> to vector<8x64xf32>
    %17 = arith.truncf %16 : vector<8x64xf32> to vector<8x64xbf16>
    %18 = vector.extract_strided_slice %6 {offsets = [0, 512], sizes = [8, 64], strides = [1, 1]} : vector<8x768xf32> to vector<8x64xf32>
    %19 = arith.truncf %18 : vector<8x64xf32> to vector<8x64xbf16>
    %cst_8 = arith.constant dense<0.000000e+00> : vector<8x8xf32>
    %20 = tpu.matmul %15, %17, %cst_8 {dimension_numbers = #tpu.dot_dimension_numbers<[1], [1], [0], [0], [0, 0, 1, 0], [], []>} : vector<8x64xbf16>, vector<8x64xbf16>, vector<8x8xf32> -> vector<8x8xf32>
    %cst_9 = arith.constant -1.000000e+06 : f32
    %21 = vector.broadcast %cst_9 : f32 to vector<8x8xf32>
    %22 = arith.select %10, %20, %21 : vector<8x8xi1>, vector<8x8xf32>
    %cst_10 = arith.constant dense<0xFF800000> : vector<8xf32>
    %23 = vector.multi_reduction <maximumf>, %22, %cst_10 [1] : vector<8x8xf32> to vector<8xf32>
    %24 = vector.shape_cast %23 : vector<8xf32> to vector<8x1xf32>
    %25 = vector.broadcast %24 : vector<8x1xf32> to vector<8x8xf32>
    %26 = arith.subf %22, %25 : vector<8x8xf32>
    %27 = math.exp %26 : vector<8x8xf32>
    %cst_11 = arith.constant dense<0.000000e+00> : vector<8xf32>
    %28 = vector.multi_reduction <add>, %27, %cst_11 [1] : vector<8x8xf32> to vector<8xf32>
    %29 = vector.shape_cast %28 : vector<8xf32> to vector<8x1xf32>
    %30 = tpu.reciprocal %29 {approx = true} : vector<8x1xf32> -> vector<8x1xf32>
    %31 = vector.broadcast %30 : vector<8x1xf32> to vector<8x8xf32>
    %32 = arith.mulf %27, %31 : vector<8x8xf32>
    %33 = arith.truncf %32 : vector<8x8xf32> to vector<8x8xbf16>
    %cst_12 = arith.constant dense<0.000000e+00> : vector<8x64xf32>
    %34 = tpu.matmul %33, %19, %cst_12 {dimension_numbers = #tpu.dot_dimension_numbers<[1], [0], [0], [1], [0, 0, 1, 1], [], []>} : vector<8x8xbf16>, vector<8x64xbf16>, vector<8x64xf32> -> vector<8x64xf32>
    %35 = arith.truncf %34 : vector<8x64xf32> to vector<8x64xbf16>
    %36 = vector.extract_strided_slice %7 {offsets = [0, 0], sizes = [64, 256], strides = [1, 1]} : vector<256x256xbf16> to vector<64x256xbf16>
    %cst_13 = arith.constant dense<0.000000e+00> : vector<8x256xf32>
    %37 = tpu.matmul %35, %36, %cst_13 {dimension_numbers = #tpu.dot_dimension_numbers<[1], [0], [0], [1], [0, 0, 1, 1], [], []>} : vector<8x64xbf16>, vector<64x256xbf16>, vector<8x256xf32> -> vector<8x256xf32>
    %38 = arith.addf %11, %37 : vector<8x256xf32>
    %39 = vector.extract_strided_slice %6 {offsets = [0, 64], sizes = [8, 64], strides = [1, 1]} : vector<8x768xf32> to vector<8x64xf32>
    %cst_14 = arith.constant 1.250000e-01 : f32
    %40 = vector.broadcast %cst_14 : f32 to vector<8x64xf32>
    %41 = arith.mulf %39, %40 : vector<8x64xf32>
    %42 = arith.truncf %41 : vector<8x64xf32> to vector<8x64xbf16>
    %43 = vector.extract_strided_slice %6 {offsets = [0, 320], sizes = [8, 64], strides = [1, 1]} : vector<8x768xf32> to vector<8x64xf32>
    %44 = arith.truncf %43 : vector<8x64xf32> to vector<8x64xbf16>
    %45 = vector.extract_strided_slice %6 {offsets = [0, 576], sizes = [8, 64], strides = [1, 1]} : vector<8x768xf32> to vector<8x64xf32>
    %46 = arith.truncf %45 : vector<8x64xf32> to vector<8x64xbf16>
    %cst_15 = arith.constant dense<0.000000e+00> : vector<8x8xf32>
    %47 = tpu.matmul %42, %44, %cst_15 {dimension_numbers = #tpu.dot_dimension_numbers<[1], [1], [0], [0], [0, 0, 1, 0], [], []>} : vector<8x64xbf16>, vector<8x64xbf16>, vector<8x8xf32> -> vector<8x8xf32>
    %cst_16 = arith.constant -1.000000e+06 : f32
    %48 = vector.broadcast %cst_16 : f32 to vector<8x8xf32>
    %49 = arith.select %10, %47, %48 : vector<8x8xi1>, vector<8x8xf32>
    %cst_17 = arith.constant dense<0xFF800000> : vector<8xf32>
    %50 = vector.multi_reduction <maximumf>, %49, %cst_17 [1] : vector<8x8xf32> to vector<8xf32>
    %51 = vector.shape_cast %50 : vector<8xf32> to vector<8x1xf32>
    %52 = vector.broadcast %51 : vector<8x1xf32> to vector<8x8xf32>
    %53 = arith.subf %49, %52 : vector<8x8xf32>
    %54 = math.exp %53 : vector<8x8xf32>
    %cst_18 = arith.constant dense<0.000000e+00> : vector<8xf32>
    %55 = vector.multi_reduction <add>, %54, %cst_18 [1] : vector<8x8xf32> to vector<8xf32>
    %56 = vector.shape_cast %55 : vector<8xf32> to vector<8x1xf32>
    %57 = tpu.reciprocal %56 {approx = true} : vector<8x1xf32> -> vector<8x1xf32>
    %58 = vector.broadcast %57 : vector<8x1xf32> to vector<8x8xf32>
    %59 = arith.mulf %54, %58 : vector<8x8xf32>
    %60 = arith.truncf %59 : vector<8x8xf32> to vector<8x8xbf16>
    %cst_19 = arith.constant dense<0.000000e+00> : vector<8x64xf32>
    %61 = tpu.matmul %60, %46, %cst_19 {dimension_numbers = #tpu.dot_dimension_numbers<[1], [0], [0], [1], [0, 0, 1, 1], [], []>} : vector<8x8xbf16>, vector<8x64xbf16>, vector<8x64xf32> -> vector<8x64xf32>
    %62 = arith.truncf %61 : vector<8x64xf32> to vector<8x64xbf16>
    %63 = vector.extract_strided_slice %7 {offsets = [64, 0], sizes = [64, 256], strides = [1, 1]} : vector<256x256xbf16> to vector<64x256xbf16>
    %cst_20 = arith.constant dense<0.000000e+00> : vector<8x256xf32>
    %64 = tpu.matmul %62, %63, %cst_20 {dimension_numbers = #tpu.dot_dimension_numbers<[1], [0], [0], [1], [0, 0, 1, 1], [], []>} : vector<8x64xbf16>, vector<64x256xbf16>, vector<8x256xf32> -> vector<8x256xf32>
    %65 = arith.addf %38, %64 : vector<8x256xf32>
    %66 = vector.extract_strided_slice %6 {offsets = [0, 128], sizes = [8, 64], strides = [1, 1]} : vector<8x768xf32> to vector<8x64xf32>
    %cst_21 = arith.constant 1.250000e-01 : f32
    %67 = vector.broadcast %cst_21 : f32 to vector<8x64xf32>
    %68 = arith.mulf %66, %67 : vector<8x64xf32>
    %69 = arith.truncf %68 : vector<8x64xf32> to vector<8x64xbf16>
    %70 = vector.extract_strided_slice %6 {offsets = [0, 384], sizes = [8, 64], strides = [1, 1]} : vector<8x768xf32> to vector<8x64xf32>
    %71 = arith.truncf %70 : vector<8x64xf32> to vector<8x64xbf16>
    %72 = vector.extract_strided_slice %6 {offsets = [0, 640], sizes = [8, 64], strides = [1, 1]} : vector<8x768xf32> to vector<8x64xf32>
    %73 = arith.truncf %72 : vector<8x64xf32> to vector<8x64xbf16>
    %cst_22 = arith.constant dense<0.000000e+00> : vector<8x8xf32>
    %74 = tpu.matmul %69, %71, %cst_22 {dimension_numbers = #tpu.dot_dimension_numbers<[1], [1], [0], [0], [0, 0, 1, 0], [], []>} : vector<8x64xbf16>, vector<8x64xbf16>, vector<8x8xf32> -> vector<8x8xf32>
    %cst_23 = arith.constant -1.000000e+06 : f32
    %75 = vector.broadcast %cst_23 : f32 to vector<8x8xf32>
    %76 = arith.select %10, %74, %75 : vector<8x8xi1>, vector<8x8xf32>
    %cst_24 = arith.constant dense<0xFF800000> : vector<8xf32>
    %77 = vector.multi_reduction <maximumf>, %76, %cst_24 [1] : vector<8x8xf32> to vector<8xf32>
    %78 = vector.shape_cast %77 : vector<8xf32> to vector<8x1xf32>
    %79 = vector.broadcast %78 : vector<8x1xf32> to vector<8x8xf32>
    %80 = arith.subf %76, %79 : vector<8x8xf32>
    %81 = math.exp %80 : vector<8x8xf32>
    %cst_25 = arith.constant dense<0.000000e+00> : vector<8xf32>
    %82 = vector.multi_reduction <add>, %81, %cst_25 [1] : vector<8x8xf32> to vector<8xf32>
    %83 = vector.shape_cast %82 : vector<8xf32> to vector<8x1xf32>
    %84 = tpu.reciprocal %83 {approx = true} : vector<8x1xf32> -> vector<8x1xf32>
    %85 = vector.broadcast %84 : vector<8x1xf32> to vector<8x8xf32>
    %86 = arith.mulf %81, %85 : vector<8x8xf32>
    %87 = arith.truncf %86 : vector<8x8xf32> to vector<8x8xbf16>
    %cst_26 = arith.constant dense<0.000000e+00> : vector<8x64xf32>
    %88 = tpu.matmul %87, %73, %cst_26 {dimension_numbers = #tpu.dot_dimension_numbers<[1], [0], [0], [1], [0, 0, 1, 1], [], []>} : vector<8x8xbf16>, vector<8x64xbf16>, vector<8x64xf32> -> vector<8x64xf32>
    %89 = arith.truncf %88 : vector<8x64xf32> to vector<8x64xbf16>
    %90 = vector.extract_strided_slice %7 {offsets = [128, 0], sizes = [64, 256], strides = [1, 1]} : vector<256x256xbf16> to vector<64x256xbf16>
    %cst_27 = arith.constant dense<0.000000e+00> : vector<8x256xf32>
    %91 = tpu.matmul %89, %90, %cst_27 {dimension_numbers = #tpu.dot_dimension_numbers<[1], [0], [0], [1], [0, 0, 1, 1], [], []>} : vector<8x64xbf16>, vector<64x256xbf16>, vector<8x256xf32> -> vector<8x256xf32>
    %92 = arith.addf %65, %91 : vector<8x256xf32>
    %93 = vector.extract_strided_slice %6 {offsets = [0, 192], sizes = [8, 64], strides = [1, 1]} : vector<8x768xf32> to vector<8x64xf32>
    %cst_28 = arith.constant 1.250000e-01 : f32
    %94 = vector.broadcast %cst_28 : f32 to vector<8x64xf32>
    %95 = arith.mulf %93, %94 : vector<8x64xf32>
    %96 = arith.truncf %95 : vector<8x64xf32> to vector<8x64xbf16>
    %97 = vector.extract_strided_slice %6 {offsets = [0, 448], sizes = [8, 64], strides = [1, 1]} : vector<8x768xf32> to vector<8x64xf32>
    %98 = arith.truncf %97 : vector<8x64xf32> to vector<8x64xbf16>
    %99 = vector.extract_strided_slice %6 {offsets = [0, 704], sizes = [8, 64], strides = [1, 1]} : vector<8x768xf32> to vector<8x64xf32>
    %100 = arith.truncf %99 : vector<8x64xf32> to vector<8x64xbf16>
    %cst_29 = arith.constant dense<0.000000e+00> : vector<8x8xf32>
    %101 = tpu.matmul %96, %98, %cst_29 {dimension_numbers = #tpu.dot_dimension_numbers<[1], [1], [0], [0], [0, 0, 1, 0], [], []>} : vector<8x64xbf16>, vector<8x64xbf16>, vector<8x8xf32> -> vector<8x8xf32>
    %cst_30 = arith.constant -1.000000e+06 : f32
    %102 = vector.broadcast %cst_30 : f32 to vector<8x8xf32>
    %103 = arith.select %10, %101, %102 : vector<8x8xi1>, vector<8x8xf32>
    %cst_31 = arith.constant dense<0xFF800000> : vector<8xf32>
    %104 = vector.multi_reduction <maximumf>, %103, %cst_31 [1] : vector<8x8xf32> to vector<8xf32>
    %105 = vector.shape_cast %104 : vector<8xf32> to vector<8x1xf32>
    %106 = vector.broadcast %105 : vector<8x1xf32> to vector<8x8xf32>
    %107 = arith.subf %103, %106 : vector<8x8xf32>
    %108 = math.exp %107 : vector<8x8xf32>
    %cst_32 = arith.constant dense<0.000000e+00> : vector<8xf32>
    %109 = vector.multi_reduction <add>, %108, %cst_32 [1] : vector<8x8xf32> to vector<8xf32>
    %110 = vector.shape_cast %109 : vector<8xf32> to vector<8x1xf32>
    %111 = tpu.reciprocal %110 {approx = true} : vector<8x1xf32> -> vector<8x1xf32>
    %112 = vector.broadcast %111 : vector<8x1xf32> to vector<8x8xf32>
    %113 = arith.mulf %108, %112 : vector<8x8xf32>
    %114 = arith.truncf %113 : vector<8x8xf32> to vector<8x8xbf16>
    %cst_33 = arith.constant dense<0.000000e+00> : vector<8x64xf32>
    %115 = tpu.matmul %114, %100, %cst_33 {dimension_numbers = #tpu.dot_dimension_numbers<[1], [0], [0], [1], [0, 0, 1, 1], [], []>} : vector<8x8xbf16>, vector<8x64xbf16>, vector<8x64xf32> -> vector<8x64xf32>
    %116 = arith.truncf %115 : vector<8x64xf32> to vector<8x64xbf16>
    %117 = vector.extract_strided_slice %7 {offsets = [192, 0], sizes = [64, 256], strides = [1, 1]} : vector<256x256xbf16> to vector<64x256xbf16>
    %cst_34 = arith.constant dense<0.000000e+00> : vector<8x256xf32>
    %118 = tpu.matmul %116, %117, %cst_34 {dimension_numbers = #tpu.dot_dimension_numbers<[1], [0], [0], [1], [0, 0, 1, 1], [], []>} : vector<8x64xbf16>, vector<64x256xbf16>, vector<8x256xf32> -> vector<8x256xf32>
    %119 = arith.addf %92, %118 : vector<8x256xf32>
    %120 = arith.addf %3, %119 : vector<8x256xf32>
    %c0_35 = arith.constant 0 : index
    %c0_36 = arith.constant 0 : index
    %121 = vector.load %arg5[%c0_35, %c0_36] : memref<1x256xf32, #tpu.memory_space<vmem>>, vector<1x256xf32>
    %c0_37 = arith.constant 0 : index
    %c0_38 = arith.constant 0 : index
    %122 = vector.load %arg6[%c0_37, %c0_38] : memref<1x256xf32, #tpu.memory_space<vmem>>, vector<1x256xf32>
    %cst_39 = arith.constant dense<0.000000e+00> : vector<8xf32>
    %123 = vector.multi_reduction <add>, %120, %cst_39 [1] : vector<8x256xf32> to vector<8xf32>
    %124 = vector.shape_cast %123 : vector<8xf32> to vector<8x1xf32>
    %cst_40 = arith.constant 2.560000e+02 : f32
    %125 = vector.broadcast %cst_40 : f32 to vector<8x1xf32>
    %126 = arith.divf %124, %125 : vector<8x1xf32>
    %127 = vector.broadcast %126 : vector<8x1xf32> to vector<8x256xf32>
    %128 = arith.subf %120, %127 : vector<8x256xf32>
    %129 = arith.mulf %128, %128 : vector<8x256xf32>
    %cst_41 = arith.constant dense<0.000000e+00> : vector<8xf32>
    %130 = vector.multi_reduction <add>, %129, %cst_41 [1] : vector<8x256xf32> to vector<8xf32>
    %131 = vector.shape_cast %130 : vector<8xf32> to vector<8x1xf32>
    %cst_42 = arith.constant 2.560000e+02 : f32
    %132 = vector.broadcast %cst_42 : f32 to vector<8x1xf32>
    %133 = arith.divf %131, %132 : vector<8x1xf32>
    %134 = vector.broadcast %126 : vector<8x1xf32> to vector<8x256xf32>
    %135 = arith.subf %120, %134 : vector<8x256xf32>
    %cst_43 = arith.constant 9.99999974E-6 : f32
    %136 = vector.broadcast %cst_43 : f32 to vector<8x1xf32>
    %137 = arith.addf %133, %136 : vector<8x1xf32>
    %138 = math.rsqrt %137 : vector<8x1xf32>
    %139 = vector.broadcast %138 : vector<8x1xf32> to vector<8x256xf32>
    %140 = arith.mulf %135, %139 : vector<8x256xf32>
    %141 = vector.broadcast %121 : vector<1x256xf32> to vector<8x256xf32>
    %142 = arith.mulf %140, %141 : vector<8x256xf32>
    %143 = vector.broadcast %122 : vector<1x256xf32> to vector<8x256xf32>
    %144 = arith.addf %142, %143 : vector<8x256xf32>
    %145 = arith.truncf %144 : vector<8x256xf32> to vector<8x256xbf16>
    %c0_44 = arith.constant 0 : index
    %c0_45 = arith.constant 0 : index
    %146 = vector.load %arg7[%c0_44, %c0_45] : memref<256x512xbf16, #tpu.memory_space<vmem>>, vector<256x512xbf16>
    %cst_46 = arith.constant dense<0.000000e+00> : vector<8x512xf32>
    %147 = tpu.matmul %145, %146, %cst_46 {dimension_numbers = #tpu.dot_dimension_numbers<[1], [0], [0], [1], [0, 0, 1, 1], [], []>} : vector<8x256xbf16>, vector<256x512xbf16>, vector<8x512xf32> -> vector<8x512xf32>
    %c0_47 = arith.constant 0 : index
    %c0_48 = arith.constant 0 : index
    %148 = vector.load %arg8[%c0_47, %c0_48] : memref<1x512xf32, #tpu.memory_space<vmem>>, vector<1x512xf32>
    %149 = vector.broadcast %148 : vector<1x512xf32> to vector<8x512xf32>
    %150 = arith.addf %147, %149 : vector<8x512xf32>
    %cst_49 = arith.constant 0.000000e+00 : f32
    %151 = vector.broadcast %cst_49 : f32 to vector<8x512xf32>
    %152 = arith.maximumf %150, %151 : vector<8x512xf32>
    %153 = arith.truncf %152 : vector<8x512xf32> to vector<8x512xbf16>
    %c0_50 = arith.constant 0 : index
    %c0_51 = arith.constant 0 : index
    %154 = vector.load %arg9[%c0_50, %c0_51] : memref<512x256xbf16, #tpu.memory_space<vmem>>, vector<512x256xbf16>
    %cst_52 = arith.constant dense<0.000000e+00> : vector<8x256xf32>
    %155 = tpu.matmul %153, %154, %cst_52 {dimension_numbers = #tpu.dot_dimension_numbers<[1], [0], [0], [1], [0, 0, 1, 1], [], []>} : vector<8x512xbf16>, vector<512x256xbf16>, vector<8x256xf32> -> vector<8x256xf32>
    %c0_53 = arith.constant 0 : index
    %c0_54 = arith.constant 0 : index
    %156 = vector.load %arg10[%c0_53, %c0_54] : memref<1x256xf32, #tpu.memory_space<vmem>>, vector<1x256xf32>
    %157 = vector.broadcast %156 : vector<1x256xf32> to vector<8x256xf32>
    %158 = arith.addf %155, %157 : vector<8x256xf32>
    %159 = arith.addf %144, %158 : vector<8x256xf32>
    %c0_55 = arith.constant 0 : index
    %c0_56 = arith.constant 0 : index
    %160 = vector.load %arg11[%c0_55, %c0_56] : memref<1x256xf32, #tpu.memory_space<vmem>>, vector<1x256xf32>
    %c0_57 = arith.constant 0 : index
    %c0_58 = arith.constant 0 : index
    %161 = vector.load %arg12[%c0_57, %c0_58] : memref<1x256xf32, #tpu.memory_space<vmem>>, vector<1x256xf32>
    %cst_59 = arith.constant dense<0.000000e+00> : vector<8xf32>
    %162 = vector.multi_reduction <add>, %159, %cst_59 [1] : vector<8x256xf32> to vector<8xf32>
    %163 = vector.shape_cast %162 : vector<8xf32> to vector<8x1xf32>
    %cst_60 = arith.constant 2.560000e+02 : f32
    %164 = vector.broadcast %cst_60 : f32 to vector<8x1xf32>
    %165 = arith.divf %163, %164 : vector<8x1xf32>
    %166 = vector.broadcast %165 : vector<8x1xf32> to vector<8x256xf32>
    %167 = arith.subf %159, %166 : vector<8x256xf32>
    %168 = arith.mulf %167, %167 : vector<8x256xf32>
    %cst_61 = arith.constant dense<0.000000e+00> : vector<8xf32>
    %169 = vector.multi_reduction <add>, %168, %cst_61 [1] : vector<8x256xf32> to vector<8xf32>
    %170 = vector.shape_cast %169 : vector<8xf32> to vector<8x1xf32>
    %cst_62 = arith.constant 2.560000e+02 : f32
    %171 = vector.broadcast %cst_62 : f32 to vector<8x1xf32>
    %172 = arith.divf %170, %171 : vector<8x1xf32>
    %173 = vector.broadcast %165 : vector<8x1xf32> to vector<8x256xf32>
    %174 = arith.subf %159, %173 : vector<8x256xf32>
    %cst_63 = arith.constant 9.99999974E-6 : f32
    %175 = vector.broadcast %cst_63 : f32 to vector<8x1xf32>
    %176 = arith.addf %172, %175 : vector<8x1xf32>
    %177 = math.rsqrt %176 : vector<8x1xf32>
    %178 = vector.broadcast %177 : vector<8x1xf32> to vector<8x256xf32>
    %179 = arith.mulf %174, %178 : vector<8x256xf32>
    %180 = vector.broadcast %160 : vector<1x256xf32> to vector<8x256xf32>
    %181 = arith.mulf %179, %180 : vector<8x256xf32>
    %182 = vector.broadcast %161 : vector<1x256xf32> to vector<8x256xf32>
    %183 = arith.addf %181, %182 : vector<8x256xf32>
    %c0_64 = arith.constant 0 : index
    %c0_65 = arith.constant 0 : index
    %c0_66 = arith.constant 0 : index
    %184 = vector.load %arg13[%c0_64, %c0_65, %c0_66] : memref<1x8x256xf32, #tpu.memory_space<vmem>>, vector<1x8x256xf32>
    %185 = vector.shape_cast %184 : vector<1x8x256xf32> to vector<8x256xf32>
    %186 = vector.shape_cast %183 : vector<8x256xf32> to vector<1x8x256xf32>
    tpu.vector_store %arg13[%c0_64, %c0_65, %c0_66], %186 {strides = array<i32>} : memref<1x8x256xf32, #tpu.memory_space<vmem>>, vector<1x8x256xf32>,
    return
  }
  func.func @transform_0(%arg0: i32, %arg1: memref<2xi32, #tpu.memory_space<smem>>) -> (i32, i32, i32) {
    %c0_i32 = arith.constant 0 : i32
    %c0_i32_0 = arith.constant 0 : i32
    %c0_i32_1 = arith.constant 0 : i32
    return %arg0, %c0_i32, %c0_i32_0 : i32, i32, i32
  }
  func.func @transform_1(%arg0: i32, %arg1: memref<2xi32, #tpu.memory_space<smem>>) -> (i32, i32) {
    %c0_i32 = arith.constant 0 : i32
    %c0_i32_0 = arith.constant 0 : i32
    %c0_i32_1 = arith.constant 0 : i32
    return %c0_i32, %c0_i32_0 : i32, i32
  }
  func.func @transform_2(%arg0: i32, %arg1: memref<2xi32, #tpu.memory_space<smem>>) -> (i32, i32) {
    %c0_i32 = arith.constant 0 : i32
    %c0_i32_0 = arith.constant 0 : i32
    %c0_i32_1 = arith.constant 0 : i32
    return %c0_i32, %c0_i32_0 : i32, i32
  }
  func.func @transform_3(%arg0: i32, %arg1: memref<2xi32, #tpu.memory_space<smem>>) -> (i32, i32) {
    %c0_i32 = arith.constant 0 : i32
    %c0_i32_0 = arith.constant 0 : i32
    %c0_i32_1 = arith.constant 0 : i32
    return %c0_i32, %c0_i32_0 : i32, i32
  }
  func.func @transform_4(%arg0: i32, %arg1: memref<2xi32, #tpu.memory_space<smem>>) -> (i32, i32) {
    %c0_i32 = arith.constant 0 : i32
    %c0_i32_0 = arith.constant 0 : i32
    %c0_i32_1 = arith.constant 0 : i32
    return %c0_i32, %c0_i32_0 : i32, i32
  }
  func.func @transform_5(%arg0: i32, %arg1: memref<2xi32, #tpu.memory_space<smem>>) -> (i32, i32) {
    %c0_i32 = arith.constant 0 : i32
    %c0_i32_0 = arith.constant 0 : i32
    %c0_i32_1 = arith.constant 0 : i32
    return %c0_i32, %c0_i32_0 : i32, i32
  }
  func.func @transform_6(%arg0: i32, %arg1: memref<2xi32, #tpu.memory_space<smem>>) -> (i32, i32) {
    %c0_i32 = arith.constant 0 : i32
    %c0_i32_0 = arith.constant 0 : i32
    %c0_i32_1 = arith.constant 0 : i32
    return %c0_i32, %c0_i32_0 : i32, i32
  }
  func.func @transform_7(%arg0: i32, %arg1: memref<2xi32, #tpu.memory_space<smem>>) -> (i32, i32) {
    %c0_i32 = arith.constant 0 : i32
    %c0_i32_0 = arith.constant 0 : i32
    %c0_i32_1 = arith.constant 0 : i32
    return %c0_i32, %c0_i32_0 : i32, i32
  }
  func.func @transform_8(%arg0: i32, %arg1: memref<2xi32, #tpu.memory_space<smem>>) -> (i32, i32) {
    %c0_i32 = arith.constant 0 : i32
    %c0_i32_0 = arith.constant 0 : i32
    %c0_i32_1 = arith.constant 0 : i32
    return %c0_i32, %c0_i32_0 : i32, i32
  }
  func.func @transform_9(%arg0: i32, %arg1: memref<2xi32, #tpu.memory_space<smem>>) -> (i32, i32) {
    %c0_i32 = arith.constant 0 : i32
    %c0_i32_0 = arith.constant 0 : i32
    %c0_i32_1 = arith.constant 0 : i32
    return %c0_i32, %c0_i32_0 : i32, i32
  }
  func.func @transform_10(%arg0: i32, %arg1: memref<2xi32, #tpu.memory_space<smem>>) -> (i32, i32) {
    %c0_i32 = arith.constant 0 : i32
    %c0_i32_0 = arith.constant 0 : i32
    %c0_i32_1 = arith.constant 0 : i32
    return %c0_i32, %c0_i32_0 : i32, i32
  }
  func.func @transform_11(%arg0: i32, %arg1: memref<2xi32, #tpu.memory_space<smem>>) -> (i32, i32, i32) {
    %c0_i32 = arith.constant 0 : i32
    %c0_i32_0 = arith.constant 0 : i32
    %c0_i32_1 = arith.constant 0 : i32
    return %arg0, %c0_i32, %c0_i32_0 : i32, i32, i32
  }
}

module attributes {stable_mosaic.version = 11 : i64} {
  func.func @_classifier_kernel(%arg0: i32, %arg1: memref<2x256xf32, #tpu.memory_space<vmem>>, %arg2: memref<256x256xbf16, #tpu.memory_space<vmem>>, %arg3: memref<1x256xf32, #tpu.memory_space<vmem>>, %arg4: memref<256x128xbf16, #tpu.memory_space<vmem>>, %arg5: memref<1x128xf32, #tpu.memory_space<vmem>>, %arg6: memref<2x128xf32, #tpu.memory_space<vmem>>) attributes {dimension_semantics = [#tpu.dimension_semantics<arbitrary>], iteration_bounds = array<i64: 1>, scalar_prefetch = 0 : i64, scratch_operands = 0 : i64, tpu.core_type = #tpu.core_type<tc>, window_params = [{pipeline_mode = #tpu.pipeline_mode<synchronous>, transform_indices = @transform_0, window_bounds = array<i64: 2, 256>}, {pipeline_mode = #tpu.pipeline_mode<synchronous>, transform_indices = @transform_1, window_bounds = array<i64: 256, 256>}, {pipeline_mode = #tpu.pipeline_mode<synchronous>, transform_indices = @transform_2, window_bounds = array<i64: 1, 256>}, {pipeline_mode = #tpu.pipeline_mode<synchronous>, transform_indices = @transform_3, window_bounds = array<i64: 256, 128>}, {pipeline_mode = #tpu.pipeline_mode<synchronous>, transform_indices = @transform_4, window_bounds = array<i64: 1, 128>}, {pipeline_mode = #tpu.pipeline_mode<synchronous>, transform_indices = @transform_5, window_bounds = array<i64: 2, 128>}]} {
    %c0 = arith.constant 0 : index
    %c0_0 = arith.constant 0 : index
    %0 = vector.load %arg1[%c0, %c0_0] : memref<2x256xf32, #tpu.memory_space<vmem>>, vector<2x256xf32>
    %1 = arith.truncf %0 : vector<2x256xf32> to vector<2x256xbf16>
    %c0_1 = arith.constant 0 : index
    %c0_2 = arith.constant 0 : index
    %2 = vector.load %arg2[%c0_1, %c0_2] : memref<256x256xbf16, #tpu.memory_space<vmem>>, vector<256x256xbf16>
    %cst = arith.constant dense<0.000000e+00> : vector<2x256xf32>
    %3 = tpu.matmul %1, %2, %cst {dimension_numbers = #tpu.dot_dimension_numbers<[1], [0], [0], [1], [0, 0, 1, 1], [], []>} : vector<2x256xbf16>, vector<256x256xbf16>, vector<2x256xf32> -> vector<2x256xf32>
    %c0_3 = arith.constant 0 : index
    %c0_4 = arith.constant 0 : index
    %4 = vector.load %arg3[%c0_3, %c0_4] : memref<1x256xf32, #tpu.memory_space<vmem>>, vector<1x256xf32>
    %5 = vector.broadcast %4 : vector<1x256xf32> to vector<2x256xf32>
    %6 = arith.addf %3, %5 : vector<2x256xf32>
    %7 = math.tanh %6 : vector<2x256xf32>
    %8 = arith.truncf %7 : vector<2x256xf32> to vector<2x256xbf16>
    %c0_5 = arith.constant 0 : index
    %c0_6 = arith.constant 0 : index
    %9 = vector.load %arg4[%c0_5, %c0_6] : memref<256x128xbf16, #tpu.memory_space<vmem>>, vector<256x128xbf16>
    %cst_7 = arith.constant dense<0.000000e+00> : vector<2x128xf32>
    %10 = tpu.matmul %8, %9, %cst_7 {dimension_numbers = #tpu.dot_dimension_numbers<[1], [0], [0], [1], [0, 0, 1, 1], [], []>} : vector<2x256xbf16>, vector<256x128xbf16>, vector<2x128xf32> -> vector<2x128xf32>
    %c0_8 = arith.constant 0 : index
    %c0_9 = arith.constant 0 : index
    %11 = vector.load %arg5[%c0_8, %c0_9] : memref<1x128xf32, #tpu.memory_space<vmem>>, vector<1x128xf32>
    %12 = vector.broadcast %11 : vector<1x128xf32> to vector<2x128xf32>
    %13 = arith.addf %10, %12 : vector<2x128xf32>
    %c0_10 = arith.constant 0 : index
    %c0_11 = arith.constant 0 : index
    %14 = vector.load %arg6[%c0_10, %c0_11] : memref<2x128xf32, #tpu.memory_space<vmem>>, vector<2x128xf32>
    tpu.vector_store %arg6[%c0_10, %c0_11], %13 {strides = array<i32>} : memref<2x128xf32, #tpu.memory_space<vmem>>, vector<2x128xf32>,
    return
  }
  func.func @transform_0(%arg0: i32) -> (i32, i32) {
    %c0_i32 = arith.constant 0 : i32
    %c0_i32_0 = arith.constant 0 : i32
    %c0_i32_1 = arith.constant 0 : i32
    return %c0_i32, %c0_i32_0 : i32, i32
  }
  func.func @transform_1(%arg0: i32) -> (i32, i32) {
    %c0_i32 = arith.constant 0 : i32
    %c0_i32_0 = arith.constant 0 : i32
    %c0_i32_1 = arith.constant 0 : i32
    return %c0_i32, %c0_i32_0 : i32, i32
  }
  func.func @transform_2(%arg0: i32) -> (i32, i32) {
    %c0_i32 = arith.constant 0 : i32
    %c0_i32_0 = arith.constant 0 : i32
    %c0_i32_1 = arith.constant 0 : i32
    return %c0_i32, %c0_i32_0 : i32, i32
  }
  func.func @transform_3(%arg0: i32) -> (i32, i32) {
    %c0_i32 = arith.constant 0 : i32
    %c0_i32_0 = arith.constant 0 : i32
    %c0_i32_1 = arith.constant 0 : i32
    return %c0_i32, %c0_i32_0 : i32, i32
  }
  func.func @transform_4(%arg0: i32) -> (i32, i32) {
    %c0_i32 = arith.constant 0 : i32
    %c0_i32_0 = arith.constant 0 : i32
    %c0_i32_1 = arith.constant 0 : i32
    return %c0_i32, %c0_i32_0 : i32, i32
  }
  func.func @transform_5(%arg0: i32) -> (i32, i32) {
    %c0_i32 = arith.constant 0 : i32
    %c0_i32_0 = arith.constant 0 : i32
    %c0_i32_1 = arith.constant 0 : i32
    return %c0_i32, %c0_i32_0 : i32, i32
  }
}

</mosaic_0001>

<bundles_post_ra>
// kernel: bert_classifier_forward.5
= control target key start
LH: loop header
LB: loop body
LE: loop exit
PB: predicated region body
PF: predicated region fallthrough
CT: control target
= control target key end

     0   :  { %s825_s0 = inlined_call_operand.vmem [shape: f32[2,256], index: 0, kind: input, shape index: {}]   ;;  %s826_s1 = inlined_call_operand.vmem [shape: bf16[256,256], index: 1, kind: input, shape index: {}]   ;;  %s827_s2 = inlined_call_operand.vmem [shape: f32[1,256], index: 2, kind: input, shape index: {}]   ;;  %s828_s3 = inlined_call_operand.vmem [shape: bf16[256,128], index: 3, kind: input, shape index: {}]   ;;  %s829_s4 = inlined_call_operand.vmem [shape: f32[1,128], index: 4, kind: input, shape index: {}]   ;;  %s830_s5 = inlined_call_operand.hbm [shape: f32[2,128], index: 5, kind: output, shape index: {}]  }
   0x1   :  { %v548_v0 = vld [vmem:[%s826_s1 + $0x74] ss:$8 sps:$4 sm:$0xff]   ;;  %v550_v1 = vld [vmem:[%s826_s1 + $0x70] ss:$8 sps:$4 sm:$0xff]   ;;  %v551_v2 = vld [vmem:[%s826_s1 + $0x64] ss:$8 sps:$4 sm:$0xff]  }
   0x2   :  { %240 = vmatprep.subr.bf16.mxu0 %v548_v0  ;;  %v553_v3 = vld [vmem:[%s826_s1 + $0x60] ss:$8 sps:$4 sm:$0xff]   ;;  %v554_v4 = vld [vmem:[%s826_s1 + $0x54] ss:$8 sps:$4 sm:$0xff]   ;;  %v556_v5 = vld [vmem:[%s826_s1 + $0x50] ss:$8 sps:$4 sm:$0xff]  }
   0x3   :  { %241 = vmatpush1.bf16.msra.mxu0 %v550_v1  ;;  %v557_v6 = vld [vmem:[%s826_s1 + $0x44] ss:$8 sps:$4 sm:$0xff]   ;;  %v559_v7 = vld [vmem:[%s826_s1 + $0x40] ss:$8 sps:$4 sm:$0xff]   ;;  %v560_v8 = vld [vmem:[%s826_s1 + $0x34] ss:$8 sps:$4 sm:$0xff]  }
   0x4   :  { %242 = vmatprep.subr.bf16.mxu0 %v551_v2  ;;  %v562_v9 = vld [vmem:[%s826_s1 + $0x30] ss:$8 sps:$4 sm:$0xff]   ;;  %v563_v10 = vld [vmem:[%s826_s1 + $0x24] ss:$8 sps:$4 sm:$0xff]   ;;  %v565_v11 = vld [vmem:[%s826_s1 + $0x20] ss:$8 sps:$4 sm:$0xff]  }
   0x5   :  { %v566_v12 = vld [vmem:[%s826_s1 + $0x14] ss:$8 sps:$4 sm:$0xff]   ;;  %v568_v13 = vld [vmem:[%s826_s1 + $0x10] ss:$8 sps:$4 sm:$0xff]   ;;  %v569_v15 = vld [vmem:[%s826_s1 + $0x4] ss:$8 sps:$4 sm:$0xff]  }
   0x6   :  { %v475_v14 = vld.sshfl [vmem:[%s825_s0] sm:$0x33 pattern:$0x76325410]  ;;  %v596_v17 = vld [vmem:[%s828_s3 + $0x78] sm:$0xff]   ;;  %v598_v20 = vld [vmem:[%s828_s3 + $0x70] sm:$0xff]  }
   0x7   :  { %243 = vmatpush1.bf16.msra.mxu0 %v553_v3  ;;  %v31_v16 = vcombine.high %v475_v14, %v475_v14  ;;  %v597_v18 = vld [vmem:[%s828_s3 + $0x38] sm:$0xff]   ;;  %525 = vmatprep.subr.bf16.mxu1 %v596_v17  ;;  %v571_v21 = vld [vmem:[%s826_s1] ss:$8 sps:$4 sm:$0xff]   ;;  %v599_v22 = vld [vmem:[%s828_s3 + $0x30] sm:$0xff]  }
   0x8   :  { %244 = vmatprep.subr.bf16.mxu0 %v554_v4  ;;  %526 = vmatpush3.bf16.msra.mxu1 %v597_v18  ;;  %v600_v23 = vld [vmem:[%s828_s3 + $0x68] sm:$0xff]   ;;  %v572_v24 = vld [vmem:[%s826_s1 + $0xf4] ss:$8 sps:$4 sm:$0xff]   ;;  %v574_v26 = vld [vmem:[%s826_s1 + $0xf0] ss:$8 sps:$4 sm:$0xff]  }
   0x9   :  { %v35_v19 = vpack.c.bf16 %v31_v16, %v31_v16  ;;  %527 = vmatprep.subr.bf16.mxu1 %v598_v20  ;;  %v601_v25 = vld [vmem:[%s828_s3 + $0x28] sm:$0xff]  }
   0xa   :  { %v575_v27 = vld [vmem:[%s826_s1 + $0xe4] ss:$8 sps:$4 sm:$0xff]   ;;  %v577_v28 = vld [vmem:[%s826_s1 + $0xe0] ss:$8 sps:$4 sm:$0xff]  }
   0xb   :  { %245 = vmatpush1.bf16.msra.mxu0 %v556_v5  ;;  %272 = vmatprep.mubr.bf16.mxu0 %v35_v19 }
   0xc   :  { %246 = vmatprep.subr.bf16.mxu0 %v557_v6  ;;  %528 = vmatpush3.bf16.msra.mxu1 %v599_v22 }
   0xd   :  { %529 = vmatprep.subr.bf16.mxu1 %v600_v23 }
   0xf   :  { %247 = vmatpush1.bf16.msra.mxu0 %v559_v7 }
  0x10   :  { %248 = vmatprep.subr.bf16.mxu0 %v560_v8  ;;  %530 = vmatpush3.bf16.msra.mxu1 %v601_v25 }
  0x13   :  { %249 = vmatpush1.bf16.msra.mxu0 %v562_v9 }
  0x14   :  { %250 = vmatprep.subr.bf16.mxu0 %v563_v10 }
  0x17   :  { %251 = vmatpush1.bf16.msra.mxu0 %v565_v11 }
  0x18   :  { %252 = vmatprep.subr.bf16.mxu0 %v566_v12 }
  0x1b   :  { %253 = vmatpush1.bf16.msra.mxu0 %v568_v13 }
  0x1c   :  { %254 = vmatprep.subr.bf16.mxu0 %v569_v15 }
  0x1f   :  { %255 = vmatpush1.bf16.msra.mxu0 %v571_v21 }
  0x20   :  { %256 = vmatprep.subr.bf16.mxu0 %v572_v24 }
  0x23   :  { %257 = vmatpush2.bf16.msra.mxu0 %v574_v26 }
  0x24   :  { %10 = vsyncpa [#allocation3], 0  ;;  %258 = vmatprep.subr.bf16.mxu0 %v575_v27  ;;  %v578_v29 = vld [vmem:[%s826_s1 + $0xd4] ss:$8 sps:$4 sm:$0xff]   ;;  %v580_v30 = vld [vmem:[%s826_s1 + $0xd0] ss:$8 sps:$4 sm:$0xff]   ;;  %v34_v41 = vpack.c.bf16 %v475_v14, %v475_v14  ;;  %v70_v52 = vlaneseq }
  0x25   :  { %v581_v31 = vld [vmem:[%s826_s1 + $0xc4] ss:$8 sps:$4 sm:$0xff]   ;;  %v583_v32 = vld [vmem:[%s826_s1 + $0xc0] ss:$8 sps:$4 sm:$0xff]   ;;  %v584_v33 = vld [vmem:[%s826_s1 + $0xb4] ss:$8 sps:$4 sm:$0xff]  }
  0x26   :  { %v586_v34 = vld [vmem:[%s826_s1 + $0xb0] ss:$8 sps:$4 sm:$0xff]   ;;  %v587_v35 = vld [vmem:[%s826_s1 + $0xa4] ss:$8 sps:$4 sm:$0xff]   ;;  %v589_v36 = vld [vmem:[%s826_s1 + $0xa0] ss:$8 sps:$4 sm:$0xff]  }
  0x27   :  { %259 = vmatpush2.bf16.msra.mxu0 %v577_v28  ;;  %v590_v37 = vld [vmem:[%s826_s1 + $0x94] ss:$8 sps:$4 sm:$0xff]   ;;  %v592_v38 = vld [vmem:[%s826_s1 + $0x90] ss:$8 sps:$4 sm:$0xff]   ;;  %v593_v39 = vld [vmem:[%s826_s1 + $0x84] ss:$8 sps:$4 sm:$0xff]  }
  0x28   :  { %260 = vmatprep.subr.bf16.mxu0 %v578_v29  ;;  %v595_v40 = vld [vmem:[%s826_s1 + $0x80] ss:$8 sps:$4 sm:$0xff]   ;;  %v604_v44 = vld [vmem:[%s828_s3 + $0x58] sm:$0xff]   ;;  %v606_v46 = vld [vmem:[%s828_s3 + $0x50] sm:$0xff]   ;;  %v71_v53 = vshrl.u32 %v70_v52, 7  ;;  %s638_s14 = smov [#allocation2]  }
  0x29   :  { %v602_v42 = vld [vmem:[%s828_s3 + $0x60] sm:$0xff]   ;;  %v605_v45 = vld [vmem:[%s828_s3 + $0x18] sm:$0xff]   ;;  %v607_v47 = vld [vmem:[%s828_s3 + $0x10] sm:$0xff]   ;;  %s467_s15 = sshll.u32 %s638_s14, 4  ;;  %s468_s15 = int_to_ptr.vmem [resolvable:$true] %s467_s15 }
  0x2a   :  { %v603_v43 = vld [vmem:[%s828_s3 + $0x20] sm:$0xff]   ;;  %531 = vmatprep.subr.bf16.mxu1 %v602_v42  ;;  %v608_v48 = vld [vmem:[%s828_s3 + $0x48] sm:$0xff]   ;;  %v72_v54 = vsub.s32 0, %v71_v53  ;;  %v76_v56 = vsub.s32 1, %v71_v53  ;;  %s616_s16 = scalar_lea.vmem %s468_s15, 32  ;;  %p621_p1 = scmp.lt.s32.totalorder %s468_s15, %s468_s15 }
  0x2b   :  { %261 = vmatpush2.bf16.msra.mxu0 %v580_v30  ;;  %532 = vmatpush3.bf16.msra.mxu1 %v603_v43  ;;  %v609_v49 = vld [vmem:[%s828_s3 + $0x8] sm:$0xff]   ;;  %v610_v50 = vld [vmem:[%s828_s3 + $0x40] sm:$0xff]   ;;  %p617_p0 = scmp.ne.s32.totalorder %s468_s15, %s616_s16  ;;  %p622_p2 = scmp.lt.s32.totalorder %s616_s16, %s616_s16 }
  0x2c   :  { %262 = vmatprep.subr.bf16.mxu0 %v581_v31  ;;  %533 = vmatprep.subr.bf16.mxu1 %v604_v44  ;;  %v611_v51 = vld [vmem:[%s828_s3] sm:$0xff]  }
  0x2d   :  { %v68_v55 = vld [vmem:[%s827_s2] sm:$0x3]  ;;  %p623_p3 = por %p622_p2, %p621_p1 }
  0x2e   :  { %v73_v57 = vrot.slane %v68_v55, %v72_v54  ;;  %v77_v58 = vrot.slane %v68_v55, %v76_v56  ;;  %v508_v7 = vld [vmem:[%s829_s4] ss:$0 sm:$0xff] }
  0x2f   :  { %263 = vmatpush2.bf16.msra.mxu0 %v583_v32  ;;  %534 = vmatpush3.bf16.msra.mxu1 %v605_v45  ;;  %p624_p4 = pnand %p623_p3, %p617_p0 }
  0x30   :  { %264 = vmatprep.subr.bf16.mxu0 %v584_v33  ;;  %535 = vmatprep.subr.bf16.mxu1 %v606_v46 }
  0x33   :  { %265 = vmatpush2.bf16.msra.mxu0 %v586_v34  ;;  %536 = vmatpush3.bf16.msra.mxu1 %v607_v47 }
  0x34   :  { %266 = vmatprep.subr.bf16.mxu0 %v587_v35  ;;  %537 = vmatprep.subr.bf16.mxu1 %v608_v48 }
  0x37   :  { %267 = vmatpush2.bf16.msra.mxu0 %v589_v36  ;;  %538 = vmatpush3.bf16.msra.mxu1 %v609_v49 }
  0x38   :  { %268 = vmatprep.subr.bf16.mxu0 %v590_v37  ;;  %539 = vmatprep.subr.bf16.mxu1 %v610_v50 }
  0x3b   :  { %269 = vmatpush2.bf16.msra.mxu0 %v592_v38  ;;  %540 = vmatpush3.bf16.msra.mxu1 %v611_v51 }
  0x3c   :  { %270 = vmatprep.subr.bf16.mxu0 %v593_v39 }
  0x3f   :  { %271 = vmatpush2.bf16.msra.mxu0 %v595_v40 }
  0x42   :  { %273 = vmatmul.mubr.bf16.vlgmr.msra.gmra.mxu0 %v34_v41 }
 0x102   :  { %v274_v59 = vpop.f32.mrf.mxu0 }
 0x103   :  { %v275_v60 = vadd.f32 %v274_v59, %v73_v57 }
 0x104   :  { %v276_v61 = vpop.f32.mrf.mxu0 }
 0x105   :  { %v277_v62 = vadd.f32 %v276_v61, %v77_v58  ;;  %612 = vtanh.f32 %v275_v60 }
 0x106   :  { %v278_v63 = vpop.f32.mrf.mxu0 }
 0x107   :  { %614 = vtanh.f32 %v277_v62 }
 0x108   :  { %v279_v0 = vpop.f32.mrf.mxu0 }
 0x112   :  { %v613_v1 = vpop.eup %612 }
 0x113   :  { %v283_v4 = vpack.c.bf16 %v613_v1, %v613_v1 }
 0x114   :  { %v615_v2 = vpop.eup %614 }
 0x115   :  { %v284_v3 = vpack.c.bf16 %v615_v2, %v615_v2 }
 0x117   :  { %452 = vmatprep.mubr.bf16.mxu1 %v284_v3 }
 0x118   :  { %453 = vmatmul.mubr.bf16.vlgmr.msra.gmra.mxu1 %v283_v4 }
 0x1d8   :  { %v541_v5 = vpop.f32.mrf.mxu1 }
 0x1da   :  { %v542_v6 = vpop.f32.mrf.mxu1 }
 0x1db   :  { %v543_v8 = vadd.f32 %v542_v6, %v541_v5 }
 0x1dc   :  { %v544_v9 = vpop.f32.mrf.mxu1 }
 0x1dd   :  { %v455_v10 = vadd.f32 %v543_v8, %v508_v7 }
 0x1de   :  { %v545_v11 = vpop.f32.mrf.mxu1 }
 0x1df   :  { %460 = vst [vmem:[#allocation2] sm:$0x3] %v455_v10 }
 0x1e0   :  { %627 = shalt.err (!%p624_p4)
}
 0x1e1   :  { %470 = dma.vmem_to_hbm [thread:$0]  %s468_s15, 32, %s830_s5, [#allocation3]  }
 0x1e2   :  { %636 = dma.done.wait [#allocation3], 32  }
 0x1e3   :  { %637 = vsyncadd [#allocation3], 4294967264 }
 0x1e4   :  { %474 = vsyncpa [#allocation3], 1 }

// kernel: bert_classifier_forward.4
= control target key start
LH: loop header
LB: loop body
LE: loop exit
PB: predicated region body
PF: predicated region fallthrough
CT: control target
= control target key end

     0   :  { %s4893_s0 = inlined_call_operand.vmem [shape: s32[2], index: 0, kind: input, shape index: {}]   ;;  %s4894_s1 = inlined_call_operand.vmem [shape: f32[2,8,256], index: 1, kind: input, shape index: {}]   ;;  %s4895_s2 = inlined_call_operand.vmem [shape: bf16[256,768], index: 2, kind: input, shape index: {}]   ;;  %s4896_s3 = inlined_call_operand.vmem [shape: bf16[256,256], index: 3, kind: input, shape index: {}]   ;;  %s4897_s4 = inlined_call_operand.vmem [shape: f32[1,256], index: 4, kind: input, shape index: {}]   ;;  %s4898_s5 = inlined_call_operand.vmem [shape: f32[1,256], index: 5, kind: input, shape index: {}]   ;;  %s4899_s6 = inlined_call_operand.vmem [shape: bf16[256,512], index: 6, kind: input, shape index: {}]   ;;  %s4900_s7 = inlined_call_operand.vmem [shape: f32[1,512], index: 7, kind: input, shape index: {}]   ;;  %s4901_s8 = inlined_call_operand.vmem [shape: bf16[512,256], index: 8, kind: input, shape index: {}]   ;;  %s4902_s9 = inlined_call_operand.vmem [shape: f32[1,256], index: 9, kind: input, shape index: {}]   ;;  %s4903_s10 = inlined_call_operand.vmem [shape: f32[1,256], index: 10, kind: input, shape index: {}]   ;;  %s4904_s11 = inlined_call_operand.vmem [shape: f32[1,256], index: 11, kind: input, shape index: {}]   ;;  %s4905_s12 = inlined_call_operand.vmem [shape: f32[2,8,256], index: 12, kind: output, shape index: {}]  }
   0x1   :  { %s17_s23 = sshll.u32 %s4893_s0, 4  ;;  %s18_s23 = int_to_ptr.vmem [resolvable:$true] %s17_s23 }
   0x2   :  { %s3817_s24 = scalar_lea.vmem %s18_s23, 16  ;;  %p3822_p1 = scmp.lt.s32.totalorder %s18_s23, %s18_s23 }
   0x3   :  { %p3818_p0 = scmp.ne.s32.totalorder %s18_s23, %s3817_s24  ;;  %p3823_p2 = scmp.lt.s32.totalorder %s3817_s24, %s3817_s24 }
   0x5   :  { %p3824_p3 = por %p3823_p2, %p3822_p1 }
   0x7   :  { %p3825_p4 = pnand %p3824_p3, %p3818_p0 }
   0x9   :  { %3828 = shalt.err (!%p3825_p4)  }
   0xa   :  { %s3839_s25 = smov [#allocation3]  }
   0xb   :  { %20 = dma.vmem_to_smem %s18_s23, 16, %s3839_s25, [#allocation2] }
   0xc   :  { %3833 = dma.done.wait [#allocation2], 16 }
   0xd   :  { %3834 = vsyncadd [#allocation2], 4294967280 }
   0xe   :  { %22 = sfence }
   0xf   :  { %s3912_s26 = smov 0  }
  0x10 LB: > { %s3918_s0 = sadd.s32 4294967295, %s3837_s26   ;;  %p3058_p5 = scmp.ge.s32.totalorder %s3837_s26, 1  ;;  %s3837_s26 = sphi %s3912_s26, %s28_s26  }
  0x11   : > { %p344_p6 = scmp.lt.s32.totalorder %s3837_s26, 3 }
  0x13   : > { %p345_p7 = pnand %p3058_p5, %p344_p6 }
  0x14   : > { %p384_p8 = scmp.lt.s32.totalorder (!%p345_p7), %s3918_s0, 1  ;;  %s3842_s14 = smov (!%p345_p7), 64  }
  0x15   : > { %348 = sbr.rel (%p345_p7) target bundleno = 3983 (0xf8f), region = 64  ;;  %s395_s13 = sld [smem:[#allocation3 + %s3918_s0]] (!%p345_p7) }
  0x1a   : > { %v3412_v0 = vld [vmem:[%s4895_s2 + $0x154] ss:$24 sps:$4 sm:$0xff]   ;;  %v3416_v2 = vld [vmem:[%s4895_s2 + $0x150] ss:$24 sps:$4 sm:$0xff]   ;;  %v3418_v4 = vld [vmem:[%s4895_s2 + $0x124] ss:$24 sps:$4 sm:$0xff]  }
  0x1b   : > { %v3414_v1 = vld [vmem:[%s4895_s2 + $0x15c] ss:$24 sps:$4 sm:$0xff]   ;;  %976 = vmatprep.subr.bf16.mxu0 %v3412_v0  ;;  %v3417_v3 = vld [vmem:[%s4895_s2 + $0x158] ss:$24 sps:$4 sm:$0xff]   ;;  %v3420_v5 = vld [vmem:[%s4895_s2 + $0x12c] ss:$24 sps:$4 sm:$0xff]  }
  0x1c   : > { %1017 = vmatprep.subr.bf16.mxu1 %v3414_v1  ;;  %977 = vmatpush1.bf16.msra.mxu0 %v3416_v2  ;;  %v3422_v6 = vld [vmem:[%s4895_s2 + $0x120] ss:$24 sps:$4 sm:$0xff]   ;;  %v3424_v8 = vld [vmem:[%s4895_s2 + $0xf4] ss:$24 sps:$4 sm:$0xff]   ;;  %v3428_v10 = vld [vmem:[%s4895_s2 + $0xf0] ss:$24 sps:$4 sm:$0xff]  }
  0x1d   : > { %1018 = vmatpush1.bf16.msra.mxu1 %v3417_v3  ;;  %978 = vmatprep.subr.bf16.mxu0 %v3418_v4  ;;  %v3423_v7 = vld [vmem:[%s4895_s2 + $0x128] ss:$24 sps:$4 sm:$0xff]   ;;  %v3426_v9 = vld [vmem:[%s4895_s2 + $0xfc] ss:$24 sps:$4 sm:$0xff]   ;;  %v3429_v11 = vld [vmem:[%s4895_s2 + $0xf8] ss:$24 sps:$4 sm:$0xff]  }
  0x1e   : > { %1019 = vmatprep.subr.bf16.mxu1 %v3420_v5  ;;  %v3430_v12 = vld [vmem:[%s4895_s2 + $0xc4] ss:$24 sps:$4 sm:$0xff]   ;;  %v3434_v14 = vld [vmem:[%s4895_s2 + $0xc0] ss:$24 sps:$4 sm:$0xff]   ;;  %v3436_v16 = vld [vmem:[%s4895_s2 + $0x94] ss:$24 sps:$4 sm:$0xff]  }
  0x1f   : > { %v3432_v13 = vld [vmem:[%s4895_s2 + $0xcc] ss:$24 sps:$4 sm:$0xff]   ;;  %v3435_v15 = vld [vmem:[%s4895_s2 + $0xc8] ss:$24 sps:$4 sm:$0xff]   ;;  %v3438_v17 = vld [vmem:[%s4895_s2 + $0x9c] ss:$24 sps:$4 sm:$0xff]  }
  0x20   : > { %979 = vmatpush1.bf16.msra.mxu0 %v3422_v6  ;;  %v3440_v18 = vld [vmem:[%s4895_s2 + $0x90] ss:$24 sps:$4 sm:$0xff]   ;;  %v3442_v20 = vld [vmem:[%s4895_s2 + $0x64] ss:$24 sps:$4 sm:$0xff]   ;;  %v3446_v22 = vld [vmem:[%s4895_s2 + $0x60] ss:$24 sps:$4 sm:$0xff]  }
  0x21   : > { %1020 = vmatpush1.bf16.msra.mxu1 %v3423_v7  ;;  %980 = vmatprep.subr.bf16.mxu0 %v3424_v8  ;;  %v3441_v19 = vld [vmem:[%s4895_s2 + $0x98] ss:$24 sps:$4 sm:$0xff]   ;;  %v3444_v21 = vld [vmem:[%s4895_s2 + $0x6c] ss:$24 sps:$4 sm:$0xff]   ;;  %v3447_v23 = vld [vmem:[%s4895_s2 + $0x68] ss:$24 sps:$4 sm:$0xff]  }
  0x22   : > { %1021 = vmatprep.subr.bf16.mxu1 %v3426_v9  ;;  %v3448_v24 = vld [vmem:[%s4895_s2 + $0x34] ss:$24 sps:$4 sm:$0xff]   ;;  %v3452_v26 = vld [vmem:[%s4895_s2 + $0x30] ss:$24 sps:$4 sm:$0xff]   ;;  %v3454_v28 = vld [vmem:[%s4895_s2 + $0x4] ss:$24 sps:$4 sm:$0xff]  }
  0x23   : > { %v3450_v25 = vld [vmem:[%s4895_s2 + $0x3c] ss:$24 sps:$4 sm:$0xff]   ;;  %v3453_v27 = vld [vmem:[%s4895_s2 + $0x38] ss:$24 sps:$4 sm:$0xff]   ;;  %v3456_v29 = vld [vmem:[%s4895_s2 + $0xc] ss:$24 sps:$4 sm:$0xff]  }
  0x24   : > { %981 = vmatpush1.bf16.msra.mxu0 %v3428_v10  ;;  %v3458_v30 = vld [vmem:[%s4895_s2] ss:$24 sps:$4 sm:$0xff]   ;;  %v3460_v32 = vld [vmem:[%s4895_s2 + $0x2d4] ss:$24 sps:$4 sm:$0xff]   ;;  %v3464_v34 = vld [vmem:[%s4895_s2 + $0x2d0] ss:$24 sps:$4 sm:$0xff]  }
  0x25   : > { %1022 = vmatpush1.bf16.msra.mxu1 %v3429_v11  ;;  %982 = vmatprep.subr.bf16.mxu0 %v3430_v12  ;;  %v3459_v31 = vld [vmem:[%s4895_s2 + $0x8] ss:$24 sps:$4 sm:$0xff]   ;;  %v3462_v33 = vld [vmem:[%s4895_s2 + $0x2dc] ss:$24 sps:$4 sm:$0xff]   ;;  %v3465_v35 = vld [vmem:[%s4895_s2 + $0x2d8] ss:$24 sps:$4 sm:$0xff]  }
  0x26   : > { %1023 = vmatprep.subr.bf16.mxu1 %v3432_v13  ;;  %v3466_v36 = vld [vmem:[%s4895_s2 + $0x2a4] ss:$24 sps:$4 sm:$0xff]   ;;  %s4035_s15 = scalar_select %p384_p8, %s3918_s0, 1  ;;  %v3470_v38 = vld [vmem:[%s4895_s2 + $0x2a0] ss:$24 sps:$4 sm:$0xff]   ;;  %v3840_v4 = vmov 0.0  }
  0x27   : > { %v3468_v37 = vld [vmem:[%s4895_s2 + $0x2ac] ss:$24 sps:$4 sm:$0xff]   ;;  %v3471_v39 = vld [vmem:[%s4895_s2 + $0x2a8] ss:$24 sps:$4 sm:$0xff]   ;;  %v3474_v41 = vld [vmem:[%s4895_s2 + $0x27c] ss:$24 sps:$4 sm:$0xff]  }
  0x28   : > { %983 = vmatpush1.bf16.msra.mxu0 %v3434_v14  ;;  %v3472_v40 = vld [vmem:[%s4895_s2 + $0x274] ss:$24 sps:$4 sm:$0xff]   ;;  %s3333_s24 = sshll.u32 %s4035_s15, 4  ;;  %v3476_v42 = vld [vmem:[%s4895_s2 + $0x270] ss:$24 sps:$4 sm:$0xff]   ;;  %vm3841_vm0 = vmmov 0  }
  0x29   : > { %1024 = vmatpush1.bf16.msra.mxu1 %v3435_v15  ;;  %984 = vmatprep.subr.bf16.mxu0 %v3436_v16  ;;  %v3477_v43 = vld [vmem:[%s4895_s2 + $0x278] ss:$24 sps:$4 sm:$0xff]   ;;  %s4064_s17 = scalar_lea.vmem %s4894_s1, %s3333_s24  ;;  %v3478_v44 = vld [vmem:[%s4895_s2 + $0x244] ss:$24 sps:$4 sm:$0xff]   ;;  %v3483_v47 = vld [vmem:[%s4895_s2 + $0x248] ss:$24 sps:$4 sm:$0xff]   ;;  %s393_s21 = scalar_lea.vmem %s4905_s12, %s3333_s24 }
  0x2a   : > { %1025 = vmatprep.subr.bf16.mxu1 %v3438_v17  ;;  %v3480_v45 = vld [vmem:[%s4895_s2 + $0x24c] ss:$24 sps:$4 sm:$0xff]   ;;  %v3482_v46 = vld [vmem:[%s4895_s2 + $0x240] ss:$24 sps:$4 sm:$0xff]   ;;  %v3486_v50 = vld [vmem:[%s4895_s2 + $0x21c] ss:$24 sps:$4 sm:$0xff]  }
  0x2b   : > { %v397_v48 = vld [vmem:[%s4064_s17 + $0x8] sm:$0xff]  ;;  %v3489_v53 = vld [vmem:[%s4895_s2 + $0x218] ss:$24 sps:$4 sm:$0xff]   ;;  %v3490_v54 = vld [vmem:[%s4895_s2 + $0x1e4] ss:$24 sps:$4 sm:$0xff]   ;;  %vm1139_vm1 = vcmask 523264  }
  0x2c   : > { %985 = vmatpush1.bf16.msra.mxu0 %v3440_v18  ;;  %v3484_v49 = vld [vmem:[%s4895_s2 + $0x214] ss:$24 sps:$4 sm:$0xff]   ;;  %v399_v51 = vpack.c.bf16 %v397_v48, %v397_v48  ;;  %v3488_v52 = vld [vmem:[%s4895_s2 + $0x210] ss:$24 sps:$4 sm:$0xff]   ;;  %v3494_v56 = vld [vmem:[%s4895_s2 + $0x1e0] ss:$24 sps:$4 sm:$0xff]  }
  0x2d   : > { %1026 = vmatpush1.bf16.msra.mxu1 %v3441_v19  ;;  %986 = vmatprep.subr.bf16.mxu0 %v3442_v20  ;;  %v3492_v55 = vld [vmem:[%s4895_s2 + $0x1ec] ss:$24 sps:$4 sm:$0xff]   ;;  %v3495_v57 = vld [vmem:[%s4895_s2 + $0x1e8] ss:$24 sps:$4 sm:$0xff]   ;;  %v3498_v59 = vld [vmem:[%s4895_s2 + $0x1bc] ss:$24 sps:$4 sm:$0xff]  }
  0x2e   : > { %1027 = vmatprep.subr.bf16.mxu1 %v3444_v21  ;;  %1008 = vmatprep.mubr.bf16.mxu0 %v399_v51  ;;  %v3496_v58 = vld [vmem:[%s4895_s2 + $0x1b4] ss:$24 sps:$4 sm:$0xff]   ;;  %v3500_v60 = vld [vmem:[%s4895_s2 + $0x1b0] ss:$24 sps:$4 sm:$0xff]   ;;  %v3502_v62 = vld [vmem:[%s4895_s2 + $0x184] ss:$24 sps:$4 sm:$0xff]  }
  0x2f   : > { %1049 = vmatprep.mubr.bf16.mxu1 %v399_v51  ;;  %v3501_v61 = vld [vmem:[%s4895_s2 + $0x1b8] ss:$24 sps:$4 sm:$0xff]   ;;  %v3504_v63 = vld [vmem:[%s4895_s2 + $0x18c] ss:$24 sps:$4 sm:$0xff]   ;;  %v3507_v1 = vld [vmem:[%s4895_s2 + $0x188] ss:$24 sps:$4 sm:$0xff]  }
  0x30   : > { %987 = vmatpush1.bf16.msra.mxu0 %v3446_v22  ;;  %v3506_v0 = vld [vmem:[%s4895_s2 + $0x180] ss:$24 sps:$4 sm:$0xff]   ;;  %v3510_v18 = vld [vmem:[%s4895_s2 + $0x164] ss:$24 sps:$4 sm:$0xff]   ;;  %v3513_v19 = vld [vmem:[%s4895_s2 + $0x134] ss:$24 sps:$4 sm:$0xff]  }
  0x31   : > { %1028 = vmatpush1.bf16.msra.mxu1 %v3447_v23  ;;  %988 = vmatprep.subr.bf16.mxu0 %v3448_v24  ;;  %v4128_v2 = vld [vmem:[%s4064_s17] sm:$0xff]  ;;  %v3511_v20 = vld [vmem:[%s4895_s2 + $0x130] ss:$24 sps:$4 sm:$0xff]   ;;  %v3519_v23 = vld [vmem:[%s4895_s2 + $0xd4] ss:$24 sps:$4 sm:$0xff]   ;;  %vm1187_vm3 = vcmask 64512  }
  0x32   : > { %1029 = vmatprep.subr.bf16.mxu1 %v3450_v25  ;;  %v4132_v3 = vpack.c.bf16 %v4128_v2, %v4128_v2  ;;  %v3508_v17 = vld [vmem:[%s4895_s2 + $0x160] ss:$24 sps:$4 sm:$0xff]   ;;  %v3516_v21 = vld [vmem:[%s4895_s2 + $0x104] ss:$24 sps:$4 sm:$0xff]   ;;  %v3517_v24 = vld [vmem:[%s4895_s2 + $0xd0] ss:$24 sps:$4 sm:$0xff]  }
  0x33   : > { %v3514_v22 = vld [vmem:[%s4895_s2 + $0x100] ss:$24 sps:$4 sm:$0xff]   ;;  %v3522_v25 = vld [vmem:[%s4895_s2 + $0xa4] ss:$24 sps:$4 sm:$0xff]   ;;  %v3553_v48 = vld [vmem:[%s4895_s2 + $0x190] ss:$24 sps:$4 sm:$0xff]  }
  0x34   : > { %989 = vmatpush1.bf16.msra.mxu0 %v3452_v26  ;;  %v3520_v26 = vld [vmem:[%s4895_s2 + $0xa0] ss:$24 sps:$4 sm:$0xff]   ;;  %vm1203_vm4 = vcmask 1043456  }
  0x35   : > { %1030 = vmatpush1.bf16.msra.mxu1 %v3453_v27  ;;  %990 = vmatprep.subr.bf16.mxu0 %v3454_v28  ;;  %v3525_v27 = vld [vmem:[%s4895_s2 + $0x74] ss:$24 sps:$4 sm:$0xff]   ;;  %v3523_v28 = vld [vmem:[%s4895_s2 + $0x70] ss:$24 sps:$4 sm:$0xff]  }
  0x36   : > { %1031 = vmatprep.subr.bf16.mxu1 %v3456_v29  ;;  %v3528_v29 = vld [vmem:[%s4895_s2 + $0x44] ss:$24 sps:$4 sm:$0xff]  }
  0x38   : > { %991 = vmatpush1.bf16.msra.mxu0 %v3458_v30  ;;  %v3526_v30 = vld [vmem:[%s4895_s2 + $0x40] ss:$24 sps:$4 sm:$0xff]  }
  0x39   : > { %1032 = vmatpush1.bf16.msra.mxu1 %v3459_v31  ;;  %992 = vmatprep.subr.bf16.mxu0 %v3460_v32  ;;  %v3531_v31 = vld [vmem:[%s4895_s2 + $0x14] ss:$24 sps:$4 sm:$0xff]   ;;  %v3529_v32 = vld [vmem:[%s4895_s2 + $0x10] ss:$24 sps:$4 sm:$0xff]  }
  0x3a   : > { %1033 = vmatprep.subr.bf16.mxu1 %v3462_v33  ;;  %v3534_v33 = vld [vmem:[%s4895_s2 + $0x2e4] ss:$24 sps:$4 sm:$0xff]  }
  0x3c   : > { %993 = vmatpush2.bf16.msra.mxu0 %v3464_v34  ;;  %v3532_v34 = vld [vmem:[%s4895_s2 + $0x2e0] ss:$24 sps:$4 sm:$0xff]  }
  0x3d   : > { %1034 = vmatpush2.bf16.msra.mxu1 %v3465_v35  ;;  %994 = vmatprep.subr.bf16.mxu0 %v3466_v36  ;;  %v3537_v35 = vld [vmem:[%s4895_s2 + $0x2b4] ss:$24 sps:$4 sm:$0xff]   ;;  %v3535_v36 = vld [vmem:[%s4895_s2 + $0x2b0] ss:$24 sps:$4 sm:$0xff]  }
  0x3e   : > { %1035 = vmatprep.subr.bf16.mxu1 %v3468_v37  ;;  %v3540_v37 = vld [vmem:[%s4895_s2 + $0x284] ss:$24 sps:$4 sm:$0xff]  }
  0x40   : > { %995 = vmatpush2.bf16.msra.mxu0 %v3470_v38  ;;  %v3538_v38 = vld [vmem:[%s4895_s2 + $0x280] ss:$24 sps:$4 sm:$0xff]  }
  0x41   : > { %1036 = vmatpush2.bf16.msra.mxu1 %v3471_v39  ;;  %996 = vmatprep.subr.bf16.mxu0 %v3472_v40  ;;  %v3543_v39 = vld [vmem:[%s4895_s2 + $0x254] ss:$24 sps:$4 sm:$0xff]   ;;  %v3541_v40 = vld [vmem:[%s4895_s2 + $0x250] ss:$24 sps:$4 sm:$0xff]  }
  0x42   : > { %1037 = vmatprep.subr.bf16.mxu1 %v3474_v41  ;;  %v3546_v41 = vld [vmem:[%s4895_s2 + $0x224] ss:$24 sps:$4 sm:$0xff]  }
  0x44   : > { %997 = vmatpush2.bf16.msra.mxu0 %v3476_v42  ;;  %v3544_v42 = vld [vmem:[%s4895_s2 + $0x220] ss:$24 sps:$4 sm:$0xff]  }
  0x45   : > { %1038 = vmatpush2.bf16.msra.mxu1 %v3477_v43  ;;  %998 = vmatprep.subr.bf16.mxu0 %v3478_v44  ;;  %v3549_v43 = vld [vmem:[%s4895_s2 + $0x1f4] ss:$24 sps:$4 sm:$0xff]   ;;  %v3547_v44 = vld [vmem:[%s4895_s2 + $0x1f0] ss:$24 sps:$4 sm:$0xff]  }
  0x46   : > { %1039 = vmatprep.subr.bf16.mxu1 %v3480_v45  ;;  %v3552_v45 = vld [vmem:[%s4895_s2 + $0x1c4] ss:$24 sps:$4 sm:$0xff]  }
  0x48   : > { %999 = vmatpush2.bf16.msra.mxu0 %v3482_v46  ;;  %v3550_v46 = vld [vmem:[%s4895_s2 + $0x1c0] ss:$24 sps:$4 sm:$0xff]  }
  0x49   : > { %1040 = vmatpush2.bf16.msra.mxu1 %v3483_v47  ;;  %1000 = vmatprep.subr.bf16.mxu0 %v3484_v49  ;;  %v3555_v47 = vld [vmem:[%s4895_s2 + $0x194] ss:$24 sps:$4 sm:$0xff]   ;;  %v1131_v49 = vlaneseq }
  0x4a   : > { %1041 = vmatprep.subr.bf16.mxu1 %v3486_v50 }
  0x4b   : > { %v1132_v50 = vand.u32 127, %v1131_v49 }
  0x4c   : > { %1001 = vmatpush2.bf16.msra.mxu0 %v3488_v52 }
  0x4d   : > { %1042 = vmatpush2.bf16.msra.mxu1 %v3489_v53  ;;  %1002 = vmatprep.subr.bf16.mxu0 %v3490_v54 }
  0x4e   : > { %1043 = vmatprep.subr.bf16.mxu1 %v3492_v55 }
  0x50   : > { %1003 = vmatpush2.bf16.msra.mxu0 %v3494_v56 }
  0x51   : > { %1044 = vmatpush2.bf16.msra.mxu1 %v3495_v57  ;;  %1004 = vmatprep.subr.bf16.mxu0 %v3496_v58 }
  0x52   : > { %1045 = vmatprep.subr.bf16.mxu1 %v3498_v59 }
  0x54   : > { %1005 = vmatpush2.bf16.msra.mxu0 %v3500_v60 }
  0x55   : > { %1046 = vmatpush2.bf16.msra.mxu1 %v3501_v61  ;;  %1006 = vmatprep.subr.bf16.mxu0 %v3502_v62 }
  0x56   : > { %1047 = vmatprep.subr.bf16.mxu1 %v3504_v63 }
  0x58   : > { %1007 = vmatpush2.bf16.msra.mxu0 %v3506_v0 }
  0x59   : > { %1048 = vmatpush2.bf16.msra.mxu1 %v3507_v1  ;;  %1058 = vmatprep.subr.bf16.mxu0 %v3510_v18 }
  0x5a   : > { %3351 = vmatprep.subr.bf16.mxu1 %v3840_v4 }
  0x5b   : > { %1009 = vmatmul.mubr.bf16.vlgmr.msra.gmra.mxu0 %v4132_v3 }
  0x5c   : > { %1050 = vmatmul.mubr.bf16.vlgmr.msra.gmra.mxu1 %v4132_v3  ;;  %1090 = vmatprep.mubr.bf16.mxu0 %v399_v51  ;;  %v1133_v51 = vstv %s395_s13 }
  0x5d   : > { %3353 = vmatprep.mubr.msk.bf16.mxu1 %vm3841_vm0, %v3840_v4  ;;  %1059 = vmatpush1.bf16.msra.mxu0 %v3508_v17  ;;  %vm4249_vm2 = vcmp.lt.s32.totalorder %v1132_v50, %v1133_v51  ;;  %v3568_v50 = vld [vmem:[%s4896_s3 + $0x30] ss:$8 sps:$4 sm:$0xff]  }
  0x5e   : > { %1060 = vmatprep.subr.bf16.mxu0 %v3513_v19 }
  0x61   : > { %1061 = vmatpush1.bf16.msra.mxu0 %v3511_v20 }
  0x62   : > { %1062 = vmatprep.subr.bf16.mxu0 %v3516_v21 }
  0x65   : > { %1063 = vmatpush1.bf16.msra.mxu0 %v3514_v22 }
  0x66   : > { %1064 = vmatprep.subr.bf16.mxu0 %v3519_v23 }
  0x69   : > { %1065 = vmatpush1.bf16.msra.mxu0 %v3517_v24 }
  0x6a   : > { %1066 = vmatprep.subr.bf16.mxu0 %v3522_v25 }
  0x6d   : > { %1067 = vmatpush1.bf16.msra.mxu0 %v3520_v26 }
  0x6e   : > { %1068 = vmatprep.subr.bf16.mxu0 %v3525_v27 }
  0x71   : > { %1069 = vmatpush1.bf16.msra.mxu0 %v3523_v28 }
  0x72   : > { %1070 = vmatprep.subr.bf16.mxu0 %v3528_v29 }
  0x75   : > { %1071 = vmatpush1.bf16.msra.mxu0 %v3526_v30 }
  0x76   : > { %1072 = vmatprep.subr.bf16.mxu0 %v3531_v31 }
  0x79   : > { %1073 = vmatpush1.bf16.msra.mxu0 %v3529_v32 }
  0x7a   : > { %1074 = vmatprep.subr.bf16.mxu0 %v3534_v33 }
  0x7d   : > { %1075 = vmatpush2.bf16.msra.mxu0 %v3532_v34  ;;  %v3558_v34 = vld [vmem:[%s4896_s3 + $0x74] ss:$8 sps:$4 sm:$0xff]  }
  0x7e   : > { %1076 = vmatprep.subr.bf16.mxu0 %v3537_v35 }
  0x81   : > { %1077 = vmatpush2.bf16.msra.mxu0 %v3535_v36 }
  0x82   : > { %1078 = vmatprep.subr.bf16.mxu0 %v3540_v37 }
  0x85   : > { %1079 = vmatpush2.bf16.msra.mxu0 %v3538_v38  ;;  %v3556_v38 = vld [vmem:[%s4896_s3 + $0x70] ss:$8 sps:$4 sm:$0xff]  }
  0x86   : > { %1080 = vmatprep.subr.bf16.mxu0 %v3543_v39 }
  0x89   : > { %1081 = vmatpush2.bf16.msra.mxu0 %v3541_v40  ;;  %v3561_v40 = vld [vmem:[%s4896_s3 + $0x64] ss:$8 sps:$4 sm:$0xff]  }
  0x8a   : > { %1082 = vmatprep.subr.bf16.mxu0 %v3546_v41  ;;  %v3559_v41 = vld [vmem:[%s4896_s3 + $0x60] ss:$8 sps:$4 sm:$0xff]  }
  0x8d   : > { %1083 = vmatpush2.bf16.msra.mxu0 %v3544_v42  ;;  %v3564_v42 = vld [vmem:[%s4896_s3 + $0x54] ss:$8 sps:$4 sm:$0xff]  }
  0x8e   : > { %1084 = vmatprep.subr.bf16.mxu0 %v3549_v43  ;;  %v3562_v43 = vld [vmem:[%s4896_s3 + $0x50] ss:$8 sps:$4 sm:$0xff]  }
  0x91   : > { %1085 = vmatpush2.bf16.msra.mxu0 %v3547_v44  ;;  %v3567_v44 = vld [vmem:[%s4896_s3 + $0x44] ss:$8 sps:$4 sm:$0xff]  }
  0x92   : > { %1086 = vmatprep.subr.bf16.mxu0 %v3552_v45  ;;  %v3565_v45 = vld [vmem:[%s4896_s3 + $0x40] ss:$8 sps:$4 sm:$0xff]  }
  0x95   : > { %1087 = vmatpush2.bf16.msra.mxu0 %v3550_v46  ;;  %v3570_v46 = vld [vmem:[%s4896_s3 + $0x34] ss:$8 sps:$4 sm:$0xff]  }
  0x96   : > { %1088 = vmatprep.subr.bf16.mxu0 %v3555_v47  ;;  %v3843_v47 = vmov 0  }
  0x99   : > { %1089 = vmatpush2.bf16.msra.mxu0 %v3553_v48 }
  0x9c   : > { %1091 = vmatmul.mubr.bf16.vlgmr.msra.gmra.mxu0 %v4132_v3 }
  0x9d   : > { %1716 = vmatprep.mubr.bf16.mxu0 %v3843_v47 }
 0x11b   : > { %v1010_v5 = vpop.f32.mrf.mxu0 }
 0x11c   : > { %v1051_v6 = vpop.f32.mrf.mxu1  ;;  %v1135_v7 = vmul.f32 0.125, %v1010_v5 }
 0x11d   : > { %v1137_v8 = vpack.c.bf16 %v1051_v6, %v1051_v6  ;;  %v4139_v9 = vpop.f32.mrf.mxu0 }
 0x11e   : > { %v4141_v10 = vpop.f32.mrf.mxu1  ;;  %v1136_v11 = vpack.c.bf16 %v1135_v7, %v1135_v7 }
 0x11f   : > { %v1144_v12 = vsel %vm1139_vm1, %v1137_v8, 0  ;;  %1252 = vrot.lane.b32.xlu1 %v1137_v8, %s3842_s14  ;;  %v1014_v13 = vpop.f32.mrf.mxu0 }
 0x120   : > { %v1055_v14 = vpop.f32.mrf.mxu1  ;;  %3352 = vmatpush3.bf16.xpose.msra.mxu1 %v1144_v12 }
 0x121   : > { %3357 = vmatprep.subr.bf16.mxu1 %v3840_v4  ;;  %v1015_v15 = vpop.f32.mrf.mxu0 }
 0x122   : > { %v1056_v16 = vpop.f32.mrf.mxu1 }
 0x123   : > { %1249 = vrot.lane.b32.xlu1 %v1136_v11, %s3842_s14 }
 0x127   : > { %3354 = vmatmul.mubr.msk.bf16.vlgmr.msra.gmra.mxu1 %vm1139_vm1, %v1136_v11 }
 0x128   : > { %3359 = vmatprep.mubr.msk.bf16.mxu1 %vm3841_vm0, %v3840_v4 }
 0x15c   : > { %v1092_v0 = vpop.f32.mrf.mxu0 }
 0x15d   : > { %v1138_v1 = vpack.c.bf16 %v1092_v0, %v1092_v0 }
 0x15e   : > { %v4257_v3 = vpop.f32.mrf.mxu0 }
 0x15f   : > { %v1205_v5 = vsel %vm1203_vm4, %v1138_v1, 0 }
 0x160   : > { %v1096_v6 = vpop.f32.mrf.mxu0  ;;  %3358 = vmatpush3.bf16.msra.mxu1 %v1205_v5 }
 0x161   : > { %3363 = vmatprep.subr.bf16.mxu1 %v3840_v4 }
 0x162   : > { %v1097_v7 = vpop.f32.mrf.mxu0 }
 0x191   : > { %v1253_v13 = vpop.permute.xlu1 %1252 }
 0x192   : > { %v1258_v15 = vsel %vm1139_vm1, %v1253_v13, 0 }
 0x195   : > { %v1250_v16 = vpop.permute.xlu1 %1249 }
 0x1e7   : > { %v1180_v53 = vpop.f32.mrf.mxu1 }
 0x1e8   : > { %v1186_v54 = vsel %vm4249_vm2, %v1180_v53, -1000000.0  ;;  %v3573_v53 = vld [vmem:[%s4896_s3 + $0x24] ss:$8 sps:$4 sm:$0xff]  }
 0x1e9   : > { %v3355_v55 = vpop.f32.mrf.mxu1  ;;  %v1188_v56 = vsel %vm1187_vm3, %v1186_v54, -inf }
 0x1ea   : > { %1189 = vmax.xlane.f32.xlu0 %v1188_v56  ;;  %v3571_v56 = vld [vmem:[%s4896_s3 + $0x20] ss:$8 sps:$4 sm:$0xff]  }
 0x1eb   : > { %v1183_v57 = vpop.f32.mrf.mxu1 }
 0x1ec   : > { %v3576_v57 = vld [vmem:[%s4896_s3 + $0x14] ss:$8 sps:$4 sm:$0xff]  }
 0x1ed   : > { %v3356_v58 = vpop.f32.mrf.mxu1 }
 0x273   : > { %v1190_v59 = vpop.xlane.xlu0 %1189 }
 0x274   : > { %v1191_v60 = vsub.f32 %v1186_v54, %v1190_v59  ;;  %v3574_v59 = vld [vmem:[%s4896_s3 + $0x10] ss:$8 sps:$4 sm:$0xff]  }
 0x276   : > { %v1192_v61 = vmul.f32 1.442695, %v1191_v60  ;;  %v3579_v60 = vld [vmem:[%s4896_s3 + $0x4] ss:$8 sps:$4 sm:$0xff]  }
 0x278   : > { %3796 = vpow2.f32 %v1192_v61  ;;  %v3577_v61 = vld [vmem:[%s4896_s3] ss:$8 sps:$4 sm:$0xff]  }
 0x285   : > { %v3797_v62 = vpop.eup %3796 }
 0x286   : > { %v1194_v63 = vsel %vm1187_vm3, %v3797_v62, 0.0 }
 0x287   : > { %1195 = vadd.xlane.f32.xlu0 %v1194_v63 }
 0x310   : > { %v1196_v8 = vpop.xlane.xlu0 %1195 }
 0x311   : > { %3798 = vrcp.f32 %v1196_v8 }
 0x31e   : > { %v3799_v11 = vpop.eup %3798 }
 0x31f   : > { %v1198_v12 = vmul.f32 %v3799_v11, %v3797_v62  ;;  %v1533_v62 = vpack.c.bf16 %v4141_v10, %v4141_v10  ;;  %v4343_v10 = vpack.c.bf16 %v4257_v3, %v4257_v3 }
 0x321   : > { %v1199_v14 = vpack.c.bf16 %v1198_v12, %v1198_v12  ;;  %v1539_v0 = vsel %vm1139_vm1, %v1533_v62, 0  ;;  %v1598_v6 = vsel %vm1203_vm4, %v4343_v10, 0 }
 0x323   : > { %3360 = vmatmul.mubr.msk.bf16.vlgmr.msra.gmra.mxu1 %vm1187_vm3, %v1199_v14 }
 0x324   : > { %3364 = vmatpush3.bf16.xpose.msra.mxu1 %v1258_v15  ;;  %3365 = vmatprep.mubr.msk.bf16.mxu1 %vm3841_vm0, %v3840_v4 }
 0x325   : > { %3369 = vmatprep.subr.bf16.mxu1 %v3840_v4 }
 0x32b   : > { %3366 = vmatmul.mubr.msk.bf16.vlgmr.msra.gmra.mxu1 %vm1139_vm1, %v1250_v16 }
 0x32c   : > { %3371 = vmatprep.mubr.msk.bf16.mxu1 %vm3841_vm0, %v3840_v4 }
 0x3e3   : > { %v4269_v17 = vpop.f32.mrf.mxu1 }
 0x3e4   : > { %v1247_v63 = vpack.c.bf16 %v4269_v17, %v4269_v17 }
 0x3e5   : > { %v3361_v18 = vpop.f32.mrf.mxu1 }
 0x3e7   : > { %v1244_v19 = vpop.f32.mrf.mxu1 }
 0x3e9   : > { %v3362_v20 = vpop.f32.mrf.mxu1 }
 0x3eb   : > { %v1294_v21 = vpop.f32.mrf.mxu1 }
 0x3ec   : > { %v1300_v22 = vsel %vm4249_vm2, %v1294_v21, -1000000.0 }
 0x3ed   : > { %v3367_v23 = vpop.f32.mrf.mxu1  ;;  %v1301_v24 = vsel %vm1187_vm3, %v1300_v22, -inf }
 0x3ee   : > { %1302 = vmax.xlane.f32.xlu0 %v1301_v24 }
 0x3ef   : > { %v1297_v25 = vpop.f32.mrf.mxu1 }
 0x3f1   : > { %v3368_v26 = vpop.f32.mrf.mxu1 }
 0x404   : > { %1314 = vrot.lane.b32.xlu0 %v1138_v1, %s3842_s14  ;;  %v1531_v1 = vmul.f32 0.125, %v4139_v9 }
 0x406   : > { %v1532_v5 = vpack.c.bf16 %v1531_v1, %v1531_v1 }
 0x477   : > { %v1303_v27 = vpop.xlane.xlu0 %1302 }
 0x478   : > { %v1304_v28 = vsub.f32 %v1300_v22, %v1303_v27 }
 0x47a   : > { %v1305_v29 = vmul.f32 1.442695, %v1304_v28  ;;  %v3580_v28 = vld [vmem:[%s4896_s3 + $0xb0] ss:$8 sps:$4 sm:$0xff]  }
 0x47b   : > { %v1315_v30 = vpop.permute.xlu0 %1314 }
 0x47c   : > { %3800 = vpow2.f32 %v1305_v29  ;;  %v1320_v31 = vsel %vm1203_vm4, %v1315_v30, 0  ;;  %v3582_v29 = vld [vmem:[%s4896_s3 + $0xb4] ss:$8 sps:$4 sm:$0xff]   ;;  %v3585_v30 = vld [vmem:[%s4896_s3 + $0xa4] ss:$8 sps:$4 sm:$0xff]  }
 0x47d   : > { %3370 = vmatpush3.bf16.msra.mxu1 %v1320_v31  ;;  %1692 = vmatprep.subr.bf16.mxu0 %v3582_v29  ;;  %v3583_v31 = vld [vmem:[%s4896_s3 + $0xa0] ss:$8 sps:$4 sm:$0xff]  }
 0x47e   : > { %1414 = vmatprep.subr.bf16.mxu1 %v3558_v34  ;;  %1693 = vmatpush1.bf16.msra.mxu0 %v3580_v28  ;;  %v3591_v34 = vld [vmem:[%s4896_s3 + $0x84] ss:$8 sps:$4 sm:$0xff]  }
 0x47f   : > { %1694 = vmatprep.subr.bf16.mxu0 %v3585_v30  ;;  %v3816_v28 = vld [vmem:[%s4064_s17 + $0x8] sm:$0xff] }
 0x482   : > { %1695 = vmatpush1.bf16.msra.mxu0 %v3583_v31 }
 0x489   : > { %v3801_v32 = vpop.eup %3800 }
 0x48a   : > { %v1307_v33 = vsel %vm1187_vm3, %v3801_v32, 0.0 }
 0x48b   : > { %1308 = vadd.xlane.f32.xlu1 %v1307_v33  ;;  %v3586_v33 = vld [vmem:[%s4896_s3 + $0x90] ss:$8 sps:$4 sm:$0xff]  }
 0x514   : > { %v1309_v35 = vpop.xlane.xlu1 %1308 }
 0x515   : > { %3802 = vrcp.f32 %v1309_v35  ;;  %v3589_v35 = vld [vmem:[%s4896_s3 + $0x80] ss:$8 sps:$4 sm:$0xff]  }
 0x522   : > { %v3803_v36 = vpop.eup %3802 }
 0x523   : > { %v1311_v37 = vmul.f32 %v3803_v36, %v3801_v32  ;;  %v3588_v32 = vld [vmem:[%s4896_s3 + $0x94] ss:$8 sps:$4 sm:$0xff]  }
 0x524   : > { %1696 = vmatprep.subr.bf16.mxu0 %v3588_v32  ;;  %v3604_v32 = vld [vmem:[%s4899_s6 + $0xe0] ss:$16 sps:$4 sm:$0xff]  }
 0x525   : > { %v1312_v39 = vpack.c.bf16 %v1311_v37, %v1311_v37  ;;  %1697 = vmatpush1.bf16.msra.mxu0 %v3586_v33  ;;  %v3606_v33 = vld [vmem:[%s4899_s6 + $0xe4] ss:$16 sps:$4 sm:$0xff]  }
 0x526   : > { %1698 = vmatprep.subr.bf16.mxu0 %v3591_v34  ;;  %v3609_v34 = vld [vmem:[%s4899_s6 + $0xec] ss:$16 sps:$4 sm:$0xff]  }
 0x527   : > { %3372 = vmatmul.mubr.msk.bf16.vlgmr.msra.gmra.mxu1 %vm1187_vm3, %v1312_v39 }
 0x528   : > { %1415 = vmatpush1.bf16.msra.mxu1 %v3556_v38  ;;  %1438 = vmatprep.mubr.bf16.mxu1 %v3843_v47 }
 0x529   : > { %1416 = vmatprep.subr.bf16.mxu1 %v3561_v40  ;;  %1699 = vmatpush1.bf16.msra.mxu0 %v3589_v35  ;;  %v3612_v35 = vld [vmem:[%s4899_s6 + $0xc4] ss:$16 sps:$4 sm:$0xff]  }
 0x52c   : > { %1417 = vmatpush1.bf16.msra.mxu1 %v3559_v41 }
 0x52d   : > { %1418 = vmatprep.subr.bf16.mxu1 %v3564_v42 }
 0x530   : > { %1419 = vmatpush1.bf16.msra.mxu1 %v3562_v43 }
 0x531   : > { %1420 = vmatprep.subr.bf16.mxu1 %v3567_v44 }
 0x534   : > { %1421 = vmatpush1.bf16.msra.mxu1 %v3565_v45 }
 0x535   : > { %1498 = vmatprep.subr.bf16.mxu1 %v3570_v46 }
 0x5e7   : > { %v1356_v48 = vpop.f32.mrf.mxu1 }
 0x5e8   : > { %v1362_v51 = vpack.c.bf16 %v1356_v48, %v1356_v48 }
 0x5e9   : > { %v3373_v54 = vpop.f32.mrf.mxu1 }
 0x5ea   : > { %3171 = vmatmul.mubr.msk.bf16.vlgmr.msra.gmra.mxu1 %vm1139_vm1, %v1362_v51 }
 0x5eb   : > { %1499 = vmatpush1.bf16.msra.mxu1 %v3568_v50  ;;  %v1359_v55 = vpop.f32.mrf.mxu1  ;;  %1522 = vmatprep.mubr.bf16.mxu1 %v3843_v47 }
 0x5ec   : > { %1500 = vmatprep.subr.bf16.mxu1 %v3573_v53 }
 0x5ed   : > { %v3374_v58 = vpop.f32.mrf.mxu1 }
 0x5ef   : > { %1501 = vmatpush1.bf16.msra.mxu1 %v3571_v56 }
 0x5f0   : > { %1502 = vmatprep.subr.bf16.mxu1 %v3576_v57 }
 0x5f3   : > { %1503 = vmatpush1.bf16.msra.mxu1 %v3574_v59 }
 0x5f4   : > { %1504 = vmatprep.subr.bf16.mxu1 %v3579_v60 }
 0x5f7   : > { %1505 = vmatpush1.bf16.msra.mxu1 %v3577_v61 }
 0x5f8   : > { %3375 = vmatprep.subr.bf16.mxu1 %v3840_v4 }
 0x5fa   : > { %3180 = vmatmul.mubr.msk.bf16.vlgmr.msra.gmra.mxu1 %vm1139_vm1, %v1247_v63  ;;  %v3592_v63 = vld [vmem:[%s4896_s3 + $0xf0] ss:$8 sps:$4 sm:$0xff]  }
 0x5fb   : > { %3376 = vmatpush3.bf16.xpose.msra.mxu1 %v1539_v0  ;;  %3377 = vmatprep.mubr.msk.bf16.mxu1 %vm3841_vm0, %v3840_v4  ;;  %v3594_v0 = vld [vmem:[%s4896_s3 + $0xf4] ss:$8 sps:$4 sm:$0xff]  }
 0x5fc   : > { %3381 = vmatprep.subr.bf16.mxu1 %v3840_v4  ;;  %1893 = vmatprep.subr.bf16.mxu0 %v3594_v0  ;;  %v3657_v0 = vld [vmem:[%s4899_s6 + $0x1ec] ss:$16 sps:$4 sm:$0xff]  }
 0x602   : > { %3378 = vmatmul.mubr.msk.bf16.vlgmr.msra.gmra.mxu1 %vm1139_vm1, %v1532_v5 }
 0x603   : > { %3382 = vmatpush3.bf16.msra.mxu1 %v1598_v6  ;;  %3383 = vmatprep.mubr.msk.bf16.mxu1 %vm3841_vm0, %v3840_v4 }
 0x604   : > { %3387 = vmatprep.subr.bf16.mxu1 %v3840_v4 }
 0x6aa   : > { %v1440_v7 = vpop.f32.mrf.mxu1 }
 0x6ac   : > { %v1442_v9 = vpop.f32.mrf.mxu1 }
 0x6ae   : > { %v1444_v8 = vpop.f32.mrf.mxu1 }
 0x6b0   : > { %v1445_v11 = vpop.f32.mrf.mxu1 }
 0x6b1   : > { %v3598_v11 = vld [vmem:[%s4896_s3 + $0xd0] ss:$8 sps:$4 sm:$0xff]  }
 0x6ba   : > { %v1524_v12 = vpop.f32.mrf.mxu1 }
 0x6bb   : > { %v4351_v13 = vadd.f32 %v1524_v12, %v1440_v7  ;;  %v3595_v7 = vld [vmem:[%s4896_s3 + $0xe0] ss:$8 sps:$4 sm:$0xff]   ;;  %v3603_v12 = vld [vmem:[%s4896_s3 + $0xc4] ss:$8 sps:$4 sm:$0xff]  }
 0x6bc   : > { %v1526_v3 = vpop.f32.mrf.mxu1 }
 0x6bd   : > { %v4353_v14 = vadd.f32 %v1526_v3, %v1442_v9  ;;  %v3600_v9 = vld [vmem:[%s4896_s3 + $0xd4] ss:$8 sps:$4 sm:$0xff]  }
 0x6be   : > { %v1528_v15 = vpop.f32.mrf.mxu1 }
 0x6c0   : > { %v1529_v16 = vpop.f32.mrf.mxu1 }
 0x6c2   : > { %v1575_v17 = vpop.f32.mrf.mxu1 }
 0x6c3   : > { %v1581_v18 = vsel %vm4249_vm2, %v1575_v17, -1000000.0 }
 0x6c4   : > { %v3379_v19 = vpop.f32.mrf.mxu1  ;;  %v1582_v20 = vsel %vm1187_vm3, %v1581_v18, -inf }
 0x6c5   : > { %1583 = vmax.xlane.f32.xlu0 %v1582_v20 }
 0x6c6   : > { %v1578_v21 = vpop.f32.mrf.mxu1 }
 0x6c8   : > { %v3380_v22 = vpop.f32.mrf.mxu1 }
 0x6db   : > { %1728 = vrot.lane.b32.xlu0 %v1532_v5, %s3842_s14 }
 0x74e   : > { %v1584_v23 = vpop.xlane.xlu0 %1583 }
 0x74f   : > { %v1585_v24 = vsub.f32 %v1581_v18, %v1584_v23 }
 0x751   : > { %v1586_v25 = vmul.f32 1.442695, %v1585_v24 }
 0x752   : > { %v1729_v42 = vpop.permute.xlu0 %1728 }
 0x753   : > { %3804 = vpow2.f32 %v1586_v25 }
 0x760   : > { %v3805_v26 = vpop.eup %3804 }
 0x761   : > { %v1588_v27 = vsel %vm1187_vm3, %v3805_v26, 0.0 }
 0x762   : > { %1589 = vadd.xlane.f32.xlu1 %v1588_v27 }
 0x773   : > { %1731 = vrot.lane.b32.xlu1 %v1533_v62, %s3842_s14 }
 0x7eb   : > { %v1590_v36 = vpop.xlane.xlu1 %1589 }
 0x7ec   : > { %3806 = vrcp.f32 %v1590_v36  ;;  %v3615_v36 = vld [vmem:[%s4899_s6 + $0xcc] ss:$16 sps:$4 sm:$0xff]  }
 0x7ef   : > { %v1732_v39 = vpop.permute.xlu1 %1731 }
 0x7f0   : > { %v1737_v41 = vsel %vm1139_vm1, %v1732_v39, 0  ;;  %v3618_v39 = vld [vmem:[%s4899_s6 + $0xa4] ss:$16 sps:$4 sm:$0xff]  }
 0x7f9   : > { %v3807_v37 = vpop.eup %3806 }
 0x7fa   : > { %v1592_v38 = vmul.f32 %v3807_v37, %v3805_v26  ;;  %v3610_v37 = vld [vmem:[%s4899_s6 + $0xc0] ss:$16 sps:$4 sm:$0xff]  }
 0x7fc   : > { %v1593_v40 = vpack.c.bf16 %v1592_v38, %v1592_v38  ;;  %v3613_v38 = vld [vmem:[%s4899_s6 + $0xc8] ss:$16 sps:$4 sm:$0xff]  }
 0x7fe   : > { %3384 = vmatmul.mubr.msk.bf16.vlgmr.msra.gmra.mxu1 %vm1187_vm3, %v1593_v40  ;;  %v3621_v40 = vld [vmem:[%s4899_s6 + $0xac] ss:$16 sps:$4 sm:$0xff]  }
 0x7ff   : > { %3388 = vmatpush3.bf16.xpose.msra.mxu1 %v1737_v41  ;;  %3389 = vmatprep.mubr.msk.bf16.mxu1 %vm3841_vm0, %v3840_v4  ;;  %v3616_v41 = vld [vmem:[%s4899_s6 + $0xa0] ss:$16 sps:$4 sm:$0xff]  }
 0x800   : > { %3393 = vmatprep.subr.bf16.mxu1 %v3840_v4 }
 0x806   : > { %3390 = vmatmul.mubr.msk.bf16.vlgmr.msra.gmra.mxu1 %vm1139_vm1, %v1729_v42  ;;  %v3619_v42 = vld [vmem:[%s4899_s6 + $0xa8] ss:$16 sps:$4 sm:$0xff]  }
 0x807   : > { %3395 = vmatprep.mubr.msk.bf16.mxu1 %vm3841_vm0, %v3840_v4 }
 0x8be   : > { %v1634_v43 = vpop.f32.mrf.mxu1 }
 0x8bf   : > { %v1640_v44 = vpack.c.bf16 %v1634_v43, %v1634_v43  ;;  %v3624_v43 = vld [vmem:[%s4899_s6 + $0x84] ss:$16 sps:$4 sm:$0xff]  }
 0x8c0   : > { %v3385_v45 = vpop.f32.mrf.mxu1 }
 0x8c1   : > { %3191 = vmatmul.mubr.msk.bf16.vlgmr.msra.gmra.mxu0 %vm1139_vm1, %v1640_v44  ;;  %v3627_v44 = vld [vmem:[%s4899_s6 + $0x8c] ss:$16 sps:$4 sm:$0xff]   ;;  %v3622_v45 = vld [vmem:[%s4899_s6 + $0x80] ss:$16 sps:$4 sm:$0xff]  }
 0x8c2   : > { %v1637_v46 = vpop.f32.mrf.mxu1  ;;  %1917 = vmatprep.mubr.bf16.mxu0 %v3843_v47  ;;  %1894 = vmatpush1.bf16.msra.mxu0 %v3592_v63  ;;  %v3654_v63 = vld [vmem:[%s4899_s6 + $0x1e4] ss:$16 sps:$4 sm:$0xff]  }
 0x8c3   : > { %v3625_v46 = vld [vmem:[%s4899_s6 + $0x88] ss:$16 sps:$4 sm:$0xff]  }
 0x8c4   : > { %v3386_v48 = vpop.f32.mrf.mxu1 }
 0x8c5   : > { %v3630_v48 = vld [vmem:[%s4899_s6 + $0x64] ss:$16 sps:$4 sm:$0xff]  }
 0x8c6   : > { %v1773_v50 = vpop.f32.mrf.mxu1 }
 0x8c7   : > { %v1779_v51 = vsel %vm4249_vm2, %v1773_v50, -1000000.0  ;;  %v3633_v50 = vld [vmem:[%s4899_s6 + $0x6c] ss:$16 sps:$4 sm:$0xff]  }
 0x8c8   : > { %v3391_v53 = vpop.f32.mrf.mxu1  ;;  %v1780_v54 = vsel %vm1187_vm3, %v1779_v51, -inf }
 0x8c9   : > { %1781 = vmax.xlane.f32.xlu1 %v1780_v54  ;;  %v3631_v53 = vld [vmem:[%s4899_s6 + $0x68] ss:$16 sps:$4 sm:$0xff]   ;;  %v3636_v54 = vld [vmem:[%s4899_s6 + $0x44] ss:$16 sps:$4 sm:$0xff]  }
 0x8ca   : > { %v1776_v55 = vpop.f32.mrf.mxu1 }
 0x8cb   : > { %v3639_v55 = vld [vmem:[%s4899_s6 + $0x4c] ss:$16 sps:$4 sm:$0xff]  }
 0x8cc   : > { %v3392_v56 = vpop.f32.mrf.mxu1 }
 0x8cd   : > { %v3634_v56 = vld [vmem:[%s4899_s6 + $0x40] ss:$16 sps:$4 sm:$0xff]  }
 0x8da   : > { %1793 = vrot.lane.b32.xlu1 %v4343_v10, %s3842_s14  ;;  %v3597_v10 = vld [vmem:[%s4896_s3 + $0xe4] ss:$8 sps:$4 sm:$0xff]  }
 0x8db   : > { %1895 = vmatprep.subr.bf16.mxu0 %v3597_v10  ;;  %v3655_v10 = vld [vmem:[%s4899_s6 + $0x1e8] ss:$16 sps:$4 sm:$0xff]  }
 0x8dc   : > { %1896 = vmatpush1.bf16.msra.mxu0 %v3595_v7  ;;  %v3658_v7 = vld [vmem:[%s4899_s6 + $0x1c0] ss:$16 sps:$4 sm:$0xff]  }
 0x8dd   : > { %1897 = vmatprep.subr.bf16.mxu0 %v3600_v9  ;;  %v3661_v9 = vld [vmem:[%s4899_s6 + $0x1c8] ss:$16 sps:$4 sm:$0xff]  }
 0x8e0   : > { %1898 = vmatpush1.bf16.msra.mxu0 %v3598_v11 }
 0x8e1   : > { %1899 = vmatprep.subr.bf16.mxu0 %v3603_v12 }
 0x952   : > { %v1782_v4 = vpop.xlane.xlu1 %1781 }
 0x953   : > { %v1783_v57 = vsub.f32 %v1779_v51, %v1782_v4  ;;  %v3628_v51 = vld [vmem:[%s4899_s6 + $0x60] ss:$16 sps:$4 sm:$0xff]   ;;  %v3637_v4 = vld [vmem:[%s4899_s6 + $0x48] ss:$16 sps:$4 sm:$0xff]  }
 0x955   : > { %v1784_v58 = vmul.f32 1.442695, %v1783_v57  ;;  %v3642_v57 = vld [vmem:[%s4899_s6 + $0x24] ss:$16 sps:$4 sm:$0xff]  }
 0x956   : > { %v1794_v59 = vpop.permute.xlu1 %1793 }
 0x957   : > { %3808 = vpow2.f32 %v1784_v58  ;;  %v1799_v47 = vsel %vm1203_vm4, %v1794_v59, 0  ;;  %v3645_v58 = vld [vmem:[%s4899_s6 + $0x2c] ss:$16 sps:$4 sm:$0xff]   ;;  %v3640_v59 = vld [vmem:[%s4899_s6 + $0x20] ss:$16 sps:$4 sm:$0xff]  }
 0x958   : > { %3394 = vmatpush3.bf16.msra.mxu1 %v1799_v47  ;;  %v3643_v47 = vld [vmem:[%s4899_s6 + $0x28] ss:$16 sps:$4 sm:$0xff]  }
 0x959   : > { %2383 = vmatprep.subr.bf16.mxu1 %v3606_v33  ;;  %v3693_v33 = vld [vmem:[%s4899_s6 + $0x12c] ss:$16 sps:$4 sm:$0xff]  }
 0x964   : > { %v3809_v60 = vpop.eup %3808 }
 0x965   : > { %v1786_v52 = vsel %vm1187_vm3, %v3809_v60, 0.0 }
 0x966   : > { %1787 = vadd.xlane.f32.xlu0 %v1786_v52  ;;  %v3651_v52 = vld [vmem:[%s4899_s6 + $0xc] ss:$16 sps:$4 sm:$0xff]  }
 0x981   : > { %v1718_v61 = vpop.f32.mrf.mxu0 }
 0x982   : > { %v1725_v62 = vadd.f32 %v1718_v61, %v4351_v13  ;;  %v3601_v13 = vld [vmem:[%s4896_s3 + $0xc0] ss:$8 sps:$4 sm:$0xff]  }
 0x983   : > { %v1720_v1 = vpop.f32.mrf.mxu0  ;;  %1900 = vmatpush1.bf16.msra.mxu0 %v3601_v13  ;;  %v3646_v61 = vld [vmem:[%s4899_s6] ss:$16 sps:$4 sm:$0xff]  }
 0x984   : > { %v1726_v5 = vadd.f32 %v1720_v1, %v4353_v14  ;;  %2424 = vmatprep.subr.bf16.mxu0 %v3609_v34  ;;  %v3652_v1 = vld [vmem:[%s4899_s6 + $0x1e0] ss:$16 sps:$4 sm:$0xff]   ;;  %v3691_v34 = vld [vmem:[%s4899_s6 + $0x128] ss:$16 sps:$4 sm:$0xff]  }
 0x985   : > { %v1722_v6 = vpop.f32.mrf.mxu0 }
 0x986   : > { %v3663_v6 = vld [vmem:[%s4899_s6 + $0x1cc] ss:$16 sps:$4 sm:$0xff]  }
 0x987   : > { %v1723_v8 = vpop.f32.mrf.mxu0 }
 0x9ef   : > { %v1788_v3 = vpop.xlane.xlu0 %1787 }
 0x9f0   : > { %3810 = vrcp.f32 %v1788_v3 }
 0x9fd   : > { %v3811_v14 = vpop.eup %3810 }
 0x9fe   : > { %v1790_v15 = vmul.f32 %v3811_v14, %v3809_v60  ;;  %v3648_v60 = vld [vmem:[%s4899_s6 + $0x4] ss:$16 sps:$4 sm:$0xff]  }
 0xa00   : > { %v1791_v16 = vpack.c.bf16 %v1790_v15, %v1790_v15 }
 0xa02   : > { %3396 = vmatmul.mubr.msk.bf16.vlgmr.msra.gmra.mxu1 %vm1187_vm3, %v1791_v16  ;;  %v3666_v16 = vld [vmem:[%s4899_s6 + $0x1a4] ss:$16 sps:$4 sm:$0xff]  }
 0xa03   : > { %2384 = vmatpush1.bf16.msra.mxu1 %v3604_v32  ;;  %v3690_v32 = vld [vmem:[%s4899_s6 + $0x124] ss:$16 sps:$4 sm:$0xff]  }
 0xa04   : > { %2385 = vmatprep.subr.bf16.mxu1 %v3612_v35  ;;  %v3696_v35 = vld [vmem:[%s4899_s6 + $0x104] ss:$16 sps:$4 sm:$0xff]  }
 0xa07   : > { %2386 = vmatpush1.bf16.msra.mxu1 %v3610_v37  ;;  %v3694_v37 = vld [vmem:[%s4899_s6 + $0x100] ss:$16 sps:$4 sm:$0xff]  }
 0xa08   : > { %2387 = vmatprep.subr.bf16.mxu1 %v3618_v39  ;;  %v3702_v39 = vld [vmem:[%s4901_s8 + $0x74] ss:$8 sps:$4 sm:$0xff]  }
 0xa0b   : > { %2388 = vmatpush1.bf16.msra.mxu1 %v3616_v41 }
 0xa0c   : > { %2389 = vmatprep.subr.bf16.mxu1 %v3624_v43 }
 0xa0f   : > { %2390 = vmatpush1.bf16.msra.mxu1 %v3622_v45 }
 0xa10   : > { %2391 = vmatprep.subr.bf16.mxu1 %v3630_v48  ;;  %v1930_v48 = vld [vmem:[%s4897_s4] sm:$0x3] }
 0xa13   : > { %2392 = vmatpush1.bf16.msra.mxu1 %v3628_v51 }
 0xa14   : > { %2393 = vmatprep.subr.bf16.mxu1 %v3636_v54 }
 0xa17   : > { %2394 = vmatpush1.bf16.msra.mxu1 %v3634_v56 }
 0xa18   : > { %2395 = vmatprep.subr.bf16.mxu1 %v3642_v57 }
 0xa1b   : > { %2396 = vmatpush1.bf16.msra.mxu1 %v3640_v59 }
 0xa1c   : > { %2397 = vmatprep.subr.bf16.mxu1 %v3648_v60 }
 0xa1f   : > { %2398 = vmatpush1.bf16.msra.mxu1 %v3646_v61  ;;  %v3700_v61 = vld [vmem:[%s4901_s8 + $0x70] ss:$8 sps:$4 sm:$0xff]  }
 0xa20   : > { %2399 = vmatprep.subr.bf16.mxu1 %v3654_v63  ;;  %v3708_v63 = vld [vmem:[%s4901_s8 + $0x64] ss:$8 sps:$4 sm:$0xff]  }
 0xa23   : > { %2400 = vmatpush2.bf16.msra.mxu1 %v3652_v1  ;;  %v3706_v1 = vld [vmem:[%s4901_s8 + $0x60] ss:$8 sps:$4 sm:$0xff]  }
 0xac2   : > { %v1835_v17 = vpop.f32.mrf.mxu1 }
 0xac3   : > { %v1841_v18 = vpack.c.bf16 %v1835_v17, %v1835_v17  ;;  %v3669_v17 = vld [vmem:[%s4899_s6 + $0x1ac] ss:$16 sps:$4 sm:$0xff]  }
 0xac4   : > { %v3397_v19 = vpop.f32.mrf.mxu1 }
 0xac5   : > { %3202 = vmatmul.mubr.msk.bf16.vlgmr.msra.gmra.mxu0 %vm1139_vm1, %v1841_v18  ;;  %v3664_v18 = vld [vmem:[%s4899_s6 + $0x1a0] ss:$16 sps:$4 sm:$0xff]   ;;  %v3667_v19 = vld [vmem:[%s4899_s6 + $0x1a8] ss:$16 sps:$4 sm:$0xff]  }
 0xac6   : > { %v1838_v20 = vpop.f32.mrf.mxu1 }
 0xac7   : > { %v3672_v20 = vld [vmem:[%s4899_s6 + $0x184] ss:$16 sps:$4 sm:$0xff]  }
 0xac8   : > { %v3398_v21 = vpop.f32.mrf.mxu1 }
 0xac9   : > { %v3670_v21 = vld [vmem:[%s4899_s6 + $0x180] ss:$16 sps:$4 sm:$0xff]  }
 0xb85   : > { %v1919_v22 = vpop.f32.mrf.mxu0 }
 0xb86   : > { %v1926_v23 = vadd.f32 %v1919_v22, %v1725_v62  ;;  %v3649_v62 = vld [vmem:[%s4899_s6 + $0x8] ss:$16 sps:$4 sm:$0xff]  }
 0xb87   : > { %v1921_v24 = vpop.f32.mrf.mxu0  ;;  %v3673_v22 = vld [vmem:[%s4899_s6 + $0x188] ss:$16 sps:$4 sm:$0xff]  }
 0xb88   : > { %v1927_v25 = vadd.f32 %v1921_v24, %v1726_v5  ;;  %v4431_v27 = vadd.f32 %v1926_v23, %v4128_v2  ;;  %v3607_v2 = vld [vmem:[%s4899_s6 + $0xe8] ss:$16 sps:$4 sm:$0xff]   ;;  %v3660_v5 = vld [vmem:[%s4899_s6 + $0x1c4] ss:$16 sps:$4 sm:$0xff]   ;;  %v3675_v23 = vld [vmem:[%s4899_s6 + $0x18c] ss:$16 sps:$4 sm:$0xff]  }
 0xb89   : > { %v1923_v26 = vpop.f32.mrf.mxu0  ;;  %2425 = vmatpush1.bf16.msra.mxu0 %v3607_v2  ;;  %2401 = vmatprep.subr.bf16.mxu1 %v3660_v5  ;;  %v3678_v24 = vld [vmem:[%s4899_s6 + $0x164] ss:$16 sps:$4 sm:$0xff]   ;;  %v3688_v2 = vld [vmem:[%s4899_s6 + $0x120] ss:$16 sps:$4 sm:$0xff]  }
 0xb8a   : > { %v4434_v29 = vadd.f32 %v3816_v28, %v1927_v25  ;;  %2426 = vmatprep.subr.bf16.mxu0 %v3615_v36  ;;  %2402 = vmatpush2.bf16.msra.mxu1 %v3658_v7  ;;  %v3681_v25 = vld [vmem:[%s4899_s6 + $0x16c] ss:$16 sps:$4 sm:$0xff]   ;;  %v3676_v26 = vld [vmem:[%s4899_s6 + $0x160] ss:$16 sps:$4 sm:$0xff]   ;;  %v3684_v28 = vld [vmem:[%s4899_s6 + $0x144] ss:$16 sps:$4 sm:$0xff]  }
 0xb8b   : > { %v1924_v30 = vpop.f32.mrf.mxu0  ;;  %2403 = vmatprep.subr.bf16.mxu1 %v3666_v16  ;;  %v3699_v36 = vld [vmem:[%s4899_s6 + $0x10c] ss:$16 sps:$4 sm:$0xff]   ;;  %v3712_v7 = vld [vmem:[%s4901_s8 + $0x50] ss:$8 sps:$4 sm:$0xff]  }
 0xb8c   : > { %v1932_v31 = vadd.f32 %v4434_v29, %v4431_v27  ;;  %v3682_v30 = vld [vmem:[%s4899_s6 + $0x140] ss:$16 sps:$4 sm:$0xff]   ;;  %v3714_v5 = vld [vmem:[%s4901_s8 + $0x54] ss:$8 sps:$4 sm:$0xff]  }
 0xb8d   : > { %2427 = vmatpush1.bf16.msra.mxu0 %v3613_v38  ;;  %v3697_v38 = vld [vmem:[%s4899_s6 + $0x108] ss:$16 sps:$4 sm:$0xff]  }
 0xb8e   : > { %1933 = vadd.xlane.f32.xlu0 %v1932_v31  ;;  %2428 = vmatprep.subr.bf16.mxu0 %v3621_v40  ;;  %v3685_v31 = vld [vmem:[%s4899_s6 + $0x148] ss:$16 sps:$4 sm:$0xff]   ;;  %v3705_v40 = vld [vmem:[%s4901_s8 + $0x174] ss:$8 sps:$4 sm:$0xff]  }
 0xb8f   : > { %2404 = vmatpush2.bf16.msra.mxu1 %v3664_v18  ;;  %v3727_v16 = vld [vmem:[%s4901_s8 + $0x130] ss:$8 sps:$4 sm:$0xff]   ;;  %v3735_v18 = vld [vmem:[%s4901_s8 + $0x124] ss:$8 sps:$4 sm:$0xff]  }
 0xb90   : > { %2405 = vmatprep.subr.bf16.mxu1 %v3672_v20  ;;  %v3733_v20 = vld [vmem:[%s4901_s8 + $0x120] ss:$8 sps:$4 sm:$0xff]  }
 0xb91   : > { %2429 = vmatpush1.bf16.msra.mxu0 %v3619_v42 }
 0xb92   : > { %2430 = vmatprep.subr.bf16.mxu0 %v3627_v44  ;;  %v4647_v44 = vshrl.u32 %v1131_v49, 7 }
 0xb93   : > { %2406 = vmatpush2.bf16.msra.mxu1 %v3670_v21  ;;  %v3738_v21 = vld [vmem:[%s4901_s8 + $0x14] ss:$8 sps:$4 sm:$0xff]  }
 0xb94   : > { %2407 = vmatprep.subr.bf16.mxu1 %v3678_v24  ;;  %v4650_v45 = vsub.s32 0, %v4647_v44  ;;  %v3739_v24 = vld [vmem:[%s4901_s8 + $0x110] ss:$8 sps:$4 sm:$0xff]  }
 0xb95   : > { %2431 = vmatpush1.bf16.msra.mxu0 %v3625_v46  ;;  %v4653_v46 = vsub.s32 1, %v4647_v44 }
 0xb96   : > { %2432 = vmatprep.subr.bf16.mxu0 %v3633_v50  ;;  %v1931_v50 = vld [vmem:[%s4898_s5] sm:$0x3]  ;;  %v1953_v51 = vrot.slane %v1930_v48, %v4650_v45 }
 0xb97   : > { %2408 = vmatpush2.bf16.msra.mxu1 %v3676_v26  ;;  %v1970_v56 = vrot.slane %v1931_v50, %v4653_v46  ;;  %v3747_v26 = vld [vmem:[%s4901_s8 + $0x104] ss:$8 sps:$4 sm:$0xff]  }
 0xb98   : > { %2409 = vmatprep.subr.bf16.mxu1 %v3684_v28  ;;  %v3745_v28 = vld [vmem:[%s4901_s8 + $0x100] ss:$8 sps:$4 sm:$0xff]  }
 0xb99   : > { %2433 = vmatpush1.bf16.msra.mxu0 %v3631_v53  ;;  %v1957_v53 = vrot.slane %v1930_v48, %v4653_v46  ;;  %v3774_v48 = vld [vmem:[%s4901_s8 + $0xb4] ss:$8 sps:$4 sm:$0xff]  }
 0xb9a   : > { %2434 = vmatprep.subr.bf16.mxu0 %v3639_v55  ;;  %v1966_v55 = vrot.slane %v1931_v50, %v4650_v45  ;;  %v3777_v50 = vld [vmem:[%s4901_s8 + $0x1b4] ss:$8 sps:$4 sm:$0xff]  }
 0xb9b   : > { %2410 = vmatpush2.bf16.msra.mxu1 %v3682_v30  ;;  %v3753_v30 = vld [vmem:[%s4901_s8 + $0x1f4] ss:$8 sps:$4 sm:$0xff]  }
 0xb9c   : > { %2411 = vmatprep.subr.bf16.mxu1 %v3690_v32  ;;  %v3751_v32 = vld [vmem:[%s4901_s8 + $0x1f0] ss:$8 sps:$4 sm:$0xff]  }
 0xb9d   : > { %2435 = vmatpush1.bf16.msra.mxu0 %v3637_v4 }
 0xb9e   : > { %2436 = vmatprep.subr.bf16.mxu0 %v3645_v58 }
 0xb9f   : > { %2412 = vmatpush2.bf16.msra.mxu1 %v3688_v2  ;;  %v3759_v2 = vld [vmem:[%s4901_s8 + $0x1e4] ss:$8 sps:$4 sm:$0xff]  }
 0xba0   : > { %2413 = vmatprep.subr.bf16.mxu1 %v3696_v35  ;;  %v3757_v35 = vld [vmem:[%s4901_s8 + $0x1e0] ss:$8 sps:$4 sm:$0xff]  }
 0xba1   : > { %2437 = vmatpush1.bf16.msra.mxu0 %v3643_v47 }
 0xba2   : > { %2438 = vmatprep.subr.bf16.mxu0 %v3651_v52 }
 0xba3   : > { %2414 = vmatpush2.bf16.msra.mxu1 %v3694_v37  ;;  %v3765_v37 = vld [vmem:[%s4901_s8 + $0x1d4] ss:$8 sps:$4 sm:$0xff]  }
 0xba4   : > { %2869 = vmatprep.subr.bf16.mxu1 %v3702_v39  ;;  %v3763_v39 = vld [vmem:[%s4901_s8 + $0x1d0] ss:$8 sps:$4 sm:$0xff]  }
 0xba5   : > { %2439 = vmatpush1.bf16.msra.mxu0 %v3649_v62  ;;  %v3703_v62 = vld [vmem:[%s4901_s8 + $0x170] ss:$8 sps:$4 sm:$0xff]  }
 0xba6   : > { %2440 = vmatprep.subr.bf16.mxu0 %v3657_v0  ;;  %v3711_v0 = vld [vmem:[%s4901_s8 + $0x164] ss:$8 sps:$4 sm:$0xff]  }
 0xba9   : > { %2441 = vmatpush2.bf16.msra.mxu0 %v3655_v10  ;;  %v3709_v10 = vld [vmem:[%s4901_s8 + $0x160] ss:$8 sps:$4 sm:$0xff]  }
 0xbaa   : > { %2442 = vmatprep.subr.bf16.mxu0 %v3663_v6  ;;  %v3717_v6 = vld [vmem:[%s4901_s8 + $0x154] ss:$8 sps:$4 sm:$0xff]  }
 0xbad   : > { %2443 = vmatpush2.bf16.msra.mxu0 %v3661_v9  ;;  %v3715_v9 = vld [vmem:[%s4901_s8 + $0x150] ss:$8 sps:$4 sm:$0xff]  }
 0xbae   : > { %2444 = vmatprep.subr.bf16.mxu0 %v3669_v17  ;;  %v3732_v17 = vld [vmem:[%s4901_s8 + $0x24] ss:$8 sps:$4 sm:$0xff]  }
 0xbb1   : > { %2445 = vmatpush2.bf16.msra.mxu0 %v3667_v19  ;;  %v3730_v19 = vld [vmem:[%s4901_s8 + $0x20] ss:$8 sps:$4 sm:$0xff]  }
 0xbb2   : > { %2446 = vmatprep.subr.bf16.mxu0 %v3675_v23  ;;  %v3736_v23 = vld [vmem:[%s4901_s8 + $0x10] ss:$8 sps:$4 sm:$0xff]  }
 0xbb5   : > { %2447 = vmatpush2.bf16.msra.mxu0 %v3673_v22  ;;  %v3741_v22 = vld [vmem:[%s4901_s8 + $0x114] ss:$8 sps:$4 sm:$0xff]  }
 0xbb6   : > { %2448 = vmatprep.subr.bf16.mxu0 %v3681_v25  ;;  %v3744_v25 = vld [vmem:[%s4901_s8 + $0x4] ss:$8 sps:$4 sm:$0xff]  }
 0xc17   : > { %v1934_v8 = vpop.xlane.xlu0 %1933 }
 0xc18   : > { %v1936_v11 = vmul.f32 0.00390625, %v1934_v8  ;;  %v3720_v8 = vld [vmem:[%s4901_s8 + $0x44] ss:$8 sps:$4 sm:$0xff]  }
 0xc1a   : > { %v4559_v12 = vsub.f32 %v4431_v27, %v1936_v11  ;;  %v4562_v13 = vsub.f32 %v4434_v29, %v1936_v11  ;;  %v3679_v27 = vld [vmem:[%s4899_s6 + $0x168] ss:$16 sps:$4 sm:$0xff]   ;;  %v3687_v29 = vld [vmem:[%s4899_s6 + $0x14c] ss:$16 sps:$4 sm:$0xff]  }
 0xc1b   : > { %2449 = vmatpush2.bf16.msra.mxu0 %v3679_v27  ;;  %v3723_v11 = vld [vmem:[%s4901_s8 + $0x144] ss:$8 sps:$4 sm:$0xff]   ;;  %v3742_v27 = vld [vmem:[%s4901_s8] ss:$8 sps:$4 sm:$0xff]  }
 0xc1c   : > { %v1939_v3 = vmul.f32 %v4559_v12, %v4559_v12  ;;  %v1940_v14 = vmul.f32 %v4562_v13, %v4562_v13  ;;  %2450 = vmatprep.subr.bf16.mxu0 %v3687_v29  ;;  %v3750_v29 = vld [vmem:[%s4901_s8 + $0xf4] ss:$8 sps:$4 sm:$0xff]  }
 0xc1e   : > { %v1941_v15 = vadd.f32 %v1940_v14, %v1939_v3  ;;  %v3726_v3 = vld [vmem:[%s4901_s8 + $0x34] ss:$8 sps:$4 sm:$0xff]  }
 0xc1f   : > { %2451 = vmatpush2.bf16.msra.mxu0 %v3685_v31  ;;  %v3729_v14 = vld [vmem:[%s4901_s8 + $0x134] ss:$8 sps:$4 sm:$0xff]   ;;  %v3748_v31 = vld [vmem:[%s4901_s8 + $0xf0] ss:$8 sps:$4 sm:$0xff]  }
 0xc20   : > { %1942 = vadd.xlane.f32.xlu1 %v1941_v15  ;;  %2452 = vmatprep.subr.bf16.mxu0 %v3693_v33  ;;  %v3724_v15 = vld [vmem:[%s4901_s8 + $0x30] ss:$8 sps:$4 sm:$0xff]   ;;  %v3756_v33 = vld [vmem:[%s4901_s8 + $0xe4] ss:$8 sps:$4 sm:$0xff]  }
 0xc23   : > { %2453 = vmatpush2.bf16.msra.mxu0 %v3691_v34  ;;  %v3754_v34 = vld [vmem:[%s4901_s8 + $0xe0] ss:$8 sps:$4 sm:$0xff]  }
 0xc24   : > { %2454 = vmatprep.subr.bf16.mxu0 %v3699_v36  ;;  %v3762_v36 = vld [vmem:[%s4901_s8 + $0xd4] ss:$8 sps:$4 sm:$0xff]  }
 0xc27   : > { %2455 = vmatpush2.bf16.msra.mxu0 %v3697_v38  ;;  %v3760_v38 = vld [vmem:[%s4901_s8 + $0xd0] ss:$8 sps:$4 sm:$0xff]  }
 0xc28   : > { %2910 = vmatprep.subr.bf16.mxu0 %v3705_v40  ;;  %v3768_v40 = vld [vmem:[%s4901_s8 + $0xc4] ss:$8 sps:$4 sm:$0xff]  }
 0xca9   : > { %v1943_v41 = vpop.xlane.xlu1 %1942 }
 0xcaa   : > { %v1944_v42 = vmul.f32 0.00390625, %v1943_v41  ;;  %v3771_v41 = vld [vmem:[%s4901_s8 + $0x1c4] ss:$8 sps:$4 sm:$0xff]  }
 0xcac   : > { %v1945_v43 = vadd.f32 1e-05, %v1944_v42  ;;  %v3766_v42 = vld [vmem:[%s4901_s8 + $0xc0] ss:$8 sps:$4 sm:$0xff]  }
 0xcae   : > { %3812 = vrsqrt.f32 %v1945_v43  ;;  %v3769_v43 = vld [vmem:[%s4901_s8 + $0x1c0] ss:$8 sps:$4 sm:$0xff]  }
 0xcbb   : > { %v3813_v49 = vpop.eup %3812 }
 0xcbc   : > { %v1948_v54 = vmul.f32 %v3813_v49, %v4562_v13  ;;  %v1947_v4 = vmul.f32 %v3813_v49, %v4559_v12  ;;  %v3718_v12 = vld [vmem:[%s4901_s8 + $0x40] ss:$8 sps:$4 sm:$0xff]   ;;  %v3780_v49 = vld [vmem:[%s4901_s8 + $0xa4] ss:$8 sps:$4 sm:$0xff]  }
 0xcbd   : > { %v3721_v13 = vld [vmem:[%s4901_s8 + $0x140] ss:$8 sps:$4 sm:$0xff]  }
 0xcbe   : > { %v1961_v57 = vmul.f32 %v1957_v53, %v1948_v54  ;;  %v1960_v58 = vmul.f32 %v1953_v51, %v1947_v4  ;;  %v3772_v51 = vld [vmem:[%s4901_s8 + $0xb0] ss:$8 sps:$4 sm:$0xff]   ;;  %v3783_v54 = vld [vmem:[%s4901_s8 + $0x1a4] ss:$8 sps:$4 sm:$0xff]   ;;  %v3786_v4 = vld [vmem:[%s4901_s8 + $0x94] ss:$8 sps:$4 sm:$0xff]  }
 0xcbf   : > { %v3775_v53 = vld [vmem:[%s4901_s8 + $0x1b0] ss:$8 sps:$4 sm:$0xff]  }
 0xcc0   : > { %v4667_v59 = vadd.f32 %v1970_v56, %v1961_v57  ;;  %v4669_v47 = vadd.f32 %v1966_v55, %v1960_v58  ;;  %v3778_v55 = vld [vmem:[%s4901_s8 + $0xa0] ss:$8 sps:$4 sm:$0xff]   ;;  %v3789_v57 = vld [vmem:[%s4901_s8 + $0x194] ss:$8 sps:$4 sm:$0xff]   ;;  %v3784_v58 = vld [vmem:[%s4901_s8 + $0x90] ss:$8 sps:$4 sm:$0xff]  }
 0xcc1   : > { %v3781_v56 = vld [vmem:[%s4901_s8 + $0x1a0] ss:$8 sps:$4 sm:$0xff]  }
 0xcc2   : > { %v1976_v60 = vpack.c.bf16 %v4667_v59, %v4667_v59  ;;  %v1975_v52 = vpack.c.bf16 %v4669_v47, %v4669_v47 }
 0xcc4   : > { %2415 = vmatprep.mubr.bf16.mxu1 %v1976_v60  ;;  %2456 = vmatprep.mubr.bf16.mxu0 %v1976_v60  ;;  %v3787_v60 = vld [vmem:[%s4901_s8 + $0x190] ss:$8 sps:$4 sm:$0xff]  }
 0xcc5   : > { %2416 = vmatmul.mubr.bf16.vlgmr.msra.gmra.mxu1 %v1975_v52  ;;  %2457 = vmatmul.mubr.bf16.vlgmr.msra.gmra.mxu0 %v1975_v52  ;;  %v3792_v52 = vld [vmem:[%s4901_s8 + $0x84] ss:$8 sps:$4 sm:$0xff]  }
 0xcc6   : > { %2870 = vmatpush1.bf16.msra.mxu1 %v3700_v61  ;;  %2911 = vmatpush1.bf16.msra.mxu0 %v3703_v62  ;;  %v3795_v61 = vld [vmem:[%s4901_s8 + $0x184] ss:$8 sps:$4 sm:$0xff]   ;;  %v3790_v62 = vld [vmem:[%s4901_s8 + $0x80] ss:$8 sps:$4 sm:$0xff]  }
 0xcc7   : > { %2871 = vmatprep.subr.bf16.mxu1 %v3708_v63  ;;  %2912 = vmatprep.subr.bf16.mxu0 %v3711_v0  ;;  %v3793_v63 = vld [vmem:[%s4901_s8 + $0x180] ss:$8 sps:$4 sm:$0xff]   ;;  %v2053_v0 = vsub.s32 2, %v4647_v44 }
 0xcca   : > { %2872 = vmatpush1.bf16.msra.mxu1 %v3706_v1  ;;  %2913 = vmatpush1.bf16.msra.mxu0 %v3709_v10  ;;  %v2041_v1 = vld [vmem:[%s4900_s7] sm:$0xf]  ;;  %v2057_v10 = vsub.s32 3, %v4647_v44 }
 0xccb   : > { %2873 = vmatprep.subr.bf16.mxu1 %v3714_v5  ;;  %2914 = vmatprep.subr.bf16.mxu0 %v3717_v6  ;;  %v2046_v5 = vrot.slane %v2041_v1, %v4650_v45  ;;  %v2054_v6 = vrot.slane %v2041_v1, %v2053_v0 }
 0xcce   : > { %2874 = vmatpush1.bf16.msra.mxu1 %v3712_v7  ;;  %2915 = vmatpush1.bf16.msra.mxu0 %v3715_v9  ;;  %v2050_v7 = vrot.slane %v2041_v1, %v4653_v46  ;;  %v2058_v9 = vrot.slane %v2041_v1, %v2057_v10 }
 0xccf   : > { %2875 = vmatprep.subr.bf16.mxu1 %v3720_v8  ;;  %2916 = vmatprep.subr.bf16.mxu0 %v3723_v11 }
 0xcd2   : > { %2876 = vmatpush1.bf16.msra.mxu1 %v3718_v12  ;;  %2917 = vmatpush1.bf16.msra.mxu0 %v3721_v13 }
 0xcd3   : > { %2877 = vmatprep.subr.bf16.mxu1 %v3726_v3  ;;  %2918 = vmatprep.subr.bf16.mxu0 %v3729_v14 }
 0xcd6   : > { %2878 = vmatpush1.bf16.msra.mxu1 %v3724_v15  ;;  %2919 = vmatpush1.bf16.msra.mxu0 %v3727_v16 }
 0xcd7   : > { %2879 = vmatprep.subr.bf16.mxu1 %v3732_v17  ;;  %2920 = vmatprep.subr.bf16.mxu0 %v3735_v18 }
 0xcda   : > { %2880 = vmatpush1.bf16.msra.mxu1 %v3730_v19  ;;  %2921 = vmatpush1.bf16.msra.mxu0 %v3733_v20 }
 0xcdb   : > { %2881 = vmatprep.subr.bf16.mxu1 %v3738_v21  ;;  %2922 = vmatprep.subr.bf16.mxu0 %v3741_v22 }
 0xcde   : > { %2882 = vmatpush1.bf16.msra.mxu1 %v3736_v23  ;;  %2923 = vmatpush1.bf16.msra.mxu0 %v3739_v24 }
 0xcdf   : > { %2883 = vmatprep.subr.bf16.mxu1 %v3744_v25  ;;  %2924 = vmatprep.subr.bf16.mxu0 %v3747_v26 }
 0xce2   : > { %2884 = vmatpush1.bf16.msra.mxu1 %v3742_v27  ;;  %2925 = vmatpush1.bf16.msra.mxu0 %v3745_v28  ;;  %v2537_v28 = vld [vmem:[%s4902_s9] sm:$0x3] }
 0xce3   : > { %2885 = vmatprep.subr.bf16.mxu1 %v3750_v29  ;;  %2926 = vmatprep.subr.bf16.mxu0 %v3753_v30  ;;  %v2542_v29 = vrot.slane %v2537_v28, %v4650_v45  ;;  %v2546_v30 = vrot.slane %v2537_v28, %v4653_v46 }
 0xce6   : > { %2886 = vmatpush2.bf16.msra.mxu1 %v3748_v31  ;;  %2927 = vmatpush2.bf16.msra.mxu0 %v3751_v32 }
 0xce7   : > { %2887 = vmatprep.subr.bf16.mxu1 %v3756_v33  ;;  %2928 = vmatprep.subr.bf16.mxu0 %v3759_v2 }
 0xcea   : > { %2888 = vmatpush2.bf16.msra.mxu1 %v3754_v34  ;;  %2929 = vmatpush2.bf16.msra.mxu0 %v3757_v35 }
 0xceb   : > { %2889 = vmatprep.subr.bf16.mxu1 %v3762_v36  ;;  %2930 = vmatprep.subr.bf16.mxu0 %v3765_v37 }
 0xcee   : > { %2890 = vmatpush2.bf16.msra.mxu1 %v3760_v38  ;;  %2931 = vmatpush2.bf16.msra.mxu0 %v3763_v39 }
 0xcef   : > { %2891 = vmatprep.subr.bf16.mxu1 %v3768_v40  ;;  %2932 = vmatprep.subr.bf16.mxu0 %v3771_v41 }
 0xcf2   : > { %2892 = vmatpush2.bf16.msra.mxu1 %v3766_v42  ;;  %2933 = vmatpush2.bf16.msra.mxu0 %v3769_v43 }
 0xcf3   : > { %2893 = vmatprep.subr.bf16.mxu1 %v3774_v48  ;;  %2934 = vmatprep.subr.bf16.mxu0 %v3777_v50 }
 0xcf6   : > { %2894 = vmatpush2.bf16.msra.mxu1 %v3772_v51  ;;  %2935 = vmatpush2.bf16.msra.mxu0 %v3775_v53 }
 0xcf7   : > { %2895 = vmatprep.subr.bf16.mxu1 %v3780_v49  ;;  %2936 = vmatprep.subr.bf16.mxu0 %v3783_v54 }
 0xcfa   : > { %2896 = vmatpush2.bf16.msra.mxu1 %v3778_v55  ;;  %2937 = vmatpush2.bf16.msra.mxu0 %v3781_v56 }
 0xcfb   : > { %2897 = vmatprep.subr.bf16.mxu1 %v3786_v4  ;;  %2938 = vmatprep.subr.bf16.mxu0 %v3789_v57 }
 0xcfe   : > { %2898 = vmatpush2.bf16.msra.mxu1 %v3784_v58  ;;  %2939 = vmatpush2.bf16.msra.mxu0 %v3787_v60 }
 0xcff   : > { %2899 = vmatprep.subr.bf16.mxu1 %v3792_v52  ;;  %2940 = vmatprep.subr.bf16.mxu0 %v3795_v61 }
 0xd02   : > { %2900 = vmatpush2.bf16.msra.mxu1 %v3790_v62  ;;  %2941 = vmatpush2.bf16.msra.mxu0 %v3793_v63 }
 0xd85   : > { %v2417_v8 = vpop.f32.mrf.mxu1  ;;  %v2458_v11 = vpop.f32.mrf.mxu0 }
 0xd86   : > { %v2418_v12 = vadd.f32 %v2417_v8, %v2046_v5  ;;  %v2459_v13 = vadd.f32 %v2458_v11, %v2054_v6 }
 0xd87   : > { %v2419_v3 = vpop.f32.mrf.mxu1  ;;  %v2460_v14 = vpop.f32.mrf.mxu0 }
 0xd88   : > { %v2420_v15 = vadd.f32 %v2419_v3, %v2050_v7  ;;  %v2461_v16 = vadd.f32 %v2460_v14, %v2058_v9  ;;  %v2465_v17 = vmax.f32 %v2418_v12, 0.0  ;;  %v2467_v18 = vmax.f32 %v2459_v13, 0.0 }
 0xd89   : > { %v2421_v19 = vpop.f32.mrf.mxu1  ;;  %v2462_v20 = vpop.f32.mrf.mxu0 }
 0xd8a   : > { %v2466_v21 = vmax.f32 %v2420_v15, 0.0  ;;  %v2468_v44 = vmax.f32 %v2461_v16, 0.0  ;;  %v2469_v26 = vpack.c.bf16 %v2465_v17, %v2465_v17  ;;  %v2471_v27 = vpack.c.bf16 %v2467_v18, %v2467_v18 }
 0xd8b   : > { %v2422_v22 = vpop.f32.mrf.mxu1  ;;  %v2463_v23 = vpop.f32.mrf.mxu0 }
 0xd8c   : > { %v2470_v24 = vpack.c.bf16 %v2466_v21, %v2466_v21  ;;  %v2472_v25 = vpack.c.bf16 %v2468_v44, %v2468_v44 }
 0xd8e   : > { %2901 = vmatprep.mubr.bf16.mxu1 %v2470_v24  ;;  %2942 = vmatprep.mubr.bf16.mxu0 %v2472_v25 }
 0xd8f   : > { %2902 = vmatmul.mubr.bf16.vlgmr.msra.gmra.mxu1 %v2469_v26  ;;  %2943 = vmatmul.mubr.bf16.vlgmr.msra.gmra.mxu0 %v2471_v27 }
 0xe4f   : > { %v2903_v31 = vpop.f32.mrf.mxu1  ;;  %v2944_v32 = vpop.f32.mrf.mxu0 }
 0xe50   : > { %v2904_v33 = vadd.f32 %v2903_v31, %v2542_v29 }
 0xe51   : > { %v2905_v2 = vpop.f32.mrf.mxu1  ;;  %v2946_v34 = vpop.f32.mrf.mxu0 }
 0xe52   : > { %v2945_v35 = vadd.f32 %v2944_v32, %v2904_v33  ;;  %v2906_v36 = vadd.f32 %v2905_v2, %v2546_v30 }
 0xe53   : > { %v2907_v37 = vpop.f32.mrf.mxu1  ;;  %v2948_v38 = vpop.f32.mrf.mxu0 }
 0xe54   : > { %v2947_v39 = vadd.f32 %v2946_v34, %v2906_v36  ;;  %v2951_v42 = vadd.f32 %v2945_v35, %v4669_v47  ;;  %v2953_v47 = vld [vmem:[%s4903_s10] sm:$0x3] }
 0xe55   : > { %v2908_v40 = vpop.f32.mrf.mxu1  ;;  %v2949_v41 = vpop.f32.mrf.mxu0  ;;  %v2975_v60 = vrot.slane %v2953_v47, %v4650_v45  ;;  %v2979_v52 = vrot.slane %v2953_v47, %v4653_v46 }
 0xe56   : > { %v2952_v43 = vadd.f32 %v2947_v39, %v4667_v59  ;;  %v2954_v59 = vld [vmem:[%s4904_s11] sm:$0x3] }
 0xe57   : > { %v2988_v62 = vrot.slane %v2954_v59, %v4650_v45  ;;  %v2992_v63 = vrot.slane %v2954_v59, %v4653_v46 }
 0xe58   : > { %v2955_v48 = vadd.f32 %v2952_v43, %v2951_v42 }
 0xe5a   : > { %2956 = vadd.xlane.f32.xlu0 %v2955_v48 }
 0xee3   : > { %v2957_v50 = vpop.xlane.xlu0 %2956 }
 0xee4   : > { %v2958_v51 = vmul.f32 0.00390625, %v2957_v50 }
 0xee6   : > { %v2959_v53 = vsub.f32 %v2951_v42, %v2958_v51  ;;  %v2960_v49 = vsub.f32 %v2952_v43, %v2958_v51 }
 0xee8   : > { %v2961_v54 = vmul.f32 %v2959_v53, %v2959_v53  ;;  %v2962_v55 = vmul.f32 %v2960_v49, %v2960_v49 }
 0xeea   : > { %v2963_v56 = vadd.f32 %v2962_v55, %v2961_v54 }
 0xeec   : > { %2964 = vadd.xlane.f32.xlu0 %v2963_v56 }
 0xf75   : > { %v2965_v4 = vpop.xlane.xlu0 %2964 }
 0xf76   : > { %v2966_v57 = vmul.f32 0.00390625, %v2965_v4 }
 0xf78   : > { %v2967_v58 = vadd.f32 1e-05, %v2966_v57 }
 0xf7a   : > { %3814 = vrsqrt.f32 %v2967_v58 }
 0xf87   : > { %v3815_v61 = vpop.eup %3814 }
 0xf88   : > { %v2969_v0 = vmul.f32 %v3815_v61, %v2959_v53  ;;  %v2970_v1 = vmul.f32 %v3815_v61, %v2960_v49 }
 0xf8a   : > { %v2982_v10 = vmul.f32 %v2975_v60, %v2969_v0  ;;  %v2983_v5 = vmul.f32 %v2979_v52, %v2970_v1 }
 0xf8c   : > { %v2995_v6 = vadd.f32 %v2988_v62, %v2982_v10  ;;  %v2996_v7 = vadd.f32 %v2992_v63, %v2983_v5 }
 0xf8e   : > { %2997 = vst [vmem:[%s393_s21] sm:$0xff] %v2995_v6  ;;  %2998 = vst [vmem:[%s393_s21 + $0x8] sm:$0xff] %v2996_v7 }
 0xf8f PF: > { %s28_s26 = sadd.s32 1, %s3837_s26  }
 0xf90   : > { %p25_p9 = scmp.ge.s32.totalorder %s28_s26, 4  }
 0xf92   :  { %27 = sbr.rel (!%p25_p9) target bundleno = 16 (0x10), region = 94 }

// kernel: bert_classifier_forward.3
= control target key start
LH: loop header
LB: loop body
LE: loop exit
PB: predicated region body
PF: predicated region fallthrough
CT: control target
= control target key end

     0   :  { %s4585_s0 = inlined_call_operand.vmem [shape: s32[2], index: 0, kind: input, shape index: {}]   ;;  %s4586_s1 = inlined_call_operand.vmem [shape: f32[2,8,256], index: 1, kind: input, shape index: {}]   ;;  %s4587_s2 = inlined_call_operand.hbm [shape: bf16[256,768], index: 2, kind: input, shape index: {}]   ;;  %s4588_s3 = inlined_call_operand.hbm [shape: bf16[256,256], index: 3, kind: input, shape index: {}]   ;;  %s4589_s4 = inlined_call_operand.vmem [shape: f32[1,256], index: 4, kind: input, shape index: {}]   ;;  %s4590_s5 = inlined_call_operand.vmem [shape: f32[1,256], index: 5, kind: input, shape index: {}]   ;;  %s4591_s6 = inlined_call_operand.vmem [shape: bf16[256,512], index: 6, kind: input, shape index: {}]   ;;  %s4592_s7 = inlined_call_operand.vmem [shape: f32[1,512], index: 7, kind: input, shape index: {}]   ;;  %s4593_s8 = inlined_call_operand.hbm [shape: bf16[512,256], index: 8, kind: input, shape index: {}]   ;;  %s4594_s9 = inlined_call_operand.vmem [shape: f32[1,256], index: 9, kind: input, shape index: {}]   ;;  %s4595_s10 = inlined_call_operand.vmem [shape: f32[1,256], index: 10, kind: input, shape index: {}]   ;;  %s4596_s11 = inlined_call_operand.vmem [shape: f32[1,256], index: 11, kind: input, shape index: {}]   ;;  %s4597_s12 = inlined_call_operand.vmem [shape: f32[2,8,256], index: 12, kind: output, shape index: {}]  }
   0x1   :  { %s17_s23 = sshll.u32 %s4585_s0, 4  ;;  %s18_s23 = int_to_ptr.vmem [resolvable:$true] %s17_s23 }
   0x2   :  { %s3933_s24 = scalar_lea.vmem %s18_s23, 16  ;;  %p3938_p1 = scmp.lt.s32.totalorder %s18_s23, %s18_s23 }
   0x3   :  { %p3934_p0 = scmp.ne.s32.totalorder %s18_s23, %s3933_s24  ;;  %p3939_p2 = scmp.lt.s32.totalorder %s3933_s24, %s3933_s24 }
   0x5   :  { %p3940_p3 = por %p3939_p2, %p3938_p1 }
   0x7   :  { %p3941_p4 = pnand %p3940_p3, %p3934_p0 }
   0x9   :  { %3944 = shalt.err (!%p3941_p4)  }
   0xa   :  { %s4041_s25 = smov [#allocation3]  }
   0xb   :  { %20 = dma.vmem_to_smem %s18_s23, 16, %s4041_s25, [#allocation2] }
   0xc   :  { %4027 = dma.done.wait [#allocation2], 16 }
   0xd   :  { %4028 = vsyncadd [#allocation2], 4294967280 }
   0xe   :  { %22 = sfence }
   0xf   :  { %23 = vsyncpa [#allocation5], 0 }
  0x10   :  { %24 = vsyncpa [#allocation7], 0  ;;  %s4121_s26 = smov 0  }
  0x11 LB: > { %s4042_s0 = smov [#allocation6]   ;;  %s4127_s28 = sadd.s32 4294967295, %s4039_s26   ;;  %s4039_s26 = sphi %s4121_s26, %s30_s26  }
  0x12   : > { %s322_s27 = sshll.u32 %s4042_s0, 4  ;;  %p3131_p5 = scmp.ge.s32.totalorder %s4039_s26, 1  ;;  %s323_s27 = int_to_ptr.vmem [resolvable:$true] %s322_s27 }
  0x13   : > { %p297_p6 = scmp.lt.s32.totalorder %s4039_s26, 3  ;;  %p3502_p7 = scmp.eq.s32.totalorder %s4127_s28, 0 }
  0x14   : > { %s4043_s30 = smov [#allocation4]   ;;  %s4044_s15 = smov [#allocation8]  }
  0x15   : > { %p4132_p8 = pnand %p3131_p5, %p297_p6  ;;  %s309_s13 = sshll.u32 %s4043_s30, 4  ;;  %s4138_s13 = int_to_ptr.vmem [resolvable:$true] %s309_s13 }
  0x16   : > { %s4146_s16 = sshll.u32 %s4044_s15, 4  ;;  %s3956_s17 = scalar_lea.vmem %s323_s27, 4096  ;;  %s348_s16 = int_to_ptr.vmem [resolvable:$true] %s4146_s16 }
  0x17   : > { %p3492_p9 = pneg %p4132_p8  ;;  %p3957_p12 = scmp.ne.s32.totalorder %s323_s27, %s3956_s17 }
  0x18   : > { %p3964_p1 = scmp.lt.s32.totalorder %s323_s27, %s323_s27  ;;  %p3965_p2 = scmp.lt.s32.totalorder %s3956_s17, %s3956_s17 }
  0x19   : > { %p4142_p10 = pnand %p3502_p7, %p3492_p9 }
  0x1a   : > { %p3966_p3 = por %p3965_p2, %p3964_p1 }
  0x1b   : > { %p3947_p11 = pneg %p4142_p10 }
  0x1d   : > { %p3959_p13 = pnand %p3957_p12, %p3947_p11 }
  0x1f   : > { %p3960_p0 = pneg %p3959_p13 }
  0x21   : > { %p3967_p4 = pnand %p3966_p3, %p3960_p0 }
  0x23   : > { %3970 = shalt.err (!%p3967_p4)
}
  0x24   : > { %s4045_s18 = smov 128   ;;  %s4046_s19 = smov 8  }
  0x25   : > { %3498 = dma.hbm_to_vmem [thread:$0]  (!%p4142_p10), %s4588_s3, 4096, %s323_s27, [#allocation7], %s4045_s18, %s4045_s18, %s4046_s19  }
  0x26   : > { %s3982_s22 = scalar_lea.vmem %s4138_s13, 12288  ;;  %p3990_p12 = scmp.lt.s32.totalorder %s4138_s13, %s4138_s13 }
  0x27   : > { %p3983_p5 = scmp.ne.s32.totalorder %s4138_s13, %s3982_s22  ;;  %p3991_p13 = scmp.lt.s32.totalorder %s3982_s22, %s3982_s22 }
  0x29   : > { %p3985_p6 = pnand %p3983_p5, %p3947_p11  ;;  %p3992_p0 = por %p3991_p13, %p3990_p12 }
  0x2b   : > { %p3986_p9 = pneg %p3985_p6 }
  0x2d   : > { %p3993_p1 = pnand %p3992_p0, %p3986_p9 }
  0x2f   : > { %3996 = shalt.err (!%p3993_p1)
}
  0x30   : > { %s4047_s23 = smov 384   ;;  %s4048_s24 = smov 24  }
  0x31   : > { %3495 = dma.hbm_to_vmem [thread:$0]  (!%p4142_p10), %s4587_s2, 12288, %s4138_s13, [#allocation5], %s4047_s23, %s4047_s23, %s4048_s24  }
  0x32   : > { %s4008_s27 = scalar_lea.vmem %s348_s16, 8192  ;;  %p4016_p5 = scmp.lt.s32.totalorder %s348_s16, %s348_s16 }
  0x33   : > { %p4009_p2 = scmp.ne.s32.totalorder %s348_s16, %s4008_s27  ;;  %p4017_p6 = scmp.lt.s32.totalorder %s4008_s27, %s4008_s27 }
  0x35   : > { %p4011_p3 = pnand %p4009_p2, %p3947_p11  ;;  %p4018_p9 = por %p4017_p6, %p4016_p5 }
  0x37   : > { %p4012_p4 = pneg %p4011_p3 }
  0x39   : > { %p4019_p12 = pnand %p4018_p9, %p4012_p4 }
  0x3b   : > { %4022 = shalt.err (!%p4019_p12)
}
  0x3c   : > { %3501 = dma.hbm_to_vmem [thread:$0]  (!%p4142_p10), %s4593_s8, 8192, %s348_s16, [#allocation7], %s4045_s18, %s4045_s18, %s4046_s19  }
  0x3d   : > { %380 = sbr.rel (%p4132_p8) target bundleno = 4026 (0xfba), region = 64 }
  0x42   : > { %4030 = dma.done.wait (%p3502_p7), [#allocation5], 12288  }
  0x43   : > { %4032 = vsyncadd (%p3502_p7), [#allocation5], 4294955008 }
  0x44   : > { %4034 = dma.done.wait (%p3502_p7), [#allocation7], 12288  }
  0x45   : > { %4036 = vsyncadd (%p3502_p7), [#allocation7], 4294955008  ;;  %v3528_v0 = vld [vmem:[#allocation4 + $0x154] ss:$24 sps:$4 sm:$0xff]   ;;  %v3532_v2 = vld [vmem:[#allocation4 + $0x150] ss:$24 sps:$4 sm:$0xff]  }
  0x46   : > { %v3530_v1 = vld [vmem:[#allocation4 + $0x15c] ss:$24 sps:$4 sm:$0xff]   ;;  %1020 = vmatprep.subr.bf16.mxu0 %v3528_v0  ;;  %v3533_v3 = vld [vmem:[#allocation4 + $0x158] ss:$24 sps:$4 sm:$0xff]   ;;  %v3536_v5 = vld [vmem:[#allocation4 + $0x12c] ss:$24 sps:$4 sm:$0xff]  }
  0x47   : > { %1061 = vmatprep.subr.bf16.mxu1 %v3530_v1  ;;  %v3534_v4 = vld [vmem:[#allocation4 + $0x124] ss:$24 sps:$4 sm:$0xff]   ;;  %1021 = vmatpush1.bf16.msra.mxu0 %v3532_v2  ;;  %v3538_v6 = vld [vmem:[#allocation4 + $0x120] ss:$24 sps:$4 sm:$0xff]   ;;  %v3540_v8 = vld [vmem:[#allocation4 + $0xf4] ss:$24 sps:$4 sm:$0xff]  }
  0x48   : > { %1062 = vmatpush1.bf16.msra.mxu1 %v3533_v3  ;;  %1022 = vmatprep.subr.bf16.mxu0 %v3534_v4  ;;  %v3539_v7 = vld [vmem:[#allocation4 + $0x128] ss:$24 sps:$4 sm:$0xff]   ;;  %v3542_v9 = vld [vmem:[#allocation4 + $0xfc] ss:$24 sps:$4 sm:$0xff]   ;;  %v3545_v11 = vld [vmem:[#allocation4 + $0xf8] ss:$24 sps:$4 sm:$0xff]  }
  0x49   : > { %1063 = vmatprep.subr.bf16.mxu1 %v3536_v5  ;;  %v3544_v10 = vld [vmem:[#allocation4 + $0xf0] ss:$24 sps:$4 sm:$0xff]   ;;  %v3546_v12 = vld [vmem:[#allocation4 + $0xc4] ss:$24 sps:$4 sm:$0xff]   ;;  %v3550_v14 = vld [vmem:[#allocation4 + $0xc0] ss:$24 sps:$4 sm:$0xff]  }
  0x4a   : > { %v3548_v13 = vld [vmem:[#allocation4 + $0xcc] ss:$24 sps:$4 sm:$0xff]   ;;  %v3551_v15 = vld [vmem:[#allocation4 + $0xc8] ss:$24 sps:$4 sm:$0xff]   ;;  %v3554_v17 = vld [vmem:[#allocation4 + $0x9c] ss:$24 sps:$4 sm:$0xff]  }
  0x4b   : > { %1023 = vmatpush1.bf16.msra.mxu0 %v3538_v6  ;;  %v3552_v16 = vld [vmem:[#allocation4 + $0x94] ss:$24 sps:$4 sm:$0xff]   ;;  %v3556_v18 = vld [vmem:[#allocation4 + $0x90] ss:$24 sps:$4 sm:$0xff]   ;;  %v3558_v20 = vld [vmem:[#allocation4 + $0x64] ss:$24 sps:$4 sm:$0xff]  }
  0x4c   : > { %1064 = vmatpush1.bf16.msra.mxu1 %v3539_v7  ;;  %1024 = vmatprep.subr.bf16.mxu0 %v3540_v8  ;;  %v3557_v19 = vld [vmem:[#allocation4 + $0x98] ss:$24 sps:$4 sm:$0xff]   ;;  %v3560_v21 = vld [vmem:[#allocation4 + $0x6c] ss:$24 sps:$4 sm:$0xff]   ;;  %v3563_v23 = vld [vmem:[#allocation4 + $0x68] ss:$24 sps:$4 sm:$0xff]  }
  0x4d   : > { %1065 = vmatprep.subr.bf16.mxu1 %v3542_v9  ;;  %v3562_v22 = vld [vmem:[#allocation4 + $0x60] ss:$24 sps:$4 sm:$0xff]   ;;  %v3564_v24 = vld [vmem:[#allocation4 + $0x34] ss:$24 sps:$4 sm:$0xff]   ;;  %v3568_v26 = vld [vmem:[#allocation4 + $0x30] ss:$24 sps:$4 sm:$0xff]  }
  0x4e   : > { %v3566_v25 = vld [vmem:[#allocation4 + $0x3c] ss:$24 sps:$4 sm:$0xff]   ;;  %v3569_v27 = vld [vmem:[#allocation4 + $0x38] ss:$24 sps:$4 sm:$0xff]   ;;  %v3572_v29 = vld [vmem:[#allocation4 + $0xc] ss:$24 sps:$4 sm:$0xff]  }
  0x4f   : > { %1025 = vmatpush1.bf16.msra.mxu0 %v3544_v10  ;;  %v3570_v28 = vld [vmem:[#allocation4 + $0x4] ss:$24 sps:$4 sm:$0xff]   ;;  %v3574_v30 = vld [vmem:[#allocation4] ss:$24 sps:$4 sm:$0xff]   ;;  %v3576_v32 = vld [vmem:[#allocation4 + $0x2d4] ss:$24 sps:$4 sm:$0xff]  }
  0x50   : > { %1066 = vmatpush1.bf16.msra.mxu1 %v3545_v11  ;;  %1026 = vmatprep.subr.bf16.mxu0 %v3546_v12  ;;  %v3575_v31 = vld [vmem:[#allocation4 + $0x8] ss:$24 sps:$4 sm:$0xff]   ;;  %p428_p7 = scmp.lt.s32.totalorder %s4127_s28, 1  ;;  %v3578_v33 = vld [vmem:[#allocation4 + $0x2dc] ss:$24 sps:$4 sm:$0xff]   ;;  %v4049_v4 = vmov 0.0  }
  0x51   : > { %1067 = vmatprep.subr.bf16.mxu1 %v3548_v13  ;;  %v3580_v34 = vld [vmem:[#allocation4 + $0x2d0] ss:$24 sps:$4 sm:$0xff]   ;;  %v3582_v36 = vld [vmem:[#allocation4 + $0x2a4] ss:$24 sps:$4 sm:$0xff]   ;;  %v3586_v38 = vld [vmem:[#allocation4 + $0x2a0] ss:$24 sps:$4 sm:$0xff]  }
  0x52   : > { %v3581_v35 = vld [vmem:[#allocation4 + $0x2d8] ss:$24 sps:$4 sm:$0xff]   ;;  %s4192_s29 = scalar_select %p428_p7, %s4127_s28, 1  ;;  %v3584_v37 = vld [vmem:[#allocation4 + $0x2ac] ss:$24 sps:$4 sm:$0xff]   ;;  %vm4050_vm0 = vmmov 0  }
  0x53   : > { %1027 = vmatpush1.bf16.msra.mxu0 %v3550_v14  ;;  %v3587_v39 = vld [vmem:[#allocation4 + $0x2a8] ss:$24 sps:$4 sm:$0xff]   ;;  %v3588_v40 = vld [vmem:[#allocation4 + $0x274] ss:$24 sps:$4 sm:$0xff]   ;;  %v3593_v43 = vld [vmem:[#allocation4 + $0x278] ss:$24 sps:$4 sm:$0xff]  }
  0x54   : > { %1068 = vmatpush1.bf16.msra.mxu1 %v3551_v15  ;;  %1028 = vmatprep.subr.bf16.mxu0 %v3552_v16  ;;  %s3414_s13 = sshll.u32 %s4192_s29, 4  ;;  %v3590_v41 = vld [vmem:[#allocation4 + $0x27c] ss:$24 sps:$4 sm:$0xff]   ;;  %v3592_v42 = vld [vmem:[#allocation4 + $0x270] ss:$24 sps:$4 sm:$0xff]   ;;  %vm1183_vm1 = vcmask 523264  }
  0x55   : > { %1069 = vmatprep.subr.bf16.mxu1 %v3554_v17  ;;  %s4200_s17 = scalar_lea.vmem %s4586_s1, %s3414_s13  ;;  %v3594_v44 = vld [vmem:[#allocation4 + $0x244] ss:$24 sps:$4 sm:$0xff]   ;;  %v3598_v46 = vld [vmem:[#allocation4 + $0x240] ss:$24 sps:$4 sm:$0xff]   ;;  %v3600_v49 = vld [vmem:[#allocation4 + $0x214] ss:$24 sps:$4 sm:$0xff]  }
  0x56   : > { %v3596_v45 = vld [vmem:[#allocation4 + $0x24c] ss:$24 sps:$4 sm:$0xff]   ;;  %v3599_v47 = vld [vmem:[#allocation4 + $0x248] ss:$24 sps:$4 sm:$0xff]   ;;  %v3602_v50 = vld [vmem:[#allocation4 + $0x21c] ss:$24 sps:$4 sm:$0xff]  }
  0x57   : > { %1029 = vmatpush1.bf16.msra.mxu0 %v3556_v18  ;;  %v441_v48 = vld [vmem:[%s4200_s17 + $0x8] sm:$0xff]  ;;  %v3605_v53 = vld [vmem:[#allocation4 + $0x218] ss:$24 sps:$4 sm:$0xff]   ;;  %v3606_v54 = vld [vmem:[#allocation4 + $0x1e4] ss:$24 sps:$4 sm:$0xff]   ;;  %s4051_s18 = smov 64  }
  0x58   : > { %1070 = vmatpush1.bf16.msra.mxu1 %v3557_v19  ;;  %1030 = vmatprep.subr.bf16.mxu0 %v3558_v20  ;;  %v443_v51 = vpack.c.bf16 %v441_v48, %v441_v48  ;;  %v3604_v52 = vld [vmem:[#allocation4 + $0x210] ss:$24 sps:$4 sm:$0xff]   ;;  %v3608_v55 = vld [vmem:[#allocation4 + $0x1ec] ss:$24 sps:$4 sm:$0xff]   ;;  %v3610_v56 = vld [vmem:[#allocation4 + $0x1e0] ss:$24 sps:$4 sm:$0xff]  }
  0x59   : > { %1071 = vmatprep.subr.bf16.mxu1 %v3560_v21  ;;  %v3611_v57 = vld [vmem:[#allocation4 + $0x1e8] ss:$24 sps:$4 sm:$0xff]   ;;  %v3612_v58 = vld [vmem:[#allocation4 + $0x1b4] ss:$24 sps:$4 sm:$0xff]   ;;  %v3617_v61 = vld [vmem:[#allocation4 + $0x1b8] ss:$24 sps:$4 sm:$0xff]  }
  0x5a   : > { %1052 = vmatprep.mubr.bf16.mxu0 %v443_v51  ;;  %1093 = vmatprep.mubr.bf16.mxu1 %v443_v51  ;;  %v3614_v59 = vld [vmem:[#allocation4 + $0x1bc] ss:$24 sps:$4 sm:$0xff]   ;;  %v3616_v60 = vld [vmem:[#allocation4 + $0x1b0] ss:$24 sps:$4 sm:$0xff]   ;;  %v3620_v63 = vld [vmem:[#allocation4 + $0x18c] ss:$24 sps:$4 sm:$0xff]  }
  0x5b   : > { %1031 = vmatpush1.bf16.msra.mxu0 %v3562_v22  ;;  %v3618_v62 = vld [vmem:[#allocation4 + $0x184] ss:$24 sps:$4 sm:$0xff]   ;;  %v3622_v0 = vld [vmem:[#allocation4 + $0x180] ss:$24 sps:$4 sm:$0xff]   ;;  %v3629_v19 = vld [vmem:[#allocation4 + $0x134] ss:$24 sps:$4 sm:$0xff]  }
  0x5c   : > { %1072 = vmatpush1.bf16.msra.mxu1 %v3563_v23  ;;  %1032 = vmatprep.subr.bf16.mxu0 %v3564_v24  ;;  %v3623_v1 = vld [vmem:[#allocation4 + $0x188] ss:$24 sps:$4 sm:$0xff]   ;;  %v3626_v18 = vld [vmem:[#allocation4 + $0x164] ss:$24 sps:$4 sm:$0xff]   ;;  %v3635_v23 = vld [vmem:[#allocation4 + $0xd4] ss:$24 sps:$4 sm:$0xff]  }
  0x5d   : > { %1073 = vmatprep.subr.bf16.mxu1 %v3566_v25  ;;  %v4204_v2 = vld [vmem:[%s4200_s17] sm:$0xff]  ;;  %v3627_v20 = vld [vmem:[#allocation4 + $0x130] ss:$24 sps:$4 sm:$0xff]   ;;  %s439_s19 = sld [smem:[#allocation3 + %s4127_s28]]  ;;  %vm1231_vm3 = vcmask 64512   ;;  %vm1247_vm4 = vcmask 1043456  }
  0x5e   : > { %v4208_v3 = vpack.c.bf16 %v4204_v2, %v4204_v2  ;;  %v3624_v17 = vld [vmem:[#allocation4 + $0x160] ss:$24 sps:$4 sm:$0xff]   ;;  %v3632_v21 = vld [vmem:[#allocation4 + $0x104] ss:$24 sps:$4 sm:$0xff]   ;;  %v3633_v24 = vld [vmem:[#allocation4 + $0xd0] ss:$24 sps:$4 sm:$0xff]  }
  0x5f   : > { %1033 = vmatpush1.bf16.msra.mxu0 %v3568_v26  ;;  %v3630_v22 = vld [vmem:[#allocation4 + $0x100] ss:$24 sps:$4 sm:$0xff]   ;;  %v3638_v25 = vld [vmem:[#allocation4 + $0xa4] ss:$24 sps:$4 sm:$0xff]   ;;  %v3669_v48 = vld [vmem:[#allocation4 + $0x190] ss:$24 sps:$4 sm:$0xff]  }
  0x60   : > { %1074 = vmatpush1.bf16.msra.mxu1 %v3569_v27  ;;  %1034 = vmatprep.subr.bf16.mxu0 %v3570_v28  ;;  %v3636_v26 = vld [vmem:[#allocation4 + $0xa0] ss:$24 sps:$4 sm:$0xff]   ;;  %v3641_v27 = vld [vmem:[#allocation4 + $0x74] ss:$24 sps:$4 sm:$0xff]   ;;  %v3639_v28 = vld [vmem:[#allocation4 + $0x70] ss:$24 sps:$4 sm:$0xff]  }
  0x61   : > { %1075 = vmatprep.subr.bf16.mxu1 %v3572_v29  ;;  %v3644_v29 = vld [vmem:[#allocation4 + $0x44] ss:$24 sps:$4 sm:$0xff]  }
  0x63   : > { %1035 = vmatpush1.bf16.msra.mxu0 %v3574_v30  ;;  %v3642_v30 = vld [vmem:[#allocation4 + $0x40] ss:$24 sps:$4 sm:$0xff]  }
  0x64   : > { %1076 = vmatpush1.bf16.msra.mxu1 %v3575_v31  ;;  %1036 = vmatprep.subr.bf16.mxu0 %v3576_v32  ;;  %v3647_v31 = vld [vmem:[#allocation4 + $0x14] ss:$24 sps:$4 sm:$0xff]   ;;  %v3645_v32 = vld [vmem:[#allocation4 + $0x10] ss:$24 sps:$4 sm:$0xff]  }
  0x65   : > { %1077 = vmatprep.subr.bf16.mxu1 %v3578_v33  ;;  %v3650_v33 = vld [vmem:[#allocation4 + $0x2e4] ss:$24 sps:$4 sm:$0xff]  }
  0x67   : > { %1037 = vmatpush2.bf16.msra.mxu0 %v3580_v34  ;;  %v3648_v34 = vld [vmem:[#allocation4 + $0x2e0] ss:$24 sps:$4 sm:$0xff]  }
  0x68   : > { %1078 = vmatpush2.bf16.msra.mxu1 %v3581_v35  ;;  %1038 = vmatprep.subr.bf16.mxu0 %v3582_v36  ;;  %v3653_v35 = vld [vmem:[#allocation4 + $0x2b4] ss:$24 sps:$4 sm:$0xff]   ;;  %v3651_v36 = vld [vmem:[#allocation4 + $0x2b0] ss:$24 sps:$4 sm:$0xff]  }
  0x69   : > { %1079 = vmatprep.subr.bf16.mxu1 %v3584_v37  ;;  %v3656_v37 = vld [vmem:[#allocation4 + $0x284] ss:$24 sps:$4 sm:$0xff]  }
  0x6b   : > { %1039 = vmatpush2.bf16.msra.mxu0 %v3586_v38  ;;  %v3654_v38 = vld [vmem:[#allocation4 + $0x280] ss:$24 sps:$4 sm:$0xff]  }
  0x6c   : > { %1080 = vmatpush2.bf16.msra.mxu1 %v3587_v39  ;;  %1040 = vmatprep.subr.bf16.mxu0 %v3588_v40  ;;  %v3659_v39 = vld [vmem:[#allocation4 + $0x254] ss:$24 sps:$4 sm:$0xff]   ;;  %v3657_v40 = vld [vmem:[#allocation4 + $0x250] ss:$24 sps:$4 sm:$0xff]  }
  0x6d   : > { %1081 = vmatprep.subr.bf16.mxu1 %v3590_v41  ;;  %v3662_v41 = vld [vmem:[#allocation4 + $0x224] ss:$24 sps:$4 sm:$0xff]  }
  0x6f   : > { %1041 = vmatpush2.bf16.msra.mxu0 %v3592_v42  ;;  %v3660_v42 = vld [vmem:[#allocation4 + $0x220] ss:$24 sps:$4 sm:$0xff]  }
  0x70   : > { %1082 = vmatpush2.bf16.msra.mxu1 %v3593_v43  ;;  %1042 = vmatprep.subr.bf16.mxu0 %v3594_v44  ;;  %v3665_v43 = vld [vmem:[#allocation4 + $0x1f4] ss:$24 sps:$4 sm:$0xff]   ;;  %v3663_v44 = vld [vmem:[#allocation4 + $0x1f0] ss:$24 sps:$4 sm:$0xff]  }
  0x71   : > { %1083 = vmatprep.subr.bf16.mxu1 %v3596_v45  ;;  %v3668_v45 = vld [vmem:[#allocation4 + $0x1c4] ss:$24 sps:$4 sm:$0xff]  }
  0x73   : > { %1043 = vmatpush2.bf16.msra.mxu0 %v3598_v46  ;;  %v3666_v46 = vld [vmem:[#allocation4 + $0x1c0] ss:$24 sps:$4 sm:$0xff]  }
  0x74   : > { %1084 = vmatpush2.bf16.msra.mxu1 %v3599_v47  ;;  %1044 = vmatprep.subr.bf16.mxu0 %v3600_v49  ;;  %v3671_v47 = vld [vmem:[#allocation4 + $0x194] ss:$24 sps:$4 sm:$0xff]   ;;  %v1175_v49 = vlaneseq }
  0x75   : > { %1085 = vmatprep.subr.bf16.mxu1 %v3602_v50 }
  0x76   : > { %v1176_v50 = vand.u32 127, %v1175_v49 }
  0x77   : > { %1045 = vmatpush2.bf16.msra.mxu0 %v3604_v52 }
  0x78   : > { %1086 = vmatpush2.bf16.msra.mxu1 %v3605_v53  ;;  %1046 = vmatprep.subr.bf16.mxu0 %v3606_v54 }
  0x79   : > { %1087 = vmatprep.subr.bf16.mxu1 %v3608_v55 }
  0x7b   : > { %1047 = vmatpush2.bf16.msra.mxu0 %v3610_v56 }
  0x7c   : > { %1088 = vmatpush2.bf16.msra.mxu1 %v3611_v57  ;;  %1048 = vmatprep.subr.bf16.mxu0 %v3612_v58 }
  0x7d   : > { %1089 = vmatprep.subr.bf16.mxu1 %v3614_v59 }
  0x7f   : > { %1049 = vmatpush2.bf16.msra.mxu0 %v3616_v60 }
  0x80   : > { %1090 = vmatpush2.bf16.msra.mxu1 %v3617_v61  ;;  %1050 = vmatprep.subr.bf16.mxu0 %v3618_v62 }
  0x81   : > { %1091 = vmatprep.subr.bf16.mxu1 %v3620_v63 }
  0x83   : > { %1051 = vmatpush2.bf16.msra.mxu0 %v3622_v0 }
  0x84   : > { %1092 = vmatpush2.bf16.msra.mxu1 %v3623_v1  ;;  %1102 = vmatprep.subr.bf16.mxu0 %v3626_v18 }
  0x85   : > { %3432 = vmatprep.subr.bf16.mxu1 %v4049_v4 }
  0x86   : > { %1053 = vmatmul.mubr.bf16.vlgmr.msra.gmra.mxu0 %v4208_v3 }
  0x87   : > { %1094 = vmatmul.mubr.bf16.vlgmr.msra.gmra.mxu1 %v4208_v3  ;;  %1134 = vmatprep.mubr.bf16.mxu0 %v443_v51  ;;  %v1177_v51 = vstv %s439_s19 }
  0x88   : > { %3434 = vmatprep.mubr.msk.bf16.mxu1 %vm4050_vm0, %v4049_v4  ;;  %1103 = vmatpush1.bf16.msra.mxu0 %v3624_v17  ;;  %vm4229_vm2 = vcmp.lt.s32.totalorder %v1176_v50, %v1177_v51  ;;  %v3684_v50 = vld [vmem:[#allocation6 + $0x30] ss:$8 sps:$4 sm:$0xff]  }
  0x89   : > { %1104 = vmatprep.subr.bf16.mxu0 %v3629_v19 }
  0x8c   : > { %1105 = vmatpush1.bf16.msra.mxu0 %v3627_v20 }
  0x8d   : > { %1106 = vmatprep.subr.bf16.mxu0 %v3632_v21 }
  0x90   : > { %1107 = vmatpush1.bf16.msra.mxu0 %v3630_v22 }
  0x91   : > { %1108 = vmatprep.subr.bf16.mxu0 %v3635_v23 }
  0x94   : > { %1109 = vmatpush1.bf16.msra.mxu0 %v3633_v24 }
  0x95   : > { %1110 = vmatprep.subr.bf16.mxu0 %v3638_v25 }
  0x98   : > { %1111 = vmatpush1.bf16.msra.mxu0 %v3636_v26 }
  0x99   : > { %1112 = vmatprep.subr.bf16.mxu0 %v3641_v27 }
  0x9c   : > { %1113 = vmatpush1.bf16.msra.mxu0 %v3639_v28 }
  0x9d   : > { %1114 = vmatprep.subr.bf16.mxu0 %v3644_v29 }
  0xa0   : > { %1115 = vmatpush1.bf16.msra.mxu0 %v3642_v30 }
  0xa1   : > { %1116 = vmatprep.subr.bf16.mxu0 %v3647_v31 }
  0xa4   : > { %1117 = vmatpush1.bf16.msra.mxu0 %v3645_v32 }
  0xa5   : > { %1118 = vmatprep.subr.bf16.mxu0 %v3650_v33 }
  0xa8   : > { %1119 = vmatpush2.bf16.msra.mxu0 %v3648_v34  ;;  %v3674_v34 = vld [vmem:[#allocation6 + $0x74] ss:$8 sps:$4 sm:$0xff]  }
  0xa9   : > { %1120 = vmatprep.subr.bf16.mxu0 %v3653_v35 }
  0xac   : > { %1121 = vmatpush2.bf16.msra.mxu0 %v3651_v36 }
  0xad   : > { %1122 = vmatprep.subr.bf16.mxu0 %v3656_v37 }
  0xb0   : > { %1123 = vmatpush2.bf16.msra.mxu0 %v3654_v38  ;;  %v3672_v38 = vld [vmem:[#allocation6 + $0x70] ss:$8 sps:$4 sm:$0xff]  }
  0xb1   : > { %1124 = vmatprep.subr.bf16.mxu0 %v3659_v39 }
  0xb4   : > { %1125 = vmatpush2.bf16.msra.mxu0 %v3657_v40  ;;  %v3677_v40 = vld [vmem:[#allocation6 + $0x64] ss:$8 sps:$4 sm:$0xff]  }
  0xb5   : > { %1126 = vmatprep.subr.bf16.mxu0 %v3662_v41  ;;  %v3675_v41 = vld [vmem:[#allocation6 + $0x60] ss:$8 sps:$4 sm:$0xff]  }
  0xb8   : > { %1127 = vmatpush2.bf16.msra.mxu0 %v3660_v42  ;;  %v3680_v42 = vld [vmem:[#allocation6 + $0x54] ss:$8 sps:$4 sm:$0xff]  }
  0xb9   : > { %1128 = vmatprep.subr.bf16.mxu0 %v3665_v43  ;;  %v3678_v43 = vld [vmem:[#allocation6 + $0x50] ss:$8 sps:$4 sm:$0xff]  }
  0xbc   : > { %1129 = vmatpush2.bf16.msra.mxu0 %v3663_v44  ;;  %v3683_v44 = vld [vmem:[#allocation6 + $0x44] ss:$8 sps:$4 sm:$0xff]  }
  0xbd   : > { %1130 = vmatprep.subr.bf16.mxu0 %v3668_v45  ;;  %v3681_v45 = vld [vmem:[#allocation6 + $0x40] ss:$8 sps:$4 sm:$0xff]  }
  0xc0   : > { %1131 = vmatpush2.bf16.msra.mxu0 %v3666_v46  ;;  %v3686_v46 = vld [vmem:[#allocation6 + $0x34] ss:$8 sps:$4 sm:$0xff]  }
  0xc1   : > { %1132 = vmatprep.subr.bf16.mxu0 %v3671_v47  ;;  %v4052_v47 = vmov 0  }
  0xc4   : > { %1133 = vmatpush2.bf16.msra.mxu0 %v3669_v48 }
  0xc7   : > { %1135 = vmatmul.mubr.bf16.vlgmr.msra.gmra.mxu0 %v4208_v3 }
  0xc8   : > { %1760 = vmatprep.mubr.bf16.mxu0 %v4052_v47 }
 0x146   : > { %v1054_v5 = vpop.f32.mrf.mxu0 }
 0x147   : > { %v1095_v6 = vpop.f32.mrf.mxu1  ;;  %v1179_v7 = vmul.f32 0.125, %v1054_v5 }
 0x148   : > { %v1181_v8 = vpack.c.bf16 %v1095_v6, %v1095_v6  ;;  %v4215_v9 = vpop.f32.mrf.mxu0 }
 0x149   : > { %v4217_v10 = vpop.f32.mrf.mxu1  ;;  %v1180_v11 = vpack.c.bf16 %v1179_v7, %v1179_v7 }
 0x14a   : > { %v1188_v12 = vsel %vm1183_vm1, %v1181_v8, 0  ;;  %1296 = vrot.lane.b32.xlu1 %v1181_v8, %s4051_s18  ;;  %v1058_v13 = vpop.f32.mrf.mxu0 }
 0x14b   : > { %v1099_v14 = vpop.f32.mrf.mxu1  ;;  %3433 = vmatpush3.bf16.xpose.msra.mxu1 %v1188_v12 }
 0x14c   : > { %3438 = vmatprep.subr.bf16.mxu1 %v4049_v4  ;;  %v1059_v15 = vpop.f32.mrf.mxu0 }
 0x14d   : > { %v1100_v16 = vpop.f32.mrf.mxu1 }
 0x14e   : > { %1293 = vrot.lane.b32.xlu1 %v1180_v11, %s4051_s18 }
 0x152   : > { %3435 = vmatmul.mubr.msk.bf16.vlgmr.msra.gmra.mxu1 %vm1183_vm1, %v1180_v11 }
 0x153   : > { %3440 = vmatprep.mubr.msk.bf16.mxu1 %vm4050_vm0, %v4049_v4 }
 0x187   : > { %v1136_v0 = vpop.f32.mrf.mxu0 }
 0x188   : > { %v1182_v1 = vpack.c.bf16 %v1136_v0, %v1136_v0 }
 0x189   : > { %v4237_v3 = vpop.f32.mrf.mxu0 }
 0x18a   : > { %v1249_v5 = vsel %vm1247_vm4, %v1182_v1, 0 }
 0x18b   : > { %v1140_v6 = vpop.f32.mrf.mxu0  ;;  %3439 = vmatpush3.bf16.msra.mxu1 %v1249_v5 }
 0x18c   : > { %3444 = vmatprep.subr.bf16.mxu1 %v4049_v4 }
 0x18d   : > { %v1141_v7 = vpop.f32.mrf.mxu0 }
 0x1bc   : > { %v1297_v13 = vpop.permute.xlu1 %1296 }
 0x1bd   : > { %v1302_v15 = vsel %vm1183_vm1, %v1297_v13, 0 }
 0x1c0   : > { %v1294_v16 = vpop.permute.xlu1 %1293 }
 0x212   : > { %v1224_v53 = vpop.f32.mrf.mxu1 }
 0x213   : > { %v1230_v54 = vsel %vm4229_vm2, %v1224_v53, -1000000.0  ;;  %v3689_v53 = vld [vmem:[#allocation6 + $0x24] ss:$8 sps:$4 sm:$0xff]  }
 0x214   : > { %v3436_v55 = vpop.f32.mrf.mxu1  ;;  %v1232_v56 = vsel %vm1231_vm3, %v1230_v54, -inf }
 0x215   : > { %1233 = vmax.xlane.f32.xlu0 %v1232_v56  ;;  %v3687_v56 = vld [vmem:[#allocation6 + $0x20] ss:$8 sps:$4 sm:$0xff]  }
 0x216   : > { %v1227_v57 = vpop.f32.mrf.mxu1 }
 0x217   : > { %v3692_v57 = vld [vmem:[#allocation6 + $0x14] ss:$8 sps:$4 sm:$0xff]  }
 0x218   : > { %v3437_v58 = vpop.f32.mrf.mxu1 }
 0x29e   : > { %v1234_v59 = vpop.xlane.xlu0 %1233 }
 0x29f   : > { %v1235_v60 = vsub.f32 %v1230_v54, %v1234_v59  ;;  %v3690_v59 = vld [vmem:[#allocation6 + $0x10] ss:$8 sps:$4 sm:$0xff]  }
 0x2a1   : > { %v1236_v61 = vmul.f32 1.442695, %v1235_v60  ;;  %v3695_v60 = vld [vmem:[#allocation6 + $0x4] ss:$8 sps:$4 sm:$0xff]  }
 0x2a3   : > { %3912 = vpow2.f32 %v1236_v61  ;;  %v3693_v61 = vld [vmem:[#allocation6] ss:$8 sps:$4 sm:$0xff]  }
 0x2b0   : > { %v3913_v62 = vpop.eup %3912 }
 0x2b1   : > { %v1238_v63 = vsel %vm1231_vm3, %v3913_v62, 0.0 }
 0x2b2   : > { %1239 = vadd.xlane.f32.xlu0 %v1238_v63 }
 0x33b   : > { %v1240_v8 = vpop.xlane.xlu0 %1239 }
 0x33c   : > { %3914 = vrcp.f32 %v1240_v8 }
 0x349   : > { %v3915_v11 = vpop.eup %3914 }
 0x34a   : > { %v1242_v12 = vmul.f32 %v3915_v11, %v3913_v62  ;;  %v1577_v62 = vpack.c.bf16 %v4217_v10, %v4217_v10  ;;  %v4275_v10 = vpack.c.bf16 %v4237_v3, %v4237_v3 }
 0x34c   : > { %v1243_v14 = vpack.c.bf16 %v1242_v12, %v1242_v12  ;;  %v1583_v0 = vsel %vm1183_vm1, %v1577_v62, 0  ;;  %v1642_v6 = vsel %vm1247_vm4, %v4275_v10, 0 }
 0x34e   : > { %3441 = vmatmul.mubr.msk.bf16.vlgmr.msra.gmra.mxu1 %vm1231_vm3, %v1243_v14 }
 0x34f   : > { %3445 = vmatpush3.bf16.xpose.msra.mxu1 %v1302_v15  ;;  %3446 = vmatprep.mubr.msk.bf16.mxu1 %vm4050_vm0, %v4049_v4 }
 0x350   : > { %3450 = vmatprep.subr.bf16.mxu1 %v4049_v4 }
 0x356   : > { %3447 = vmatmul.mubr.msk.bf16.vlgmr.msra.gmra.mxu1 %vm1183_vm1, %v1294_v16 }
 0x357   : > { %3452 = vmatprep.mubr.msk.bf16.mxu1 %vm4050_vm0, %v4049_v4 }
 0x40e   : > { %v4249_v17 = vpop.f32.mrf.mxu1 }
 0x40f   : > { %v1291_v63 = vpack.c.bf16 %v4249_v17, %v4249_v17 }
 0x410   : > { %v3442_v18 = vpop.f32.mrf.mxu1 }
 0x412   : > { %v1288_v19 = vpop.f32.mrf.mxu1 }
 0x414   : > { %v3443_v20 = vpop.f32.mrf.mxu1 }
 0x416   : > { %v1338_v21 = vpop.f32.mrf.mxu1 }
 0x417   : > { %v1344_v22 = vsel %vm4229_vm2, %v1338_v21, -1000000.0 }
 0x418   : > { %v3448_v23 = vpop.f32.mrf.mxu1  ;;  %v1345_v24 = vsel %vm1231_vm3, %v1344_v22, -inf }
 0x419   : > { %1346 = vmax.xlane.f32.xlu0 %v1345_v24 }
 0x41a   : > { %v1341_v25 = vpop.f32.mrf.mxu1 }
 0x41c   : > { %v3449_v26 = vpop.f32.mrf.mxu1 }
 0x42f   : > { %1358 = vrot.lane.b32.xlu0 %v1182_v1, %s4051_s18  ;;  %v1575_v1 = vmul.f32 0.125, %v4215_v9 }
 0x431   : > { %v1576_v5 = vpack.c.bf16 %v1575_v1, %v1575_v1 }
 0x4a2   : > { %v1347_v27 = vpop.xlane.xlu0 %1346 }
 0x4a3   : > { %v1348_v28 = vsub.f32 %v1344_v22, %v1347_v27 }
 0x4a5   : > { %v1349_v29 = vmul.f32 1.442695, %v1348_v28  ;;  %v3696_v28 = vld [vmem:[#allocation6 + $0xb0] ss:$8 sps:$4 sm:$0xff]  }
 0x4a6   : > { %v1359_v30 = vpop.permute.xlu0 %1358 }
 0x4a7   : > { %3916 = vpow2.f32 %v1349_v29  ;;  %v1364_v31 = vsel %vm1247_vm4, %v1359_v30, 0  ;;  %v3698_v29 = vld [vmem:[#allocation6 + $0xb4] ss:$8 sps:$4 sm:$0xff]   ;;  %v3701_v30 = vld [vmem:[#allocation6 + $0xa4] ss:$8 sps:$4 sm:$0xff]  }
 0x4a8   : > { %3451 = vmatpush3.bf16.msra.mxu1 %v1364_v31  ;;  %1736 = vmatprep.subr.bf16.mxu0 %v3698_v29  ;;  %v3699_v31 = vld [vmem:[#allocation6 + $0xa0] ss:$8 sps:$4 sm:$0xff]  }
 0x4a9   : > { %1458 = vmatprep.subr.bf16.mxu1 %v3674_v34  ;;  %1737 = vmatpush1.bf16.msra.mxu0 %v3696_v28  ;;  %v3707_v34 = vld [vmem:[#allocation6 + $0x84] ss:$8 sps:$4 sm:$0xff]  }
 0x4aa   : > { %1738 = vmatprep.subr.bf16.mxu0 %v3701_v30  ;;  %v3932_v28 = vld [vmem:[%s4200_s17 + $0x8] sm:$0xff] }
 0x4ad   : > { %1739 = vmatpush1.bf16.msra.mxu0 %v3699_v31 }
 0x4b4   : > { %v3917_v32 = vpop.eup %3916 }
 0x4b5   : > { %v1351_v33 = vsel %vm1231_vm3, %v3917_v32, 0.0 }
 0x4b6   : > { %1352 = vadd.xlane.f32.xlu1 %v1351_v33  ;;  %v3702_v33 = vld [vmem:[#allocation6 + $0x90] ss:$8 sps:$4 sm:$0xff]  }
 0x53f   : > { %v1353_v35 = vpop.xlane.xlu1 %1352 }
 0x540   : > { %3918 = vrcp.f32 %v1353_v35  ;;  %v3705_v35 = vld [vmem:[#allocation6 + $0x80] ss:$8 sps:$4 sm:$0xff]  }
 0x54d   : > { %v3919_v36 = vpop.eup %3918 }
 0x54e   : > { %v1355_v37 = vmul.f32 %v3919_v36, %v3917_v32  ;;  %v3704_v32 = vld [vmem:[#allocation6 + $0x94] ss:$8 sps:$4 sm:$0xff]  }
 0x54f   : > { %1740 = vmatprep.subr.bf16.mxu0 %v3704_v32  ;;  %v3720_v32 = vld [vmem:[%s4591_s6 + $0xe0] ss:$16 sps:$4 sm:$0xff]  }
 0x550   : > { %v1356_v39 = vpack.c.bf16 %v1355_v37, %v1355_v37  ;;  %1741 = vmatpush1.bf16.msra.mxu0 %v3702_v33  ;;  %v3722_v33 = vld [vmem:[%s4591_s6 + $0xe4] ss:$16 sps:$4 sm:$0xff]  }
 0x551   : > { %1742 = vmatprep.subr.bf16.mxu0 %v3707_v34  ;;  %v3725_v34 = vld [vmem:[%s4591_s6 + $0xec] ss:$16 sps:$4 sm:$0xff]  }
 0x552   : > { %3453 = vmatmul.mubr.msk.bf16.vlgmr.msra.gmra.mxu1 %vm1231_vm3, %v1356_v39 }
 0x553   : > { %1459 = vmatpush1.bf16.msra.mxu1 %v3672_v38  ;;  %1482 = vmatprep.mubr.bf16.mxu1 %v4052_v47 }
 0x554   : > { %1460 = vmatprep.subr.bf16.mxu1 %v3677_v40  ;;  %1743 = vmatpush1.bf16.msra.mxu0 %v3705_v35  ;;  %v3728_v35 = vld [vmem:[%s4591_s6 + $0xc4] ss:$16 sps:$4 sm:$0xff]  }
 0x557   : > { %1461 = vmatpush1.bf16.msra.mxu1 %v3675_v41 }
 0x558   : > { %1462 = vmatprep.subr.bf16.mxu1 %v3680_v42 }
 0x55b   : > { %1463 = vmatpush1.bf16.msra.mxu1 %v3678_v43 }
 0x55c   : > { %1464 = vmatprep.subr.bf16.mxu1 %v3683_v44 }
 0x55f   : > { %1465 = vmatpush1.bf16.msra.mxu1 %v3681_v45 }
 0x560   : > { %1542 = vmatprep.subr.bf16.mxu1 %v3686_v46 }
 0x612   : > { %v1400_v48 = vpop.f32.mrf.mxu1 }
 0x613   : > { %v1406_v51 = vpack.c.bf16 %v1400_v48, %v1400_v48 }
 0x614   : > { %v3454_v54 = vpop.f32.mrf.mxu1 }
 0x615   : > { %3252 = vmatmul.mubr.msk.bf16.vlgmr.msra.gmra.mxu1 %vm1183_vm1, %v1406_v51 }
 0x616   : > { %1543 = vmatpush1.bf16.msra.mxu1 %v3684_v50  ;;  %v1403_v55 = vpop.f32.mrf.mxu1  ;;  %1566 = vmatprep.mubr.bf16.mxu1 %v4052_v47 }
 0x617   : > { %1544 = vmatprep.subr.bf16.mxu1 %v3689_v53 }
 0x618   : > { %v3455_v58 = vpop.f32.mrf.mxu1 }
 0x61a   : > { %1545 = vmatpush1.bf16.msra.mxu1 %v3687_v56 }
 0x61b   : > { %1546 = vmatprep.subr.bf16.mxu1 %v3692_v57 }
 0x61e   : > { %1547 = vmatpush1.bf16.msra.mxu1 %v3690_v59 }
 0x61f   : > { %1548 = vmatprep.subr.bf16.mxu1 %v3695_v60 }
 0x622   : > { %1549 = vmatpush1.bf16.msra.mxu1 %v3693_v61 }
 0x623   : > { %3456 = vmatprep.subr.bf16.mxu1 %v4049_v4 }
 0x625   : > { %3261 = vmatmul.mubr.msk.bf16.vlgmr.msra.gmra.mxu1 %vm1183_vm1, %v1291_v63  ;;  %v3708_v63 = vld [vmem:[#allocation6 + $0xf0] ss:$8 sps:$4 sm:$0xff]  }
 0x626   : > { %3457 = vmatpush3.bf16.xpose.msra.mxu1 %v1583_v0  ;;  %3458 = vmatprep.mubr.msk.bf16.mxu1 %vm4050_vm0, %v4049_v4  ;;  %v3710_v0 = vld [vmem:[#allocation6 + $0xf4] ss:$8 sps:$4 sm:$0xff]  }
 0x627   : > { %3462 = vmatprep.subr.bf16.mxu1 %v4049_v4  ;;  %1937 = vmatprep.subr.bf16.mxu0 %v3710_v0  ;;  %v3773_v0 = vld [vmem:[%s4591_s6 + $0x1ec] ss:$16 sps:$4 sm:$0xff]  }
 0x62d   : > { %3459 = vmatmul.mubr.msk.bf16.vlgmr.msra.gmra.mxu1 %vm1183_vm1, %v1576_v5 }
 0x62e   : > { %3463 = vmatpush3.bf16.msra.mxu1 %v1642_v6  ;;  %3464 = vmatprep.mubr.msk.bf16.mxu1 %vm4050_vm0, %v4049_v4 }
 0x62f   : > { %3468 = vmatprep.subr.bf16.mxu1 %v4049_v4 }
 0x6d5   : > { %v1484_v7 = vpop.f32.mrf.mxu1 }
 0x6d7   : > { %v1486_v9 = vpop.f32.mrf.mxu1 }
 0x6d9   : > { %v1488_v8 = vpop.f32.mrf.mxu1 }
 0x6db   : > { %v1489_v11 = vpop.f32.mrf.mxu1 }
 0x6dc   : > { %v3714_v11 = vld [vmem:[#allocation6 + $0xd0] ss:$8 sps:$4 sm:$0xff]  }
 0x6e5   : > { %v1568_v12 = vpop.f32.mrf.mxu1 }
 0x6e6   : > { %v4283_v13 = vadd.f32 %v1568_v12, %v1484_v7  ;;  %v3711_v7 = vld [vmem:[#allocation6 + $0xe0] ss:$8 sps:$4 sm:$0xff]   ;;  %v3719_v12 = vld [vmem:[#allocation6 + $0xc4] ss:$8 sps:$4 sm:$0xff]  }
 0x6e7   : > { %v1570_v3 = vpop.f32.mrf.mxu1 }
 0x6e8   : > { %v4285_v14 = vadd.f32 %v1570_v3, %v1486_v9  ;;  %v3716_v9 = vld [vmem:[#allocation6 + $0xd4] ss:$8 sps:$4 sm:$0xff]   ;;  %v3717_v3 = vld [vmem:[#allocation6 + $0xc0] ss:$8 sps:$4 sm:$0xff]  }
 0x6e9   : > { %v1572_v15 = vpop.f32.mrf.mxu1 }
 0x6eb   : > { %v1573_v16 = vpop.f32.mrf.mxu1 }
 0x6ed   : > { %v1619_v17 = vpop.f32.mrf.mxu1 }
 0x6ee   : > { %v1625_v18 = vsel %vm4229_vm2, %v1619_v17, -1000000.0 }
 0x6ef   : > { %v3460_v19 = vpop.f32.mrf.mxu1  ;;  %v1626_v20 = vsel %vm1231_vm3, %v1625_v18, -inf }
 0x6f0   : > { %1627 = vmax.xlane.f32.xlu0 %v1626_v20 }
 0x6f1   : > { %v1622_v21 = vpop.f32.mrf.mxu1 }
 0x6f3   : > { %v3461_v22 = vpop.f32.mrf.mxu1 }
 0x706   : > { %1772 = vrot.lane.b32.xlu0 %v1576_v5, %s4051_s18  ;;  %v3713_v5 = vld [vmem:[#allocation6 + $0xe4] ss:$8 sps:$4 sm:$0xff]  }
 0x779   : > { %v1628_v23 = vpop.xlane.xlu0 %1627 }
 0x77a   : > { %v1629_v24 = vsub.f32 %v1625_v18, %v1628_v23 }
 0x77c   : > { %v1630_v25 = vmul.f32 1.442695, %v1629_v24 }
 0x77d   : > { %v1773_v42 = vpop.permute.xlu0 %1772 }
 0x77e   : > { %3920 = vpow2.f32 %v1630_v25 }
 0x78b   : > { %v3921_v26 = vpop.eup %3920 }
 0x78c   : > { %v1632_v27 = vsel %vm1231_vm3, %v3921_v26, 0.0 }
 0x78d   : > { %1633 = vadd.xlane.f32.xlu1 %v1632_v27 }
 0x79e   : > { %1775 = vrot.lane.b32.xlu1 %v1577_v62, %s4051_s18 }
 0x816   : > { %v1634_v36 = vpop.xlane.xlu1 %1633 }
 0x817   : > { %3922 = vrcp.f32 %v1634_v36  ;;  %v3731_v36 = vld [vmem:[%s4591_s6 + $0xcc] ss:$16 sps:$4 sm:$0xff]  }
 0x81a   : > { %v1776_v39 = vpop.permute.xlu1 %1775 }
 0x81b   : > { %v1781_v41 = vsel %vm1183_vm1, %v1776_v39, 0  ;;  %v3734_v39 = vld [vmem:[%s4591_s6 + $0xa4] ss:$16 sps:$4 sm:$0xff]  }
 0x824   : > { %v3923_v37 = vpop.eup %3922 }
 0x825   : > { %v1636_v38 = vmul.f32 %v3923_v37, %v3921_v26  ;;  %v3726_v37 = vld [vmem:[%s4591_s6 + $0xc0] ss:$16 sps:$4 sm:$0xff]  }
 0x827   : > { %v1637_v40 = vpack.c.bf16 %v1636_v38, %v1636_v38  ;;  %v3729_v38 = vld [vmem:[%s4591_s6 + $0xc8] ss:$16 sps:$4 sm:$0xff]  }
 0x829   : > { %3465 = vmatmul.mubr.msk.bf16.vlgmr.msra.gmra.mxu1 %vm1231_vm3, %v1637_v40  ;;  %v3737_v40 = vld [vmem:[%s4591_s6 + $0xac] ss:$16 sps:$4 sm:$0xff]  }
 0x82a   : > { %3469 = vmatpush3.bf16.xpose.msra.mxu1 %v1781_v41  ;;  %3470 = vmatprep.mubr.msk.bf16.mxu1 %vm4050_vm0, %v4049_v4  ;;  %v3732_v41 = vld [vmem:[%s4591_s6 + $0xa0] ss:$16 sps:$4 sm:$0xff]  }
 0x82b   : > { %3474 = vmatprep.subr.bf16.mxu1 %v4049_v4 }
 0x831   : > { %3471 = vmatmul.mubr.msk.bf16.vlgmr.msra.gmra.mxu1 %vm1183_vm1, %v1773_v42  ;;  %v3735_v42 = vld [vmem:[%s4591_s6 + $0xa8] ss:$16 sps:$4 sm:$0xff]  }
 0x832   : > { %3476 = vmatprep.mubr.msk.bf16.mxu1 %vm4050_vm0, %v4049_v4 }
 0x8e9   : > { %v1678_v43 = vpop.f32.mrf.mxu1 }
 0x8ea   : > { %v1684_v44 = vpack.c.bf16 %v1678_v43, %v1678_v43  ;;  %v3740_v43 = vld [vmem:[%s4591_s6 + $0x84] ss:$16 sps:$4 sm:$0xff]  }
 0x8eb   : > { %v3466_v45 = vpop.f32.mrf.mxu1 }
 0x8ec   : > { %3272 = vmatmul.mubr.msk.bf16.vlgmr.msra.gmra.mxu0 %vm1183_vm1, %v1684_v44  ;;  %v3743_v44 = vld [vmem:[%s4591_s6 + $0x8c] ss:$16 sps:$4 sm:$0xff]   ;;  %v3738_v45 = vld [vmem:[%s4591_s6 + $0x80] ss:$16 sps:$4 sm:$0xff]  }
 0x8ed   : > { %v1681_v46 = vpop.f32.mrf.mxu1  ;;  %1961 = vmatprep.mubr.bf16.mxu0 %v4052_v47  ;;  %1938 = vmatpush1.bf16.msra.mxu0 %v3708_v63  ;;  %v3770_v63 = vld [vmem:[%s4591_s6 + $0x1e4] ss:$16 sps:$4 sm:$0xff]  }
 0x8ee   : > { %1939 = vmatprep.subr.bf16.mxu0 %v3713_v5  ;;  %v3741_v46 = vld [vmem:[%s4591_s6 + $0x88] ss:$16 sps:$4 sm:$0xff]  }
 0x8ef   : > { %v3467_v48 = vpop.f32.mrf.mxu1  ;;  %v3771_v5 = vld [vmem:[%s4591_s6 + $0x1e8] ss:$16 sps:$4 sm:$0xff]  }
 0x8f0   : > { %v3746_v48 = vld [vmem:[%s4591_s6 + $0x64] ss:$16 sps:$4 sm:$0xff]  }
 0x8f1   : > { %v1817_v50 = vpop.f32.mrf.mxu1  ;;  %1940 = vmatpush1.bf16.msra.mxu0 %v3711_v7  ;;  %v3774_v7 = vld [vmem:[%s4591_s6 + $0x1c0] ss:$16 sps:$4 sm:$0xff]  }
 0x8f2   : > { %v1823_v51 = vsel %vm4229_vm2, %v1817_v50, -1000000.0  ;;  %1941 = vmatprep.subr.bf16.mxu0 %v3716_v9  ;;  %v3749_v50 = vld [vmem:[%s4591_s6 + $0x6c] ss:$16 sps:$4 sm:$0xff]   ;;  %v3777_v9 = vld [vmem:[%s4591_s6 + $0x1c8] ss:$16 sps:$4 sm:$0xff]  }
 0x8f3   : > { %v3472_v53 = vpop.f32.mrf.mxu1  ;;  %v1824_v54 = vsel %vm1231_vm3, %v1823_v51, -inf }
 0x8f4   : > { %1825 = vmax.xlane.f32.xlu1 %v1824_v54  ;;  %v3747_v53 = vld [vmem:[%s4591_s6 + $0x68] ss:$16 sps:$4 sm:$0xff]   ;;  %v3752_v54 = vld [vmem:[%s4591_s6 + $0x44] ss:$16 sps:$4 sm:$0xff]  }
 0x8f5   : > { %v1820_v55 = vpop.f32.mrf.mxu1  ;;  %1942 = vmatpush1.bf16.msra.mxu0 %v3714_v11 }
 0x8f6   : > { %1943 = vmatprep.subr.bf16.mxu0 %v3719_v12  ;;  %v3755_v55 = vld [vmem:[%s4591_s6 + $0x4c] ss:$16 sps:$4 sm:$0xff]  }
 0x8f7   : > { %v3473_v56 = vpop.f32.mrf.mxu1 }
 0x8f8   : > { %v3750_v56 = vld [vmem:[%s4591_s6 + $0x40] ss:$16 sps:$4 sm:$0xff]  }
 0x8f9   : > { %1944 = vmatpush1.bf16.msra.mxu0 %v3717_v3 }
 0x8fa   : > { %2468 = vmatprep.subr.bf16.mxu0 %v3725_v34  ;;  %v3807_v34 = vld [vmem:[%s4591_s6 + $0x128] ss:$16 sps:$4 sm:$0xff]  }
 0x905   : > { %1837 = vrot.lane.b32.xlu1 %v4275_v10, %s4051_s18  ;;  %s437_s18 = scalar_lea.vmem %s4597_s12, %s3414_s13 }
 0x97d   : > { %v1826_v4 = vpop.xlane.xlu1 %1825 }
 0x97e   : > { %v1827_v57 = vsub.f32 %v1823_v51, %v1826_v4  ;;  %v3744_v51 = vld [vmem:[%s4591_s6 + $0x60] ss:$16 sps:$4 sm:$0xff]   ;;  %v3753_v4 = vld [vmem:[%s4591_s6 + $0x48] ss:$16 sps:$4 sm:$0xff]  }
 0x980   : > { %v1828_v58 = vmul.f32 1.442695, %v1827_v57  ;;  %v3758_v57 = vld [vmem:[%s4591_s6 + $0x24] ss:$16 sps:$4 sm:$0xff]  }
 0x981   : > { %v1838_v59 = vpop.permute.xlu1 %1837 }
 0x982   : > { %3924 = vpow2.f32 %v1828_v58  ;;  %v1843_v47 = vsel %vm1247_vm4, %v1838_v59, 0  ;;  %v3761_v58 = vld [vmem:[%s4591_s6 + $0x2c] ss:$16 sps:$4 sm:$0xff]   ;;  %v3756_v59 = vld [vmem:[%s4591_s6 + $0x20] ss:$16 sps:$4 sm:$0xff]  }
 0x983   : > { %3475 = vmatpush3.bf16.msra.mxu1 %v1843_v47  ;;  %v3759_v47 = vld [vmem:[%s4591_s6 + $0x28] ss:$16 sps:$4 sm:$0xff]  }
 0x984   : > { %2427 = vmatprep.subr.bf16.mxu1 %v3722_v33  ;;  %v3809_v33 = vld [vmem:[%s4591_s6 + $0x12c] ss:$16 sps:$4 sm:$0xff]  }
 0x98f   : > { %v3925_v60 = vpop.eup %3924 }
 0x990   : > { %v1830_v52 = vsel %vm1231_vm3, %v3925_v60, 0.0 }
 0x991   : > { %1831 = vadd.xlane.f32.xlu0 %v1830_v52  ;;  %v3767_v52 = vld [vmem:[%s4591_s6 + $0xc] ss:$16 sps:$4 sm:$0xff]  }
 0x9ac   : > { %v1762_v61 = vpop.f32.mrf.mxu0 }
 0x9ad   : > { %v1769_v62 = vadd.f32 %v1762_v61, %v4283_v13  ;;  %v3762_v61 = vld [vmem:[%s4591_s6] ss:$16 sps:$4 sm:$0xff]  }
 0x9ae   : > { %v1764_v1 = vpop.f32.mrf.mxu0 }
 0x9af   : > { %v1770_v10 = vadd.f32 %v1764_v1, %v4285_v14  ;;  %v3768_v1 = vld [vmem:[%s4591_s6 + $0x1e0] ss:$16 sps:$4 sm:$0xff]  }
 0x9b0   : > { %v1766_v6 = vpop.f32.mrf.mxu0 }
 0x9b1   : > { %v3779_v6 = vld [vmem:[%s4591_s6 + $0x1cc] ss:$16 sps:$4 sm:$0xff]  }
 0x9b2   : > { %v1767_v8 = vpop.f32.mrf.mxu0 }
 0xa1a   : > { %v1832_v13 = vpop.xlane.xlu0 %1831 }
 0xa1b   : > { %3926 = vrcp.f32 %v1832_v13 }
 0xa28   : > { %v3927_v15 = vpop.eup %3926 }
 0xa29   : > { %v1834_v14 = vmul.f32 %v3927_v15, %v3925_v60  ;;  %v3764_v60 = vld [vmem:[%s4591_s6 + $0x4] ss:$16 sps:$4 sm:$0xff]  }
 0xa2b   : > { %v1835_v16 = vpack.c.bf16 %v1834_v14, %v1834_v14 }
 0xa2d   : > { %3477 = vmatmul.mubr.msk.bf16.vlgmr.msra.gmra.mxu1 %vm1231_vm3, %v1835_v16  ;;  %v3782_v16 = vld [vmem:[%s4591_s6 + $0x1a4] ss:$16 sps:$4 sm:$0xff]  }
 0xa2e   : > { %2428 = vmatpush1.bf16.msra.mxu1 %v3720_v32  ;;  %v3806_v32 = vld [vmem:[%s4591_s6 + $0x124] ss:$16 sps:$4 sm:$0xff]  }
 0xa2f   : > { %2429 = vmatprep.subr.bf16.mxu1 %v3728_v35  ;;  %v3812_v35 = vld [vmem:[%s4591_s6 + $0x104] ss:$16 sps:$4 sm:$0xff]  }
 0xa32   : > { %2430 = vmatpush1.bf16.msra.mxu1 %v3726_v37  ;;  %v3810_v37 = vld [vmem:[%s4591_s6 + $0x100] ss:$16 sps:$4 sm:$0xff]  }
 0xa33   : > { %2431 = vmatprep.subr.bf16.mxu1 %v3734_v39  ;;  %v3818_v39 = vld [vmem:[#allocation8 + $0x74] ss:$8 sps:$4 sm:$0xff]  }
 0xa36   : > { %2432 = vmatpush1.bf16.msra.mxu1 %v3732_v41 }
 0xa37   : > { %2433 = vmatprep.subr.bf16.mxu1 %v3740_v43 }
 0xa3a   : > { %2434 = vmatpush1.bf16.msra.mxu1 %v3738_v45 }
 0xa3b   : > { %2435 = vmatprep.subr.bf16.mxu1 %v3746_v48  ;;  %v1974_v48 = vld [vmem:[%s4589_s4] sm:$0x3] }
 0xa3e   : > { %2436 = vmatpush1.bf16.msra.mxu1 %v3744_v51 }
 0xa3f   : > { %2437 = vmatprep.subr.bf16.mxu1 %v3752_v54 }
 0xa42   : > { %2438 = vmatpush1.bf16.msra.mxu1 %v3750_v56 }
 0xa43   : > { %2439 = vmatprep.subr.bf16.mxu1 %v3758_v57 }
 0xa46   : > { %2440 = vmatpush1.bf16.msra.mxu1 %v3756_v59 }
 0xa47   : > { %2441 = vmatprep.subr.bf16.mxu1 %v3764_v60 }
 0xa4a   : > { %2442 = vmatpush1.bf16.msra.mxu1 %v3762_v61  ;;  %v3816_v61 = vld [vmem:[#allocation8 + $0x70] ss:$8 sps:$4 sm:$0xff]  }
 0xa4b   : > { %2443 = vmatprep.subr.bf16.mxu1 %v3770_v63  ;;  %v3824_v63 = vld [vmem:[#allocation8 + $0x64] ss:$8 sps:$4 sm:$0xff]  }
 0xa4e   : > { %2444 = vmatpush2.bf16.msra.mxu1 %v3768_v1  ;;  %v3822_v1 = vld [vmem:[#allocation8 + $0x60] ss:$8 sps:$4 sm:$0xff]  }
 0xaed   : > { %v1879_v17 = vpop.f32.mrf.mxu1 }
 0xaee   : > { %v1885_v18 = vpack.c.bf16 %v1879_v17, %v1879_v17  ;;  %v3785_v17 = vld [vmem:[%s4591_s6 + $0x1ac] ss:$16 sps:$4 sm:$0xff]  }
 0xaef   : > { %v3478_v19 = vpop.f32.mrf.mxu1 }
 0xaf0   : > { %3283 = vmatmul.mubr.msk.bf16.vlgmr.msra.gmra.mxu0 %vm1183_vm1, %v1885_v18  ;;  %v3780_v18 = vld [vmem:[%s4591_s6 + $0x1a0] ss:$16 sps:$4 sm:$0xff]   ;;  %v3783_v19 = vld [vmem:[%s4591_s6 + $0x1a8] ss:$16 sps:$4 sm:$0xff]  }
 0xaf1   : > { %v1882_v20 = vpop.f32.mrf.mxu1 }
 0xaf2   : > { %v3788_v20 = vld [vmem:[%s4591_s6 + $0x184] ss:$16 sps:$4 sm:$0xff]  }
 0xaf3   : > { %v3479_v21 = vpop.f32.mrf.mxu1 }
 0xaf4   : > { %v3786_v21 = vld [vmem:[%s4591_s6 + $0x180] ss:$16 sps:$4 sm:$0xff]  }
 0xbb0   : > { %v1963_v22 = vpop.f32.mrf.mxu0 }
 0xbb1   : > { %v1970_v23 = vadd.f32 %v1963_v22, %v1769_v62  ;;  %v3765_v62 = vld [vmem:[%s4591_s6 + $0x8] ss:$16 sps:$4 sm:$0xff]  }
 0xbb2   : > { %v1965_v24 = vpop.f32.mrf.mxu0  ;;  %v3789_v22 = vld [vmem:[%s4591_s6 + $0x188] ss:$16 sps:$4 sm:$0xff]  }
 0xbb3   : > { %v1971_v25 = vadd.f32 %v1965_v24, %v1770_v10  ;;  %v4315_v27 = vadd.f32 %v1970_v23, %v4204_v2  ;;  %v3723_v2 = vld [vmem:[%s4591_s6 + $0xe8] ss:$16 sps:$4 sm:$0xff]   ;;  %v3776_v10 = vld [vmem:[%s4591_s6 + $0x1c4] ss:$16 sps:$4 sm:$0xff]   ;;  %v3791_v23 = vld [vmem:[%s4591_s6 + $0x18c] ss:$16 sps:$4 sm:$0xff]  }
 0xbb4   : > { %v1967_v26 = vpop.f32.mrf.mxu0  ;;  %2469 = vmatpush1.bf16.msra.mxu0 %v3723_v2  ;;  %2445 = vmatprep.subr.bf16.mxu1 %v3776_v10  ;;  %v3794_v24 = vld [vmem:[%s4591_s6 + $0x164] ss:$16 sps:$4 sm:$0xff]   ;;  %v3804_v2 = vld [vmem:[%s4591_s6 + $0x120] ss:$16 sps:$4 sm:$0xff]  }
 0xbb5   : > { %v4318_v29 = vadd.f32 %v3932_v28, %v1971_v25  ;;  %2470 = vmatprep.subr.bf16.mxu0 %v3731_v36  ;;  %2446 = vmatpush2.bf16.msra.mxu1 %v3774_v7  ;;  %v3797_v25 = vld [vmem:[%s4591_s6 + $0x16c] ss:$16 sps:$4 sm:$0xff]   ;;  %v3792_v26 = vld [vmem:[%s4591_s6 + $0x160] ss:$16 sps:$4 sm:$0xff]   ;;  %v3800_v28 = vld [vmem:[%s4591_s6 + $0x144] ss:$16 sps:$4 sm:$0xff]  }
 0xbb6   : > { %v1968_v30 = vpop.f32.mrf.mxu0  ;;  %2447 = vmatprep.subr.bf16.mxu1 %v3782_v16  ;;  %v3815_v36 = vld [vmem:[%s4591_s6 + $0x10c] ss:$16 sps:$4 sm:$0xff]   ;;  %v3828_v7 = vld [vmem:[#allocation8 + $0x50] ss:$8 sps:$4 sm:$0xff]  }
 0xbb7   : > { %v1976_v31 = vadd.f32 %v4318_v29, %v4315_v27  ;;  %v3798_v30 = vld [vmem:[%s4591_s6 + $0x140] ss:$16 sps:$4 sm:$0xff]   ;;  %v3830_v10 = vld [vmem:[#allocation8 + $0x54] ss:$8 sps:$4 sm:$0xff]  }
 0xbb8   : > { %2471 = vmatpush1.bf16.msra.mxu0 %v3729_v38  ;;  %v3813_v38 = vld [vmem:[%s4591_s6 + $0x108] ss:$16 sps:$4 sm:$0xff]  }
 0xbb9   : > { %1977 = vadd.xlane.f32.xlu0 %v1976_v31  ;;  %2472 = vmatprep.subr.bf16.mxu0 %v3737_v40  ;;  %v3801_v31 = vld [vmem:[%s4591_s6 + $0x148] ss:$16 sps:$4 sm:$0xff]   ;;  %v3821_v40 = vld [vmem:[#allocation8 + $0x174] ss:$8 sps:$4 sm:$0xff]  }
 0xbba   : > { %2448 = vmatpush2.bf16.msra.mxu1 %v3780_v18  ;;  %v3843_v16 = vld [vmem:[#allocation8 + $0x130] ss:$8 sps:$4 sm:$0xff]   ;;  %v3851_v18 = vld [vmem:[#allocation8 + $0x124] ss:$8 sps:$4 sm:$0xff]  }
 0xbbb   : > { %2449 = vmatprep.subr.bf16.mxu1 %v3788_v20  ;;  %v3849_v20 = vld [vmem:[#allocation8 + $0x120] ss:$8 sps:$4 sm:$0xff]  }
 0xbbc   : > { %2473 = vmatpush1.bf16.msra.mxu0 %v3735_v42 }
 0xbbd   : > { %2474 = vmatprep.subr.bf16.mxu0 %v3743_v44  ;;  %v4525_v44 = vshrl.u32 %v1175_v49, 7 }
 0xbbe   : > { %2450 = vmatpush2.bf16.msra.mxu1 %v3786_v21  ;;  %v3854_v21 = vld [vmem:[#allocation8 + $0x14] ss:$8 sps:$4 sm:$0xff]  }
 0xbbf   : > { %2451 = vmatprep.subr.bf16.mxu1 %v3794_v24  ;;  %v4528_v45 = vsub.s32 0, %v4525_v44  ;;  %v3855_v24 = vld [vmem:[#allocation8 + $0x110] ss:$8 sps:$4 sm:$0xff]  }
 0xbc0   : > { %2475 = vmatpush1.bf16.msra.mxu0 %v3741_v46  ;;  %v4531_v46 = vsub.s32 1, %v4525_v44 }
 0xbc1   : > { %2476 = vmatprep.subr.bf16.mxu0 %v3749_v50  ;;  %v1975_v50 = vld [vmem:[%s4590_s5] sm:$0x3]  ;;  %v1997_v51 = vrot.slane %v1974_v48, %v4528_v45 }
 0xbc2   : > { %2452 = vmatpush2.bf16.msra.mxu1 %v3792_v26  ;;  %v2014_v56 = vrot.slane %v1975_v50, %v4531_v46  ;;  %v3863_v26 = vld [vmem:[#allocation8 + $0x104] ss:$8 sps:$4 sm:$0xff]  }
 0xbc3   : > { %2453 = vmatprep.subr.bf16.mxu1 %v3800_v28  ;;  %v3861_v28 = vld [vmem:[#allocation8 + $0x100] ss:$8 sps:$4 sm:$0xff]  }
 0xbc4   : > { %2477 = vmatpush1.bf16.msra.mxu0 %v3747_v53  ;;  %v2001_v53 = vrot.slane %v1974_v48, %v4531_v46  ;;  %v3890_v48 = vld [vmem:[#allocation8 + $0xb4] ss:$8 sps:$4 sm:$0xff]  }
 0xbc5   : > { %2478 = vmatprep.subr.bf16.mxu0 %v3755_v55  ;;  %v2010_v55 = vrot.slane %v1975_v50, %v4528_v45  ;;  %v3893_v50 = vld [vmem:[#allocation8 + $0x1b4] ss:$8 sps:$4 sm:$0xff]  }
 0xbc6   : > { %2454 = vmatpush2.bf16.msra.mxu1 %v3798_v30  ;;  %v3869_v30 = vld [vmem:[#allocation8 + $0x1f4] ss:$8 sps:$4 sm:$0xff]  }
 0xbc7   : > { %2455 = vmatprep.subr.bf16.mxu1 %v3806_v32  ;;  %v3867_v32 = vld [vmem:[#allocation8 + $0x1f0] ss:$8 sps:$4 sm:$0xff]  }
 0xbc8   : > { %2479 = vmatpush1.bf16.msra.mxu0 %v3753_v4 }
 0xbc9   : > { %2480 = vmatprep.subr.bf16.mxu0 %v3761_v58 }
 0xbca   : > { %2456 = vmatpush2.bf16.msra.mxu1 %v3804_v2  ;;  %v3875_v2 = vld [vmem:[#allocation8 + $0x1e4] ss:$8 sps:$4 sm:$0xff]  }
 0xbcb   : > { %2457 = vmatprep.subr.bf16.mxu1 %v3812_v35  ;;  %v3873_v35 = vld [vmem:[#allocation8 + $0x1e0] ss:$8 sps:$4 sm:$0xff]  }
 0xbcc   : > { %2481 = vmatpush1.bf16.msra.mxu0 %v3759_v47 }
 0xbcd   : > { %2482 = vmatprep.subr.bf16.mxu0 %v3767_v52 }
 0xbce   : > { %2458 = vmatpush2.bf16.msra.mxu1 %v3810_v37  ;;  %v3881_v37 = vld [vmem:[#allocation8 + $0x1d4] ss:$8 sps:$4 sm:$0xff]  }
 0xbcf   : > { %2913 = vmatprep.subr.bf16.mxu1 %v3818_v39  ;;  %v3879_v39 = vld [vmem:[#allocation8 + $0x1d0] ss:$8 sps:$4 sm:$0xff]  }
 0xbd0   : > { %2483 = vmatpush1.bf16.msra.mxu0 %v3765_v62  ;;  %v3819_v62 = vld [vmem:[#allocation8 + $0x170] ss:$8 sps:$4 sm:$0xff]  }
 0xbd1   : > { %2484 = vmatprep.subr.bf16.mxu0 %v3773_v0  ;;  %v3827_v0 = vld [vmem:[#allocation8 + $0x164] ss:$8 sps:$4 sm:$0xff]  }
 0xbd4   : > { %2485 = vmatpush2.bf16.msra.mxu0 %v3771_v5  ;;  %v3825_v5 = vld [vmem:[#allocation8 + $0x160] ss:$8 sps:$4 sm:$0xff]  }
 0xbd5   : > { %2486 = vmatprep.subr.bf16.mxu0 %v3779_v6  ;;  %v3833_v6 = vld [vmem:[#allocation8 + $0x154] ss:$8 sps:$4 sm:$0xff]  }
 0xbd8   : > { %2487 = vmatpush2.bf16.msra.mxu0 %v3777_v9  ;;  %v3831_v9 = vld [vmem:[#allocation8 + $0x150] ss:$8 sps:$4 sm:$0xff]  }
 0xbd9   : > { %2488 = vmatprep.subr.bf16.mxu0 %v3785_v17  ;;  %v3848_v17 = vld [vmem:[#allocation8 + $0x24] ss:$8 sps:$4 sm:$0xff]  }
 0xbdc   : > { %2489 = vmatpush2.bf16.msra.mxu0 %v3783_v19  ;;  %v3846_v19 = vld [vmem:[#allocation8 + $0x20] ss:$8 sps:$4 sm:$0xff]  }
 0xbdd   : > { %2490 = vmatprep.subr.bf16.mxu0 %v3791_v23  ;;  %v3852_v23 = vld [vmem:[#allocation8 + $0x10] ss:$8 sps:$4 sm:$0xff]  }
 0xbe0   : > { %2491 = vmatpush2.bf16.msra.mxu0 %v3789_v22  ;;  %v3857_v22 = vld [vmem:[#allocation8 + $0x114] ss:$8 sps:$4 sm:$0xff]  }
 0xbe1   : > { %2492 = vmatprep.subr.bf16.mxu0 %v3797_v25  ;;  %v3860_v25 = vld [vmem:[#allocation8 + $0x4] ss:$8 sps:$4 sm:$0xff]  }
 0xc42   : > { %v1978_v8 = vpop.xlane.xlu0 %1977 }
 0xc43   : > { %v1980_v11 = vmul.f32 0.00390625, %v1978_v8  ;;  %v3836_v8 = vld [vmem:[#allocation8 + $0x44] ss:$8 sps:$4 sm:$0xff]  }
 0xc45   : > { %v4443_v12 = vsub.f32 %v4315_v27, %v1980_v11  ;;  %v4446_v3 = vsub.f32 %v4318_v29, %v1980_v11  ;;  %v3795_v27 = vld [vmem:[%s4591_s6 + $0x168] ss:$16 sps:$4 sm:$0xff]   ;;  %v3803_v29 = vld [vmem:[%s4591_s6 + $0x14c] ss:$16 sps:$4 sm:$0xff]  }
 0xc46   : > { %2493 = vmatpush2.bf16.msra.mxu0 %v3795_v27  ;;  %v3839_v11 = vld [vmem:[#allocation8 + $0x144] ss:$8 sps:$4 sm:$0xff]   ;;  %v3858_v27 = vld [vmem:[#allocation8] ss:$8 sps:$4 sm:$0xff]  }
 0xc47   : > { %v1983_v13 = vmul.f32 %v4443_v12, %v4443_v12  ;;  %v1984_v15 = vmul.f32 %v4446_v3, %v4446_v3  ;;  %2494 = vmatprep.subr.bf16.mxu0 %v3803_v29  ;;  %v3866_v29 = vld [vmem:[#allocation8 + $0xf4] ss:$8 sps:$4 sm:$0xff]  }
 0xc49   : > { %v1985_v14 = vadd.f32 %v1984_v15, %v1983_v13  ;;  %v3842_v13 = vld [vmem:[#allocation8 + $0x34] ss:$8 sps:$4 sm:$0xff]  }
 0xc4a   : > { %2495 = vmatpush2.bf16.msra.mxu0 %v3801_v31  ;;  %v3845_v15 = vld [vmem:[#allocation8 + $0x134] ss:$8 sps:$4 sm:$0xff]   ;;  %v3864_v31 = vld [vmem:[#allocation8 + $0xf0] ss:$8 sps:$4 sm:$0xff]  }
 0xc4b   : > { %1986 = vadd.xlane.f32.xlu1 %v1985_v14  ;;  %2496 = vmatprep.subr.bf16.mxu0 %v3809_v33  ;;  %v3840_v14 = vld [vmem:[#allocation8 + $0x30] ss:$8 sps:$4 sm:$0xff]   ;;  %v3872_v33 = vld [vmem:[#allocation8 + $0xe4] ss:$8 sps:$4 sm:$0xff]  }
 0xc4e   : > { %2497 = vmatpush2.bf16.msra.mxu0 %v3807_v34  ;;  %v3870_v34 = vld [vmem:[#allocation8 + $0xe0] ss:$8 sps:$4 sm:$0xff]  }
 0xc4f   : > { %2498 = vmatprep.subr.bf16.mxu0 %v3815_v36  ;;  %v3878_v36 = vld [vmem:[#allocation8 + $0xd4] ss:$8 sps:$4 sm:$0xff]  }
 0xc52   : > { %2499 = vmatpush2.bf16.msra.mxu0 %v3813_v38  ;;  %v3876_v38 = vld [vmem:[#allocation8 + $0xd0] ss:$8 sps:$4 sm:$0xff]  }
 0xc53   : > { %2954 = vmatprep.subr.bf16.mxu0 %v3821_v40  ;;  %v3884_v40 = vld [vmem:[#allocation8 + $0xc4] ss:$8 sps:$4 sm:$0xff]  }
 0xcd4   : > { %v1987_v41 = vpop.xlane.xlu1 %1986 }
 0xcd5   : > { %v1988_v42 = vmul.f32 0.00390625, %v1987_v41  ;;  %v3887_v41 = vld [vmem:[#allocation8 + $0x1c4] ss:$8 sps:$4 sm:$0xff]  }
 0xcd7   : > { %v1989_v43 = vadd.f32 1e-05, %v1988_v42  ;;  %v3882_v42 = vld [vmem:[#allocation8 + $0xc0] ss:$8 sps:$4 sm:$0xff]  }
 0xcd9   : > { %3928 = vrsqrt.f32 %v1989_v43  ;;  %v3885_v43 = vld [vmem:[#allocation8 + $0x1c0] ss:$8 sps:$4 sm:$0xff]  }
 0xce6   : > { %v3929_v49 = vpop.eup %3928 }
 0xce7   : > { %v1992_v54 = vmul.f32 %v3929_v49, %v4446_v3  ;;  %v1991_v4 = vmul.f32 %v3929_v49, %v4443_v12  ;;  %v3834_v12 = vld [vmem:[#allocation8 + $0x40] ss:$8 sps:$4 sm:$0xff]   ;;  %v3896_v49 = vld [vmem:[#allocation8 + $0xa4] ss:$8 sps:$4 sm:$0xff]  }
 0xce8   : > { %v3837_v3 = vld [vmem:[#allocation8 + $0x140] ss:$8 sps:$4 sm:$0xff]  }
 0xce9   : > { %v2005_v57 = vmul.f32 %v2001_v53, %v1992_v54  ;;  %v2004_v58 = vmul.f32 %v1997_v51, %v1991_v4  ;;  %v3888_v51 = vld [vmem:[#allocation8 + $0xb0] ss:$8 sps:$4 sm:$0xff]   ;;  %v3899_v54 = vld [vmem:[#allocation8 + $0x1a4] ss:$8 sps:$4 sm:$0xff]   ;;  %v3902_v4 = vld [vmem:[#allocation8 + $0x94] ss:$8 sps:$4 sm:$0xff]  }
 0xcea   : > { %v3891_v53 = vld [vmem:[#allocation8 + $0x1b0] ss:$8 sps:$4 sm:$0xff]  }
 0xceb   : > { %v4545_v59 = vadd.f32 %v2014_v56, %v2005_v57  ;;  %v4547_v47 = vadd.f32 %v2010_v55, %v2004_v58  ;;  %v3894_v55 = vld [vmem:[#allocation8 + $0xa0] ss:$8 sps:$4 sm:$0xff]   ;;  %v3905_v57 = vld [vmem:[#allocation8 + $0x194] ss:$8 sps:$4 sm:$0xff]   ;;  %v3900_v58 = vld [vmem:[#allocation8 + $0x90] ss:$8 sps:$4 sm:$0xff]  }
 0xcec   : > { %v3897_v56 = vld [vmem:[#allocation8 + $0x1a0] ss:$8 sps:$4 sm:$0xff]  }
 0xced   : > { %v2020_v60 = vpack.c.bf16 %v4545_v59, %v4545_v59  ;;  %v2019_v52 = vpack.c.bf16 %v4547_v47, %v4547_v47 }
 0xcef   : > { %2459 = vmatprep.mubr.bf16.mxu1 %v2020_v60  ;;  %2500 = vmatprep.mubr.bf16.mxu0 %v2020_v60  ;;  %v3903_v60 = vld [vmem:[#allocation8 + $0x190] ss:$8 sps:$4 sm:$0xff]  }
 0xcf0   : > { %2460 = vmatmul.mubr.bf16.vlgmr.msra.gmra.mxu1 %v2019_v52  ;;  %2501 = vmatmul.mubr.bf16.vlgmr.msra.gmra.mxu0 %v2019_v52  ;;  %v3908_v52 = vld [vmem:[#allocation8 + $0x84] ss:$8 sps:$4 sm:$0xff]  }
 0xcf1   : > { %2914 = vmatpush1.bf16.msra.mxu1 %v3816_v61  ;;  %2955 = vmatpush1.bf16.msra.mxu0 %v3819_v62  ;;  %v3911_v61 = vld [vmem:[#allocation8 + $0x184] ss:$8 sps:$4 sm:$0xff]   ;;  %v3906_v62 = vld [vmem:[#allocation8 + $0x80] ss:$8 sps:$4 sm:$0xff]  }
 0xcf2   : > { %2915 = vmatprep.subr.bf16.mxu1 %v3824_v63  ;;  %2956 = vmatprep.subr.bf16.mxu0 %v3827_v0  ;;  %v3909_v63 = vld [vmem:[#allocation8 + $0x180] ss:$8 sps:$4 sm:$0xff]   ;;  %v2097_v0 = vsub.s32 2, %v4525_v44 }
 0xcf5   : > { %2916 = vmatpush1.bf16.msra.mxu1 %v3822_v1  ;;  %2957 = vmatpush1.bf16.msra.mxu0 %v3825_v5  ;;  %v2085_v1 = vld [vmem:[%s4592_s7] sm:$0xf]  ;;  %v2101_v5 = vsub.s32 3, %v4525_v44 }
 0xcf6   : > { %2917 = vmatprep.subr.bf16.mxu1 %v3830_v10  ;;  %2958 = vmatprep.subr.bf16.mxu0 %v3833_v6  ;;  %v2090_v10 = vrot.slane %v2085_v1, %v4528_v45  ;;  %v2098_v6 = vrot.slane %v2085_v1, %v2097_v0 }
 0xcf9   : > { %2918 = vmatpush1.bf16.msra.mxu1 %v3828_v7  ;;  %2959 = vmatpush1.bf16.msra.mxu0 %v3831_v9  ;;  %v2094_v7 = vrot.slane %v2085_v1, %v4531_v46  ;;  %v2102_v9 = vrot.slane %v2085_v1, %v2101_v5 }
 0xcfa   : > { %2919 = vmatprep.subr.bf16.mxu1 %v3836_v8  ;;  %2960 = vmatprep.subr.bf16.mxu0 %v3839_v11 }
 0xcfd   : > { %2920 = vmatpush1.bf16.msra.mxu1 %v3834_v12  ;;  %2961 = vmatpush1.bf16.msra.mxu0 %v3837_v3 }
 0xcfe   : > { %2921 = vmatprep.subr.bf16.mxu1 %v3842_v13  ;;  %2962 = vmatprep.subr.bf16.mxu0 %v3845_v15 }
 0xd01   : > { %2922 = vmatpush1.bf16.msra.mxu1 %v3840_v14  ;;  %2963 = vmatpush1.bf16.msra.mxu0 %v3843_v16 }
 0xd02   : > { %2923 = vmatprep.subr.bf16.mxu1 %v3848_v17  ;;  %2964 = vmatprep.subr.bf16.mxu0 %v3851_v18 }
 0xd05   : > { %2924 = vmatpush1.bf16.msra.mxu1 %v3846_v19  ;;  %2965 = vmatpush1.bf16.msra.mxu0 %v3849_v20 }
 0xd06   : > { %2925 = vmatprep.subr.bf16.mxu1 %v3854_v21  ;;  %2966 = vmatprep.subr.bf16.mxu0 %v3857_v22 }
 0xd09   : > { %2926 = vmatpush1.bf16.msra.mxu1 %v3852_v23  ;;  %2967 = vmatpush1.bf16.msra.mxu0 %v3855_v24 }
 0xd0a   : > { %2927 = vmatprep.subr.bf16.mxu1 %v3860_v25  ;;  %2968 = vmatprep.subr.bf16.mxu0 %v3863_v26 }
 0xd0d   : > { %2928 = vmatpush1.bf16.msra.mxu1 %v3858_v27  ;;  %2969 = vmatpush1.bf16.msra.mxu0 %v3861_v28  ;;  %v2581_v28 = vld [vmem:[%s4594_s9] sm:$0x3] }
 0xd0e   : > { %2929 = vmatprep.subr.bf16.mxu1 %v3866_v29  ;;  %2970 = vmatprep.subr.bf16.mxu0 %v3869_v30  ;;  %v2586_v29 = vrot.slane %v2581_v28, %v4528_v45  ;;  %v2590_v30 = vrot.slane %v2581_v28, %v4531_v46 }
 0xd11   : > { %2930 = vmatpush2.bf16.msra.mxu1 %v3864_v31  ;;  %2971 = vmatpush2.bf16.msra.mxu0 %v3867_v32 }
 0xd12   : > { %2931 = vmatprep.subr.bf16.mxu1 %v3872_v33  ;;  %2972 = vmatprep.subr.bf16.mxu0 %v3875_v2 }
 0xd15   : > { %2932 = vmatpush2.bf16.msra.mxu1 %v3870_v34  ;;  %2973 = vmatpush2.bf16.msra.mxu0 %v3873_v35 }
 0xd16   : > { %2933 = vmatprep.subr.bf16.mxu1 %v3878_v36  ;;  %2974 = vmatprep.subr.bf16.mxu0 %v3881_v37 }
 0xd19   : > { %2934 = vmatpush2.bf16.msra.mxu1 %v3876_v38  ;;  %2975 = vmatpush2.bf16.msra.mxu0 %v3879_v39 }
 0xd1a   : > { %2935 = vmatprep.subr.bf16.mxu1 %v3884_v40  ;;  %2976 = vmatprep.subr.bf16.mxu0 %v3887_v41 }
 0xd1d   : > { %2936 = vmatpush2.bf16.msra.mxu1 %v3882_v42  ;;  %2977 = vmatpush2.bf16.msra.mxu0 %v3885_v43 }
 0xd1e   : > { %2937 = vmatprep.subr.bf16.mxu1 %v3890_v48  ;;  %2978 = vmatprep.subr.bf16.mxu0 %v3893_v50 }
 0xd21   : > { %2938 = vmatpush2.bf16.msra.mxu1 %v3888_v51  ;;  %2979 = vmatpush2.bf16.msra.mxu0 %v3891_v53 }
 0xd22   : > { %2939 = vmatprep.subr.bf16.mxu1 %v3896_v49  ;;  %2980 = vmatprep.subr.bf16.mxu0 %v3899_v54 }
 0xd25   : > { %2940 = vmatpush2.bf16.msra.mxu1 %v3894_v55  ;;  %2981 = vmatpush2.bf16.msra.mxu0 %v3897_v56 }
 0xd26   : > { %2941 = vmatprep.subr.bf16.mxu1 %v3902_v4  ;;  %2982 = vmatprep.subr.bf16.mxu0 %v3905_v57 }
 0xd29   : > { %2942 = vmatpush2.bf16.msra.mxu1 %v3900_v58  ;;  %2983 = vmatpush2.bf16.msra.mxu0 %v3903_v60 }
 0xd2a   : > { %2943 = vmatprep.subr.bf16.mxu1 %v3908_v52  ;;  %2984 = vmatprep.subr.bf16.mxu0 %v3911_v61 }
 0xd2d   : > { %2944 = vmatpush2.bf16.msra.mxu1 %v3906_v62  ;;  %2985 = vmatpush2.bf16.msra.mxu0 %v3909_v63 }
 0xdb0   : > { %v2461_v8 = vpop.f32.mrf.mxu1  ;;  %v2502_v11 = vpop.f32.mrf.mxu0 }
 0xdb1   : > { %v2462_v12 = vadd.f32 %v2461_v8, %v2090_v10  ;;  %v2503_v3 = vadd.f32 %v2502_v11, %v2098_v6 }
 0xdb2   : > { %v2463_v13 = vpop.f32.mrf.mxu1  ;;  %v2504_v15 = vpop.f32.mrf.mxu0 }
 0xdb3   : > { %v2464_v14 = vadd.f32 %v2463_v13, %v2094_v7  ;;  %v2505_v16 = vadd.f32 %v2504_v15, %v2102_v9  ;;  %v2509_v17 = vmax.f32 %v2462_v12, 0.0  ;;  %v2511_v18 = vmax.f32 %v2503_v3, 0.0 }
 0xdb4   : > { %v2465_v19 = vpop.f32.mrf.mxu1  ;;  %v2506_v20 = vpop.f32.mrf.mxu0 }
 0xdb5   : > { %v2510_v21 = vmax.f32 %v2464_v14, 0.0  ;;  %v2512_v44 = vmax.f32 %v2505_v16, 0.0  ;;  %v2513_v26 = vpack.c.bf16 %v2509_v17, %v2509_v17  ;;  %v2515_v27 = vpack.c.bf16 %v2511_v18, %v2511_v18 }
 0xdb6   : > { %v2466_v22 = vpop.f32.mrf.mxu1  ;;  %v2507_v23 = vpop.f32.mrf.mxu0 }
 0xdb7   : > { %v2514_v24 = vpack.c.bf16 %v2510_v21, %v2510_v21  ;;  %v2516_v25 = vpack.c.bf16 %v2512_v44, %v2512_v44 }
 0xdb9   : > { %2945 = vmatprep.mubr.bf16.mxu1 %v2514_v24  ;;  %2986 = vmatprep.mubr.bf16.mxu0 %v2516_v25 }
 0xdba   : > { %2946 = vmatmul.mubr.bf16.vlgmr.msra.gmra.mxu1 %v2513_v26  ;;  %2987 = vmatmul.mubr.bf16.vlgmr.msra.gmra.mxu0 %v2515_v27 }
 0xe7a   : > { %v2947_v31 = vpop.f32.mrf.mxu1  ;;  %v2988_v32 = vpop.f32.mrf.mxu0 }
 0xe7b   : > { %v2948_v33 = vadd.f32 %v2947_v31, %v2586_v29 }
 0xe7c   : > { %v2949_v2 = vpop.f32.mrf.mxu1  ;;  %v2990_v34 = vpop.f32.mrf.mxu0 }
 0xe7d   : > { %v2989_v35 = vadd.f32 %v2988_v32, %v2948_v33  ;;  %v2950_v36 = vadd.f32 %v2949_v2, %v2590_v30 }
 0xe7e   : > { %v2951_v37 = vpop.f32.mrf.mxu1  ;;  %v2992_v38 = vpop.f32.mrf.mxu0 }
 0xe7f   : > { %v2991_v39 = vadd.f32 %v2990_v34, %v2950_v36  ;;  %v2995_v42 = vadd.f32 %v2989_v35, %v4547_v47  ;;  %v2997_v47 = vld [vmem:[%s4595_s10] sm:$0x3] }
 0xe80   : > { %v2952_v40 = vpop.f32.mrf.mxu1  ;;  %v2993_v41 = vpop.f32.mrf.mxu0  ;;  %v3019_v60 = vrot.slane %v2997_v47, %v4528_v45  ;;  %v3023_v52 = vrot.slane %v2997_v47, %v4531_v46 }
 0xe81   : > { %v2996_v43 = vadd.f32 %v2991_v39, %v4545_v59  ;;  %v2998_v59 = vld [vmem:[%s4596_s11] sm:$0x3] }
 0xe82   : > { %v3032_v62 = vrot.slane %v2998_v59, %v4528_v45  ;;  %v3036_v63 = vrot.slane %v2998_v59, %v4531_v46 }
 0xe83   : > { %v2999_v48 = vadd.f32 %v2996_v43, %v2995_v42 }
 0xe85   : > { %3000 = vadd.xlane.f32.xlu0 %v2999_v48 }
 0xf0e   : > { %v3001_v50 = vpop.xlane.xlu0 %3000 }
 0xf0f   : > { %v3002_v51 = vmul.f32 0.00390625, %v3001_v50 }
 0xf11   : > { %v3003_v53 = vsub.f32 %v2995_v42, %v3002_v51  ;;  %v3004_v49 = vsub.f32 %v2996_v43, %v3002_v51 }
 0xf13   : > { %v3005_v54 = vmul.f32 %v3003_v53, %v3003_v53  ;;  %v3006_v55 = vmul.f32 %v3004_v49, %v3004_v49 }
 0xf15   : > { %v3007_v56 = vadd.f32 %v3006_v55, %v3005_v54 }
 0xf17   : > { %3008 = vadd.xlane.f32.xlu0 %v3007_v56 }
 0xfa0   : > { %v3009_v4 = vpop.xlane.xlu0 %3008 }
 0xfa1   : > { %v3010_v57 = vmul.f32 0.00390625, %v3009_v4 }
 0xfa3   : > { %v3011_v58 = vadd.f32 1e-05, %v3010_v57 }
 0xfa5   : > { %3930 = vrsqrt.f32 %v3011_v58 }
 0xfb2   : > { %v3931_v61 = vpop.eup %3930 }
 0xfb3   : > { %v3013_v0 = vmul.f32 %v3931_v61, %v3003_v53  ;;  %v3014_v1 = vmul.f32 %v3931_v61, %v3004_v49 }
 0xfb5   : > { %v3026_v5 = vmul.f32 %v3019_v60, %v3013_v0  ;;  %v3027_v10 = vmul.f32 %v3023_v52, %v3014_v1 }
 0xfb7   : > { %v3039_v6 = vadd.f32 %v3032_v62, %v3026_v5  ;;  %v3040_v7 = vadd.f32 %v3036_v63, %v3027_v10 }
 0xfb9   : > { %3041 = vst [vmem:[%s437_s18] sm:$0xff] %v3039_v6  ;;  %3042 = vst [vmem:[%s437_s18 + $0x8] sm:$0xff] %v3040_v7 }
 0xfba PF: > { %s30_s26 = sadd.s32 1, %s4039_s26  }
 0xfbb   : > { %p27_p8 = scmp.ge.s32.totalorder %s30_s26, 4  }
 0xfbd   :  { %29 = sbr.rel (!%p27_p8) target bundleno = 17 (0x11), region = 107 }
 0xfc2   :  { %3064 = vsyncpa [#allocation5], 1 }
 0xfc3   :  { %3066 = vsyncpa [#allocation5 + $0x1], 1 }
 0xfc4   :  { %3067 = vsyncpa [#allocation7], 1 }

</bundles_post_ra>
